<compile_context>
chip_gen: v7x
topology: tpu7x:2x2x1
jax: 0.10.0
libtpu: 0.0.40
codegen_flags: <defaults>
</compile_context>

<pallas_src>
import math
import functools

import jax
import jax.numpy as jnp
from jax import lax
from jax.experimental import pallas as pl
from jax.experimental.pallas import tpu as pltpu


# ----------------------------- helpers ---------------------------------------

def _layer_norm(v, g, b, eps=1e-5):
    mu = jnp.mean(v, axis=-1, keepdims=True)
    var = jnp.mean(jnp.square(v - mu), axis=-1, keepdims=True)
    return (v - mu) * lax.rsqrt(var + eps) * g + b


# ----------------------------- kernel -----------------------------------------

def lstm_transformer_kernel(
    # inputs
    x_ref,        # (N, 1)   time-major tokens: row = t*Bb + b
    lstm_in_ref,  # (2, 4H)  row0 = w_ih row (gate order i|f|o|g), row1 = b_ih+b_hh
    w_hh_ref,     # (H, 4H)  fused recurrent weights, gate order i|f|o|g
    w_tr_ref,     # (H, D)
    w_qkv_ref,    # (D, 3D)
    b_qkv_ref,    # (1, 3D)
    w_ao_ref,     # (D, D)   attention out-proj (already transposed)
    w_ff1_ref,    # (D, 4D)
    b_ff1_ref,    # (1, 4D)
    w_ff2_ref,    # (4D, D)
    rows_ref,     # (9, D): [b_tr, b_ao, ln1_g, ln1_b, b_ff2, ln2_g, ln2_b, w_dec, [b_dec,0..]]
    # outputs
    out_ref,      # (Bb, 1)
    *, seq_len, hidden_size, d_model, nhead,
):
    T = seq_len
    H, D = hidden_size, d_model
    hd = D // nhead
    Bb = out_ref.shape[0]
    N = Bb * T

    # ---- one-shot precompute of input-side gate pre-activations ---------------
    # (off the serial recurrence path; replaces per-step broadcasts + VPU ops)
    lstm_in = lstm_in_ref[...]                            # (2, 4H)
    wih = lstm_in[0:1, :]                                 # (1, 4H)
    b_all = lstm_in[1:2, :]                               # (1, 4H)
    x_col = x_ref[...]                                    # (N, 1) time-major
    pre_in = x_col * wih + b_all                          # (N, 4H)

    w_hh = w_hh_ref[...]                                  # (H, 4H)

    # ---- serial LSTM recurrence (statically unrolled, T small) ----------------
    # Per step: ONE fused (Bb,H)@(H,4H) MXU push + batched EUP activations.
    # TODO(synk): if Bb is ever increased, switch to lax.fori_loop(unroll=k)
    # and re-check vreg pressure / the O(N^2) attention mask size.
    h = jnp.zeros((Bb, H), jnp.float32)
    c = jnp.zeros((Bb, H), jnp.float32)
    hs = []
    for t in range(T):
        pre = pre_in[t * Bb:(t + 1) * Bb, :] + jnp.dot(
            h, w_hh, preferred_element_type=jnp.float32)              # (Bb, 4H)
        sig = jax.nn.sigmoid(pre[:, :3 * H])                          # [i|f|o]
        g_g = jnp.tanh(pre[:, 3 * H:])                                # g
        i_g = sig[:, :H]
        f_g = sig[:, H:2 * H]
        o_g = sig[:, 2 * H:]
        c = f_g * c + i_g * g_g
        h = o_g * jnp.tanh(c)
        hs.append(h)
    hs_all = jnp.concatenate(hs, axis=0)                              # (N, H) time-major

    # ---- unpack the packed bias/LN/decoder rows --------------------------------
    rows = rows_ref[...]                                              # (9, D)
    b_tr, b_ao = rows[0:1, :], rows[1:2, :]
    ln1_g, ln1_b = rows[2:3, :], rows[3:4, :]
    b_ff2 = rows[4:5, :]
    ln2_g, ln2_b = rows[5:6, :], rows[6:7, :]
    w_dec = rows[7:8, :]
    b_dec = rows[8:9, 0:1]                                            # (1, 1)

    # ---- transform Linear: one (N,H)@(H,D) --------------------------------------
    xs = jnp.dot(hs_all, w_tr_ref[...],
                 preferred_element_type=jnp.float32) + b_tr           # (N, D)

    # ---- self-attention: fused QKV, all tokens at once, block-diag batch mask ---
    qkv = jnp.dot(xs, w_qkv_ref[...],
                  preferred_element_type=jnp.float32) + b_qkv_ref[...]  # (N, 3D)
    q = qkv[:, :D]
    k = qkv[:, D:2 * D]
    v = qkv[:, 2 * D:]

    if Bb > 1:
        ri = lax.broadcasted_iota(jnp.int32, (N, N), 0)
        ci = lax.broadcasted_iota(jnp.int32, (N, N), 1)
        if (Bb & (Bb - 1)) == 0:                          # Bb power of two
            same_batch = (ri & (Bb - 1)) == (ci & (Bb - 1))
        else:
            same_batch = (ri % Bb) == (ci % Bb)
    else:
        same_batch = None                                 # single row: no mask needed

    w_ao = w_ao_ref[...]
    scale = 1.0 / math.sqrt(hd)
    attn = None
    for n in range(nhead):
        sl = slice(n * hd, (n + 1) * hd)
        sc = jnp.einsum("qd,kd->qk", q[:, sl], k[:, sl],
                        preferred_element_type=jnp.float32) * scale   # (N, N)
        if same_batch is not None:
            sc = jnp.where(same_batch, sc, -1e30)         # cross-batch -> exp()==0
        sc = sc - jnp.max(sc, axis=-1, keepdims=True)
        p = jnp.exp(sc)
        denom = jnp.sum(p, axis=-1, keepdims=True)
        inv = pl.reciprocal(denom, approx=True)           # EUP slot (free)
        inv = inv * (2.0 - denom * inv)                   # one Newton step -> f32 acc.
        p = p * inv
        ctx = jnp.dot(p, v[:, sl], preferred_element_type=jnp.float32)   # (N, hd)
        # accumulate directly through the matching out-proj row block:
        contrib = jnp.dot(ctx, w_ao[sl, :], preferred_element_type=jnp.float32)
        attn = contrib if attn is None else attn + contrib
    attn = attn + b_ao                                                # (N, D)

    # ---- post-norm encoder epilogue (dropout = identity at inference) ----------
    x1 = _layer_norm(xs + attn, ln1_g, ln1_b)
    ff = jnp.maximum(
        jnp.dot(x1, w_ff1_ref[...],
                preferred_element_type=jnp.float32) + b_ff1_ref[...], 0.0)
    ff = jnp.dot(ff, w_ff2_ref[...],
                 preferred_element_type=jnp.float32) + b_ff2
    x2 = _layer_norm(x1 + ff, ln2_g, ln2_b)                           # (N, D)

    # ---- decoder on the last timestep (time-major => last row block) -----------
    last = x2[(T - 1) * Bb:N, :]                                      # (Bb, D)
    pred = jnp.sum(last * w_dec, axis=-1, keepdims=True) + b_dec
    out_ref[...] = pred                                               # (Bb, 1)


# ----------------------------- wrapper -----------------------------------------

def _replicated_spec(arr):
    """Whole-array block, identical for every grid step."""
    zeros = (0,) * arr.ndim

    def idx(i):
        return zeros

    return pl.BlockSpec(arr.shape, idx)


def lstm_transformer_forward(x, params, *, hidden_size, d_model, nhead,
                             batch_blocks=1):
    """x: (B, T, 1) float32 -> (B, 1) float32."""
    B, T, input_size = x.shape
    assert input_size == 1
    assert d_model % nhead == 0
    G = max(1, int(batch_blocks))
    if B % G != 0:
        G = 1
    Bb = B // G
    N = Bb * T

    # time-major token column per batch block: row = t*Bb + b
    x_tm = (x[..., 0].astype(jnp.float32)
            .reshape(G, Bb, T).transpose(0, 2, 1).reshape(G, N, 1))

    kernel = functools.partial(
        lstm_transformer_kernel,
        seq_len=T, hidden_size=hidden_size, d_model=d_model, nhead=nhead)

    in_specs = [pl.BlockSpec((None, N, 1), lambda i: (i, 0, 0))]
    in_specs += [_replicated_spec(p) for p in params]
    out_spec = pl.BlockSpec((None, Bb, 1), lambda i: (i, 0, 0))

    out = pl.pallas_call(
        kernel,
        out_shape=jax.ShapeDtypeStruct((G, Bb, 1), jnp.float32),
        grid=(G,),
        in_specs=in_specs,
        out_specs=out_spec,
        compiler_params=pltpu.CompilerParams(
            dimension_semantics=("parallel",)),
    )(x_tm, *params)
    return out.reshape(B, 1)


def _num_batch_blocks(batch):
    """Shard the batch over 2 TensorCores only on v7x-class chips AND only when
    each core gets at least a full sublane tile (>=8 rows): the serial LSTM is
    latency-bound, so splitting a tiny batch only duplicates weight DMAs."""
    try:
        kind = jax.devices()[0].device_kind.lower()
        if ("v7" in kind or "tpu7" in kind) and batch % 2 == 0 and batch // 2 >= 8:
            return 2
    except Exception:
        pass
    return 1


# --------------------- deterministic parameters (PyTorch layout) ----------------

def make_params(key, *, input_size=1, hidden_size=64, d_model=64):
    H, D = hidden_size, d_model
    keys = iter(jax.random.split(key, 24))

    def u(shape, bound):
        return jax.random.uniform(next(keys), shape, jnp.float32, -bound, bound)

    s_h = 1.0 / math.sqrt(H)
    s_d = 1.0 / math.sqrt(D)
    s_ff = 1.0 / math.sqrt(4 * D)
    return {
        "lstm.w_ih": u((4 * H, input_size), s_h),
        "lstm.w_hh": u((4 * H, H), s_h),
        "lstm.b_ih": u((4 * H,), s_h),
        "lstm.b_hh": u((4 * H,), s_h),
        "tr.w": u((D, H), s_h),
        "tr.b": u((D,), s_h),
        "attn.in_w": u((3 * D, D), s_d),
        "attn.in_b": u((3 * D,), s_d),
        "attn.out_w": u((D, D), s_d),
        "attn.out_b": u((D,), s_d),
        "ln1.g": jnp.ones((D,), jnp.float32),
        "ln1.b": jnp.zeros((D,), jnp.float32),
        "ff.w1": u((4 * D, D), s_d),
        "ff.b1": u((4 * D,), s_d),
        "ff.w2": u((D, 4 * D), s_ff),
        "ff.b2": u((D,), s_ff),
        "ln2.g": jnp.ones((D,), jnp.float32),
        "ln2.b": jnp.zeros((D,), jnp.float32),
        "dec.w": u((1, D), s_d),
        "dec.b": u((1,), s_d),
    }


def prepare_kernel_params(p, *, hidden_size, d_model):
    """PyTorch layout -> packed / pre-transposed / gate-reordered kernel layout."""
    H, D = hidden_size, d_model
    order = (0, 1, 3, 2)          # PyTorch gate order [i,f,g,o] -> kernel [i,f,o,g]

    def reorder(w):               # (4H, X) -> gate-reordered (4H, X)
        return jnp.concatenate([w[g * H:(g + 1) * H] for g in order], axis=0)

    w_ih = reorder(p["lstm.w_ih"])                                # (4H, 1)
    w_hh = reorder(p["lstm.w_hh"])                                # (4H, H)
    b_all = reorder((p["lstm.b_ih"] + p["lstm.b_hh"]).reshape(4 * H, 1))

    lstm_in = jnp.concatenate([w_ih.T, b_all.T], axis=0)          # (2, 4H)
    w_hh_t = w_hh.T                                               # (H, 4H)

    w_qkv = p["attn.in_w"].T                                      # (D, 3D)
    b_qkv = p["attn.in_b"].reshape(1, 3 * D)

    b_dec_row = jnp.zeros((1, D), jnp.float32).at[0, 0].set(p["dec.b"][0])
    rows = jnp.concatenate([
        p["tr.b"].reshape(1, D),
        p["attn.out_b"].reshape(1, D),
        p["ln1.g"].reshape(1, D), p["ln1.b"].reshape(1, D),
        p["ff.b2"].reshape(1, D),
        p["ln2.g"].reshape(1, D), p["ln2.b"].reshape(1, D),
        p["dec.w"].reshape(1, D),
        b_dec_row,
    ], axis=0)                                                    # (9, D)

    return (
        lstm_in,                      # (2, 4H)
        w_hh_t,                       # (H, 4H)
        p["tr.w"].T,                  # (H, D)
        w_qkv, b_qkv,                 # (D, 3D), (1, 3D)
        p["attn.out_w"].T,            # (D, D)
        p["ff.w1"].T,                 # (D, 4D)
        p["ff.b1"].reshape(1, 4 * D), # (1, 4D)
        p["ff.w2"].T,                 # (4D, D)
        rows,                         # (9, D)
    )


# --------------------------- pure-JAX reference ----------------------------------

def reference_forward(x, p, *, hidden_size, d_model, nhead):
    H, D, hd = hidden_size, d_model, d_model // nhead
    B, T, _ = x.shape

    w_ih, w_hh = p["lstm.w_ih"], p["lstm.w_hh"]
    b_all = p["lstm.b_ih"] + p["lstm.b_hh"]
    h = jnp.zeros((B, H), jnp.float32)
    c = jnp.zeros((B, H), jnp.float32)
    outs = []
    for t in range(T):
        gates = x[:, t, :] @ w_ih.T + h @ w_hh.T + b_all
        i = jax.nn.sigmoid(gates[:, :H])
        f = jax.nn.sigmoid(gates[:, H:2 * H])
        g = jnp.tanh(gates[:, 2 * H:3 * H])
        o = jax.nn.sigmoid(gates[:, 3 * H:])
        c = f * c + i * g
        h = o * jnp.tanh(c)
        outs.append(h)
    lstm_out = jnp.stack(outs, axis=1)                   # (B, T, H)
    xs = lstm_out @ p["tr.w"].T + p["tr.b"]              # (B, T, D)

    def ln(v, g, b):
        mu = v.mean(-1, keepdims=True)
        var = ((v - mu) ** 2).mean(-1, keepdims=True)
        return (v - mu) / jnp.sqrt(var + 1e-5) * g + b

    qkv = xs @ p["attn.in_w"].T + p["attn.in_b"]
    q, k, v = qkv[..., :D], qkv[..., D:2 * D], qkv[..., 2 * D:]

    def split_heads(a):
        return a.reshape(B, T, nhead, hd).transpose(0, 2, 1, 3)

    qh, kh, vh = split_heads(q), split_heads(k), split_heads(v)
    sc = jnp.einsum("bhqd,bhkd->bhqk", qh, kh) / math.sqrt(hd)
    pm = jax.nn.softmax(sc, axis=-1)
    ctx = jnp.einsum("bhqk,bhkd->bhqd", pm, vh)
    ctx = ctx.transpose(0, 2, 1, 3).reshape(B, T, D)
    attn = ctx @ p["attn.out_w"].T + p["attn.out_b"]

    x1 = ln(xs + attn, p["ln1.g"], p["ln1.b"])
    ff = jnp.maximum(x1 @ p["ff.w1"].T + p["ff.b1"], 0.0) @ p["ff.w2"].T + p["ff.b2"]
    x2 = ln(x1 + ff, p["ln2.g"], p["ln2.b"])
    return x2[:, -1, :] @ p["dec.w"].T + p["dec.b"]      # (B, 1)


# ------------------------------- main ---------------------------------------------

if __name__ == "__main__":
    B, T = 2, 10                         # seq_length=10 (module default)
    INPUT_SIZE, H, D, NHEAD = 1, 64, 64, 4

    key = jax.random.PRNGKey(0)
    kx, kp = jax.random.split(key)
    x = jax.random.normal(kx, (B, T, INPUT_SIZE), jnp.float32)

    torch_params = make_params(kp, input_size=INPUT_SIZE, hidden_size=H, d_model=D)
    kernel_params = prepare_kernel_params(torch_params, hidden_size=H, d_model=D)

    out = lstm_transformer_forward(
        x, kernel_params, hidden_size=H, d_model=D, nhead=NHEAD,
        batch_blocks=_num_batch_blocks(B))
    out = jax.block_until_ready(out)

    ref = reference_forward(x, torch_params, hidden_size=H, d_model=D, nhead=NHEAD)
    assert out.shape == (B, 1)
    # tolerance covers the EUP reciprocal (+ Newton step) in the softmax
    assert jnp.allclose(out, ref, rtol=1e-3, atol=1e-3), (out, ref)

    print("KERNEL_OK")
</pallas_src>

<mosaic_0001>
module attributes {stable_mosaic.version = 11 : i64} {
  func.func @lstm_transformer_kernel(%arg0: i32, %arg1: memref<1x20x1xf32, #tpu.memory_space<vmem>>, %arg2: memref<2x256xf32, #tpu.memory_space<vmem>>, %arg3: memref<64x256xf32, #tpu.memory_space<vmem>>, %arg4: memref<64x64xf32, #tpu.memory_space<vmem>>, %arg5: memref<64x192xf32, #tpu.memory_space<vmem>>, %arg6: memref<1x192xf32, #tpu.memory_space<vmem>>, %arg7: memref<64x64xf32, #tpu.memory_space<vmem>>, %arg8: memref<64x256xf32, #tpu.memory_space<vmem>>, %arg9: memref<1x256xf32, #tpu.memory_space<vmem>>, %arg10: memref<256x64xf32, #tpu.memory_space<vmem>>, %arg11: memref<9x64xf32, #tpu.memory_space<vmem>>, %arg12: memref<1x2x1xf32, #tpu.memory_space<vmem>>) attributes {dimension_semantics = [#tpu.dimension_semantics<parallel>], iteration_bounds = array<i64: 1>, scalar_prefetch = 0 : i64, scratch_operands = 0 : i64, tpu.core_type = #tpu.core_type<tc>, window_params = [{transform_indices = @transform_0, window_bounds = array<i64: 1, 20, 1>}, {pipeline_mode = #tpu.pipeline_mode<synchronous>, transform_indices = @transform_1, window_bounds = array<i64: 2, 256>}, {pipeline_mode = #tpu.pipeline_mode<synchronous>, transform_indices = @transform_2, window_bounds = array<i64: 64, 256>}, {pipeline_mode = #tpu.pipeline_mode<synchronous>, transform_indices = @transform_3, window_bounds = array<i64: 64, 64>}, {pipeline_mode = #tpu.pipeline_mode<synchronous>, transform_indices = @transform_4, window_bounds = array<i64: 64, 192>}, {pipeline_mode = #tpu.pipeline_mode<synchronous>, transform_indices = @transform_5, window_bounds = array<i64: 1, 192>}, {pipeline_mode = #tpu.pipeline_mode<synchronous>, transform_indices = @transform_6, window_bounds = array<i64: 64, 64>}, {pipeline_mode = #tpu.pipeline_mode<synchronous>, transform_indices = @transform_7, window_bounds = array<i64: 64, 256>}, {pipeline_mode = #tpu.pipeline_mode<synchronous>, transform_indices = @transform_8, window_bounds = array<i64: 1, 256>}, {pipeline_mode = #tpu.pipeline_mode<synchronous>, transform_indices = @transform_9, window_bounds = array<i64: 256, 64>}, {pipeline_mode = #tpu.pipeline_mode<synchronous>, transform_indices = @transform_10, window_bounds = array<i64: 9, 64>}, {transform_indices = @transform_11, window_bounds = array<i64: 1, 2, 1>}]} {
    %c0 = arith.constant 0 : index
    %c0_0 = arith.constant 0 : index
    %0 = vector.load %arg2[%c0, %c0_0] : memref<2x256xf32, #tpu.memory_space<vmem>>, vector<2x256xf32>
    %1 = vector.extract_strided_slice %0 {offsets = [0, 0], sizes = [1, 256], strides = [1, 1]} : vector<2x256xf32> to vector<1x256xf32>
    %2 = vector.extract_strided_slice %0 {offsets = [1, 0], sizes = [1, 256], strides = [1, 1]} : vector<2x256xf32> to vector<1x256xf32>
    %c0_1 = arith.constant 0 : index
    %c0_2 = arith.constant 0 : index
    %c0_3 = arith.constant 0 : index
    %3 = vector.load %arg1[%c0_1, %c0_2, %c0_3] : memref<1x20x1xf32, #tpu.memory_space<vmem>>, vector<1x20x1xf32>
    %4 = vector.shape_cast %3 : vector<1x20x1xf32> to vector<20x1xf32>
    %5 = vector.broadcast %4 : vector<20x1xf32> to vector<20x256xf32>
    %6 = vector.broadcast %1 : vector<1x256xf32> to vector<20x256xf32>
    %7 = arith.mulf %5, %6 : vector<20x256xf32>
    %8 = vector.broadcast %2 : vector<1x256xf32> to vector<20x256xf32>
    %9 = arith.addf %7, %8 : vector<20x256xf32>
    %c0_4 = arith.constant 0 : index
    %c0_5 = arith.constant 0 : index
    %10 = vector.load %arg3[%c0_4, %c0_5] : memref<64x256xf32, #tpu.memory_space<vmem>>, vector<64x256xf32>
    %cst = arith.constant 0.000000e+00 : f32
    %11 = vector.broadcast %cst : f32 to vector<2x64xf32>
    %cst_6 = arith.constant 0.000000e+00 : f32
    %12 = vector.broadcast %cst_6 : f32 to vector<2x64xf32>
    %13 = vector.extract_strided_slice %9 {offsets = [0, 0], sizes = [2, 256], strides = [1, 1]} : vector<20x256xf32> to vector<2x256xf32>
    %cst_7 = arith.constant dense<0.000000e+00> : vector<2x256xf32>
    %14 = tpu.matmul %11, %10, %cst_7 {dimension_numbers = #tpu.dot_dimension_numbers<[1], [0], [0], [1], [0, 0, 1, 1], [], []>} : vector<2x64xf32>, vector<64x256xf32>, vector<2x256xf32> -> vector<2x256xf32>
    %15 = arith.addf %13, %14 : vector<2x256xf32>
    %16 = vector.extract_strided_slice %15 {offsets = [0, 0], sizes = [2, 192], strides = [1, 1]} : vector<2x256xf32> to vector<2x192xf32>
    %17 = arith.negf %16 : vector<2x192xf32>
    %18 = math.exp %17 : vector<2x192xf32>
    %cst_8 = arith.constant 1.000000e+00 : f32
    %19 = vector.broadcast %cst_8 : f32 to vector<2x192xf32>
    %20 = arith.addf %19, %18 : vector<2x192xf32>
    %21 = arith.divf %19, %20 : vector<2x192xf32>
    %22 = vector.extract_strided_slice %15 {offsets = [0, 192], sizes = [2, 64], strides = [1, 1]} : vector<2x256xf32> to vector<2x64xf32>
    %23 = math.tanh %22 : vector<2x64xf32>
    %24 = vector.extract_strided_slice %21 {offsets = [0, 0], sizes = [2, 64], strides = [1, 1]} : vector<2x192xf32> to vector<2x64xf32>
    %25 = vector.extract_strided_slice %21 {offsets = [0, 64], sizes = [2, 64], strides = [1, 1]} : vector<2x192xf32> to vector<2x64xf32>
    %26 = vector.extract_strided_slice %21 {offsets = [0, 128], sizes = [2, 64], strides = [1, 1]} : vector<2x192xf32> to vector<2x64xf32>
    %27 = arith.mulf %25, %12 : vector<2x64xf32>
    %28 = arith.mulf %24, %23 : vector<2x64xf32>
    %29 = arith.addf %27, %28 : vector<2x64xf32>
    %30 = math.tanh %29 : vector<2x64xf32>
    %31 = arith.mulf %26, %30 : vector<2x64xf32>
    %32 = vector.extract_strided_slice %9 {offsets = [2, 0], sizes = [2, 256], strides = [1, 1]} : vector<20x256xf32> to vector<2x256xf32>
    %cst_9 = arith.constant dense<0.000000e+00> : vector<2x256xf32>
    %33 = tpu.matmul %31, %10, %cst_9 {dimension_numbers = #tpu.dot_dimension_numbers<[1], [0], [0], [1], [0, 0, 1, 1], [], []>} : vector<2x64xf32>, vector<64x256xf32>, vector<2x256xf32> -> vector<2x256xf32>
    %34 = arith.addf %32, %33 : vector<2x256xf32>
    %35 = vector.extract_strided_slice %34 {offsets = [0, 0], sizes = [2, 192], strides = [1, 1]} : vector<2x256xf32> to vector<2x192xf32>
    %36 = arith.negf %35 : vector<2x192xf32>
    %37 = math.exp %36 : vector<2x192xf32>
    %cst_10 = arith.constant 1.000000e+00 : f32
    %38 = vector.broadcast %cst_10 : f32 to vector<2x192xf32>
    %39 = arith.addf %38, %37 : vector<2x192xf32>
    %40 = arith.divf %38, %39 : vector<2x192xf32>
    %41 = vector.extract_strided_slice %34 {offsets = [0, 192], sizes = [2, 64], strides = [1, 1]} : vector<2x256xf32> to vector<2x64xf32>
    %42 = math.tanh %41 : vector<2x64xf32>
    %43 = vector.extract_strided_slice %40 {offsets = [0, 0], sizes = [2, 64], strides = [1, 1]} : vector<2x192xf32> to vector<2x64xf32>
    %44 = vector.extract_strided_slice %40 {offsets = [0, 64], sizes = [2, 64], strides = [1, 1]} : vector<2x192xf32> to vector<2x64xf32>
    %45 = vector.extract_strided_slice %40 {offsets = [0, 128], sizes = [2, 64], strides = [1, 1]} : vector<2x192xf32> to vector<2x64xf32>
    %46 = arith.mulf %44, %29 : vector<2x64xf32>
    %47 = arith.mulf %43, %42 : vector<2x64xf32>
    %48 = arith.addf %46, %47 : vector<2x64xf32>
    %49 = math.tanh %48 : vector<2x64xf32>
    %50 = arith.mulf %45, %49 : vector<2x64xf32>
    %51 = vector.extract_strided_slice %9 {offsets = [4, 0], sizes = [2, 256], strides = [1, 1]} : vector<20x256xf32> to vector<2x256xf32>
    %cst_11 = arith.constant dense<0.000000e+00> : vector<2x256xf32>
    %52 = tpu.matmul %50, %10, %cst_11 {dimension_numbers = #tpu.dot_dimension_numbers<[1], [0], [0], [1], [0, 0, 1, 1], [], []>} : vector<2x64xf32>, vector<64x256xf32>, vector<2x256xf32> -> vector<2x256xf32>
    %53 = arith.addf %51, %52 : vector<2x256xf32>
    %54 = vector.extract_strided_slice %53 {offsets = [0, 0], sizes = [2, 192], strides = [1, 1]} : vector<2x256xf32> to vector<2x192xf32>
    %55 = arith.negf %54 : vector<2x192xf32>
    %56 = math.exp %55 : vector<2x192xf32>
    %cst_12 = arith.constant 1.000000e+00 : f32
    %57 = vector.broadcast %cst_12 : f32 to vector<2x192xf32>
    %58 = arith.addf %57, %56 : vector<2x192xf32>
    %59 = arith.divf %57, %58 : vector<2x192xf32>
    %60 = vector.extract_strided_slice %53 {offsets = [0, 192], sizes = [2, 64], strides = [1, 1]} : vector<2x256xf32> to vector<2x64xf32>
    %61 = math.tanh %60 : vector<2x64xf32>
    %62 = vector.extract_strided_slice %59 {offsets = [0, 0], sizes = [2, 64], strides = [1, 1]} : vector<2x192xf32> to vector<2x64xf32>
    %63 = vector.extract_strided_slice %59 {offsets = [0, 64], sizes = [2, 64], strides = [1, 1]} : vector<2x192xf32> to vector<2x64xf32>
    %64 = vector.extract_strided_slice %59 {offsets = [0, 128], sizes = [2, 64], strides = [1, 1]} : vector<2x192xf32> to vector<2x64xf32>
    %65 = arith.mulf %63, %48 : vector<2x64xf32>
    %66 = arith.mulf %62, %61 : vector<2x64xf32>
    %67 = arith.addf %65, %66 : vector<2x64xf32>
    %68 = math.tanh %67 : vector<2x64xf32>
    %69 = arith.mulf %64, %68 : vector<2x64xf32>
    %70 = vector.extract_strided_slice %9 {offsets = [6, 0], sizes = [2, 256], strides = [1, 1]} : vector<20x256xf32> to vector<2x256xf32>
    %cst_13 = arith.constant dense<0.000000e+00> : vector<2x256xf32>
    %71 = tpu.matmul %69, %10, %cst_13 {dimension_numbers = #tpu.dot_dimension_numbers<[1], [0], [0], [1], [0, 0, 1, 1], [], []>} : vector<2x64xf32>, vector<64x256xf32>, vector<2x256xf32> -> vector<2x256xf32>
    %72 = arith.addf %70, %71 : vector<2x256xf32>
    %73 = vector.extract_strided_slice %72 {offsets = [0, 0], sizes = [2, 192], strides = [1, 1]} : vector<2x256xf32> to vector<2x192xf32>
    %74 = arith.negf %73 : vector<2x192xf32>
    %75 = math.exp %74 : vector<2x192xf32>
    %cst_14 = arith.constant 1.000000e+00 : f32
    %76 = vector.broadcast %cst_14 : f32 to vector<2x192xf32>
    %77 = arith.addf %76, %75 : vector<2x192xf32>
    %78 = arith.divf %76, %77 : vector<2x192xf32>
    %79 = vector.extract_strided_slice %72 {offsets = [0, 192], sizes = [2, 64], strides = [1, 1]} : vector<2x256xf32> to vector<2x64xf32>
    %80 = math.tanh %79 : vector<2x64xf32>
    %81 = vector.extract_strided_slice %78 {offsets = [0, 0], sizes = [2, 64], strides = [1, 1]} : vector<2x192xf32> to vector<2x64xf32>
    %82 = vector.extract_strided_slice %78 {offsets = [0, 64], sizes = [2, 64], strides = [1, 1]} : vector<2x192xf32> to vector<2x64xf32>
    %83 = vector.extract_strided_slice %78 {offsets = [0, 128], sizes = [2, 64], strides = [1, 1]} : vector<2x192xf32> to vector<2x64xf32>
    %84 = arith.mulf %82, %67 : vector<2x64xf32>
    %85 = arith.mulf %81, %80 : vector<2x64xf32>
    %86 = arith.addf %84, %85 : vector<2x64xf32>
    %87 = math.tanh %86 : vector<2x64xf32>
    %88 = arith.mulf %83, %87 : vector<2x64xf32>
    %89 = vector.extract_strided_slice %9 {offsets = [8, 0], sizes = [2, 256], strides = [1, 1]} : vector<20x256xf32> to vector<2x256xf32>
    %cst_15 = arith.constant dense<0.000000e+00> : vector<2x256xf32>
    %90 = tpu.matmul %88, %10, %cst_15 {dimension_numbers = #tpu.dot_dimension_numbers<[1], [0], [0], [1], [0, 0, 1, 1], [], []>} : vector<2x64xf32>, vector<64x256xf32>, vector<2x256xf32> -> vector<2x256xf32>
    %91 = arith.addf %89, %90 : vector<2x256xf32>
    %92 = vector.extract_strided_slice %91 {offsets = [0, 0], sizes = [2, 192], strides = [1, 1]} : vector<2x256xf32> to vector<2x192xf32>
    %93 = arith.negf %92 : vector<2x192xf32>
    %94 = math.exp %93 : vector<2x192xf32>
    %cst_16 = arith.constant 1.000000e+00 : f32
    %95 = vector.broadcast %cst_16 : f32 to vector<2x192xf32>
    %96 = arith.addf %95, %94 : vector<2x192xf32>
    %97 = arith.divf %95, %96 : vector<2x192xf32>
    %98 = vector.extract_strided_slice %91 {offsets = [0, 192], sizes = [2, 64], strides = [1, 1]} : vector<2x256xf32> to vector<2x64xf32>
    %99 = math.tanh %98 : vector<2x64xf32>
    %100 = vector.extract_strided_slice %97 {offsets = [0, 0], sizes = [2, 64], strides = [1, 1]} : vector<2x192xf32> to vector<2x64xf32>
    %101 = vector.extract_strided_slice %97 {offsets = [0, 64], sizes = [2, 64], strides = [1, 1]} : vector<2x192xf32> to vector<2x64xf32>
    %102 = vector.extract_strided_slice %97 {offsets = [0, 128], sizes = [2, 64], strides = [1, 1]} : vector<2x192xf32> to vector<2x64xf32>
    %103 = arith.mulf %101, %86 : vector<2x64xf32>
    %104 = arith.mulf %100, %99 : vector<2x64xf32>
    %105 = arith.addf %103, %104 : vector<2x64xf32>
    %106 = math.tanh %105 : vector<2x64xf32>
    %107 = arith.mulf %102, %106 : vector<2x64xf32>
    %108 = vector.extract_strided_slice %9 {offsets = [10, 0], sizes = [2, 256], strides = [1, 1]} : vector<20x256xf32> to vector<2x256xf32>
    %cst_17 = arith.constant dense<0.000000e+00> : vector<2x256xf32>
    %109 = tpu.matmul %107, %10, %cst_17 {dimension_numbers = #tpu.dot_dimension_numbers<[1], [0], [0], [1], [0, 0, 1, 1], [], []>} : vector<2x64xf32>, vector<64x256xf32>, vector<2x256xf32> -> vector<2x256xf32>
    %110 = arith.addf %108, %109 : vector<2x256xf32>
    %111 = vector.extract_strided_slice %110 {offsets = [0, 0], sizes = [2, 192], strides = [1, 1]} : vector<2x256xf32> to vector<2x192xf32>
    %112 = arith.negf %111 : vector<2x192xf32>
    %113 = math.exp %112 : vector<2x192xf32>
    %cst_18 = arith.constant 1.000000e+00 : f32
    %114 = vector.broadcast %cst_18 : f32 to vector<2x192xf32>
    %115 = arith.addf %114, %113 : vector<2x192xf32>
    %116 = arith.divf %114, %115 : vector<2x192xf32>
    %117 = vector.extract_strided_slice %110 {offsets = [0, 192], sizes = [2, 64], strides = [1, 1]} : vector<2x256xf32> to vector<2x64xf32>
    %118 = math.tanh %117 : vector<2x64xf32>
    %119 = vector.extract_strided_slice %116 {offsets = [0, 0], sizes = [2, 64], strides = [1, 1]} : vector<2x192xf32> to vector<2x64xf32>
    %120 = vector.extract_strided_slice %116 {offsets = [0, 64], sizes = [2, 64], strides = [1, 1]} : vector<2x192xf32> to vector<2x64xf32>
    %121 = vector.extract_strided_slice %116 {offsets = [0, 128], sizes = [2, 64], strides = [1, 1]} : vector<2x192xf32> to vector<2x64xf32>
    %122 = arith.mulf %120, %105 : vector<2x64xf32>
    %123 = arith.mulf %119, %118 : vector<2x64xf32>
    %124 = arith.addf %122, %123 : vector<2x64xf32>
    %125 = math.tanh %124 : vector<2x64xf32>
    %126 = arith.mulf %121, %125 : vector<2x64xf32>
    %127 = vector.extract_strided_slice %9 {offsets = [12, 0], sizes = [2, 256], strides = [1, 1]} : vector<20x256xf32> to vector<2x256xf32>
    %cst_19 = arith.constant dense<0.000000e+00> : vector<2x256xf32>
    %128 = tpu.matmul %126, %10, %cst_19 {dimension_numbers = #tpu.dot_dimension_numbers<[1], [0], [0], [1], [0, 0, 1, 1], [], []>} : vector<2x64xf32>, vector<64x256xf32>, vector<2x256xf32> -> vector<2x256xf32>
    %129 = arith.addf %127, %128 : vector<2x256xf32>
    %130 = vector.extract_strided_slice %129 {offsets = [0, 0], sizes = [2, 192], strides = [1, 1]} : vector<2x256xf32> to vector<2x192xf32>
    %131 = arith.negf %130 : vector<2x192xf32>
    %132 = math.exp %131 : vector<2x192xf32>
    %cst_20 = arith.constant 1.000000e+00 : f32
    %133 = vector.broadcast %cst_20 : f32 to vector<2x192xf32>
    %134 = arith.addf %133, %132 : vector<2x192xf32>
    %135 = arith.divf %133, %134 : vector<2x192xf32>
    %136 = vector.extract_strided_slice %129 {offsets = [0, 192], sizes = [2, 64], strides = [1, 1]} : vector<2x256xf32> to vector<2x64xf32>
    %137 = math.tanh %136 : vector<2x64xf32>
    %138 = vector.extract_strided_slice %135 {offsets = [0, 0], sizes = [2, 64], strides = [1, 1]} : vector<2x192xf32> to vector<2x64xf32>
    %139 = vector.extract_strided_slice %135 {offsets = [0, 64], sizes = [2, 64], strides = [1, 1]} : vector<2x192xf32> to vector<2x64xf32>
    %140 = vector.extract_strided_slice %135 {offsets = [0, 128], sizes = [2, 64], strides = [1, 1]} : vector<2x192xf32> to vector<2x64xf32>
    %141 = arith.mulf %139, %124 : vector<2x64xf32>
    %142 = arith.mulf %138, %137 : vector<2x64xf32>
    %143 = arith.addf %141, %142 : vector<2x64xf32>
    %144 = math.tanh %143 : vector<2x64xf32>
    %145 = arith.mulf %140, %144 : vector<2x64xf32>
    %146 = vector.extract_strided_slice %9 {offsets = [14, 0], sizes = [2, 256], strides = [1, 1]} : vector<20x256xf32> to vector<2x256xf32>
    %cst_21 = arith.constant dense<0.000000e+00> : vector<2x256xf32>
    %147 = tpu.matmul %145, %10, %cst_21 {dimension_numbers = #tpu.dot_dimension_numbers<[1], [0], [0], [1], [0, 0, 1, 1], [], []>} : vector<2x64xf32>, vector<64x256xf32>, vector<2x256xf32> -> vector<2x256xf32>
    %148 = arith.addf %146, %147 : vector<2x256xf32>
    %149 = vector.extract_strided_slice %148 {offsets = [0, 0], sizes = [2, 192], strides = [1, 1]} : vector<2x256xf32> to vector<2x192xf32>
    %150 = arith.negf %149 : vector<2x192xf32>
    %151 = math.exp %150 : vector<2x192xf32>
    %cst_22 = arith.constant 1.000000e+00 : f32
    %152 = vector.broadcast %cst_22 : f32 to vector<2x192xf32>
    %153 = arith.addf %152, %151 : vector<2x192xf32>
    %154 = arith.divf %152, %153 : vector<2x192xf32>
    %155 = vector.extract_strided_slice %148 {offsets = [0, 192], sizes = [2, 64], strides = [1, 1]} : vector<2x256xf32> to vector<2x64xf32>
    %156 = math.tanh %155 : vector<2x64xf32>
    %157 = vector.extract_strided_slice %154 {offsets = [0, 0], sizes = [2, 64], strides = [1, 1]} : vector<2x192xf32> to vector<2x64xf32>
    %158 = vector.extract_strided_slice %154 {offsets = [0, 64], sizes = [2, 64], strides = [1, 1]} : vector<2x192xf32> to vector<2x64xf32>
    %159 = vector.extract_strided_slice %154 {offsets = [0, 128], sizes = [2, 64], strides = [1, 1]} : vector<2x192xf32> to vector<2x64xf32>
    %160 = arith.mulf %158, %143 : vector<2x64xf32>
    %161 = arith.mulf %157, %156 : vector<2x64xf32>
    %162 = arith.addf %160, %161 : vector<2x64xf32>
    %163 = math.tanh %162 : vector<2x64xf32>
    %164 = arith.mulf %159, %163 : vector<2x64xf32>
    %165 = vector.extract_strided_slice %9 {offsets = [16, 0], sizes = [2, 256], strides = [1, 1]} : vector<20x256xf32> to vector<2x256xf32>
    %cst_23 = arith.constant dense<0.000000e+00> : vector<2x256xf32>
    %166 = tpu.matmul %164, %10, %cst_23 {dimension_numbers = #tpu.dot_dimension_numbers<[1], [0], [0], [1], [0, 0, 1, 1], [], []>} : vector<2x64xf32>, vector<64x256xf32>, vector<2x256xf32> -> vector<2x256xf32>
    %167 = arith.addf %165, %166 : vector<2x256xf32>
    %168 = vector.extract_strided_slice %167 {offsets = [0, 0], sizes = [2, 192], strides = [1, 1]} : vector<2x256xf32> to vector<2x192xf32>
    %169 = arith.negf %168 : vector<2x192xf32>
    %170 = math.exp %169 : vector<2x192xf32>
    %cst_24 = arith.constant 1.000000e+00 : f32
    %171 = vector.broadcast %cst_24 : f32 to vector<2x192xf32>
    %172 = arith.addf %171, %170 : vector<2x192xf32>
    %173 = arith.divf %171, %172 : vector<2x192xf32>
    %174 = vector.extract_strided_slice %167 {offsets = [0, 192], sizes = [2, 64], strides = [1, 1]} : vector<2x256xf32> to vector<2x64xf32>
    %175 = math.tanh %174 : vector<2x64xf32>
    %176 = vector.extract_strided_slice %173 {offsets = [0, 0], sizes = [2, 64], strides = [1, 1]} : vector<2x192xf32> to vector<2x64xf32>
    %177 = vector.extract_strided_slice %173 {offsets = [0, 64], sizes = [2, 64], strides = [1, 1]} : vector<2x192xf32> to vector<2x64xf32>
    %178 = vector.extract_strided_slice %173 {offsets = [0, 128], sizes = [2, 64], strides = [1, 1]} : vector<2x192xf32> to vector<2x64xf32>
    %179 = arith.mulf %177, %162 : vector<2x64xf32>
    %180 = arith.mulf %176, %175 : vector<2x64xf32>
    %181 = arith.addf %179, %180 : vector<2x64xf32>
    %182 = math.tanh %181 : vector<2x64xf32>
    %183 = arith.mulf %178, %182 : vector<2x64xf32>
    %184 = vector.extract_strided_slice %9 {offsets = [18, 0], sizes = [2, 256], strides = [1, 1]} : vector<20x256xf32> to vector<2x256xf32>
    %cst_25 = arith.constant dense<0.000000e+00> : vector<2x256xf32>
    %185 = tpu.matmul %183, %10, %cst_25 {dimension_numbers = #tpu.dot_dimension_numbers<[1], [0], [0], [1], [0, 0, 1, 1], [], []>} : vector<2x64xf32>, vector<64x256xf32>, vector<2x256xf32> -> vector<2x256xf32>
    %186 = arith.addf %184, %185 : vector<2x256xf32>
    %187 = vector.extract_strided_slice %186 {offsets = [0, 0], sizes = [2, 192], strides = [1, 1]} : vector<2x256xf32> to vector<2x192xf32>
    %188 = arith.negf %187 : vector<2x192xf32>
    %189 = math.exp %188 : vector<2x192xf32>
    %cst_26 = arith.constant 1.000000e+00 : f32
    %190 = vector.broadcast %cst_26 : f32 to vector<2x192xf32>
    %191 = arith.addf %190, %189 : vector<2x192xf32>
    %192 = arith.divf %190, %191 : vector<2x192xf32>
    %193 = vector.extract_strided_slice %186 {offsets = [0, 192], sizes = [2, 64], strides = [1, 1]} : vector<2x256xf32> to vector<2x64xf32>
    %194 = math.tanh %193 : vector<2x64xf32>
    %195 = vector.extract_strided_slice %192 {offsets = [0, 0], sizes = [2, 64], strides = [1, 1]} : vector<2x192xf32> to vector<2x64xf32>
    %196 = vector.extract_strided_slice %192 {offsets = [0, 64], sizes = [2, 64], strides = [1, 1]} : vector<2x192xf32> to vector<2x64xf32>
    %197 = vector.extract_strided_slice %192 {offsets = [0, 128], sizes = [2, 64], strides = [1, 1]} : vector<2x192xf32> to vector<2x64xf32>
    %198 = arith.mulf %196, %181 : vector<2x64xf32>
    %199 = arith.mulf %195, %194 : vector<2x64xf32>
    %200 = arith.addf %198, %199 : vector<2x64xf32>
    %201 = math.tanh %200 : vector<2x64xf32>
    %202 = arith.mulf %197, %201 : vector<2x64xf32>
    %203 = tpu.concatenate %31, %50, %69, %88, %107, %126, %145, %164, %183, %202 in 0 : vector<2x64xf32>, vector<2x64xf32>, vector<2x64xf32>, vector<2x64xf32>, vector<2x64xf32>, vector<2x64xf32>, vector<2x64xf32>, vector<2x64xf32>, vector<2x64xf32>, vector<2x64xf32> -> vector<20x64xf32>
    %c0_27 = arith.constant 0 : index
    %c0_28 = arith.constant 0 : index
    %204 = vector.load %arg11[%c0_27, %c0_28] : memref<9x64xf32, #tpu.memory_space<vmem>>, vector<9x64xf32>
    %205 = vector.extract_strided_slice %204 {offsets = [0, 0], sizes = [1, 64], strides = [1, 1]} : vector<9x64xf32> to vector<1x64xf32>
    %206 = vector.extract_strided_slice %204 {offsets = [1, 0], sizes = [1, 64], strides = [1, 1]} : vector<9x64xf32> to vector<1x64xf32>
    %207 = vector.extract_strided_slice %204 {offsets = [2, 0], sizes = [1, 64], strides = [1, 1]} : vector<9x64xf32> to vector<1x64xf32>
    %208 = vector.extract_strided_slice %204 {offsets = [3, 0], sizes = [1, 64], strides = [1, 1]} : vector<9x64xf32> to vector<1x64xf32>
    %209 = vector.extract_strided_slice %204 {offsets = [4, 0], sizes = [1, 64], strides = [1, 1]} : vector<9x64xf32> to vector<1x64xf32>
    %210 = vector.extract_strided_slice %204 {offsets = [5, 0], sizes = [1, 64], strides = [1, 1]} : vector<9x64xf32> to vector<1x64xf32>
    %211 = vector.extract_strided_slice %204 {offsets = [6, 0], sizes = [1, 64], strides = [1, 1]} : vector<9x64xf32> to vector<1x64xf32>
    %212 = vector.extract_strided_slice %204 {offsets = [7, 0], sizes = [1, 64], strides = [1, 1]} : vector<9x64xf32> to vector<1x64xf32>
    %213 = vector.extract_strided_slice %204 {offsets = [8, 0], sizes = [1, 1], strides = [1, 1]} : vector<9x64xf32> to vector<1x1xf32>
    %c0_29 = arith.constant 0 : index
    %c0_30 = arith.constant 0 : index
    %214 = vector.load %arg4[%c0_29, %c0_30] : memref<64x64xf32, #tpu.memory_space<vmem>>, vector<64x64xf32>
    %cst_31 = arith.constant dense<0.000000e+00> : vector<20x64xf32>
    %215 = tpu.matmul %203, %214, %cst_31 {dimension_numbers = #tpu.dot_dimension_numbers<[1], [0], [0], [1], [0, 0, 1, 1], [], []>} : vector<20x64xf32>, vector<64x64xf32>, vector<20x64xf32> -> vector<20x64xf32>
    %216 = vector.broadcast %205 : vector<1x64xf32> to vector<20x64xf32>
    %217 = arith.addf %215, %216 : vector<20x64xf32>
    %c0_32 = arith.constant 0 : index
    %c0_33 = arith.constant 0 : index
    %218 = vector.load %arg5[%c0_32, %c0_33] : memref<64x192xf32, #tpu.memory_space<vmem>>, vector<64x192xf32>
    %cst_34 = arith.constant dense<0.000000e+00> : vector<20x192xf32>
    %219 = tpu.matmul %217, %218, %cst_34 {dimension_numbers = #tpu.dot_dimension_numbers<[1], [0], [0], [1], [0, 0, 1, 1], [], []>} : vector<20x64xf32>, vector<64x192xf32>, vector<20x192xf32> -> vector<20x192xf32>
    %c0_35 = arith.constant 0 : index
    %c0_36 = arith.constant 0 : index
    %220 = vector.load %arg6[%c0_35, %c0_36] : memref<1x192xf32, #tpu.memory_space<vmem>>, vector<1x192xf32>
    %221 = vector.broadcast %220 : vector<1x192xf32> to vector<20x192xf32>
    %222 = arith.addf %219, %221 : vector<20x192xf32>
    %223 = vector.extract_strided_slice %222 {offsets = [0, 0], sizes = [20, 64], strides = [1, 1]} : vector<20x192xf32> to vector<20x64xf32>
    %224 = vector.extract_strided_slice %222 {offsets = [0, 64], sizes = [20, 64], strides = [1, 1]} : vector<20x192xf32> to vector<20x64xf32>
    %225 = vector.extract_strided_slice %222 {offsets = [0, 128], sizes = [20, 64], strides = [1, 1]} : vector<20x192xf32> to vector<20x64xf32>
    %226 = tpu.iota {dimensions = array<i32: 0>} : vector<20x20xi32>
    %227 = tpu.iota {dimensions = array<i32: 1>} : vector<20x20xi32>
    %c1_i32 = arith.constant 1 : i32
    %228 = vector.broadcast %c1_i32 : i32 to vector<20x20xi32>
    %229 = arith.andi %226, %228 : vector<20x20xi32>
    %c1_i32_37 = arith.constant 1 : i32
    %230 = vector.broadcast %c1_i32_37 : i32 to vector<20x20xi32>
    %231 = arith.andi %227, %230 : vector<20x20xi32>
    %232 = arith.cmpi eq, %229, %231 : vector<20x20xi32>
    %c0_38 = arith.constant 0 : index
    %c0_39 = arith.constant 0 : index
    %233 = vector.load %arg7[%c0_38, %c0_39] : memref<64x64xf32, #tpu.memory_space<vmem>>, vector<64x64xf32>
    %234 = vector.extract_strided_slice %223 {offsets = [0, 0], sizes = [20, 16], strides = [1, 1]} : vector<20x64xf32> to vector<20x16xf32>
    %235 = vector.extract_strided_slice %224 {offsets = [0, 0], sizes = [20, 16], strides = [1, 1]} : vector<20x64xf32> to vector<20x16xf32>
    "tpu.trace_start"() <{level = 10 : i32, message = "qd,kd->qk"}> : () -> ()
    %cst_40 = arith.constant dense<0.000000e+00> : vector<20x20xf32>
    %236 = tpu.matmul %234, %235, %cst_40 {dimension_numbers = #tpu.dot_dimension_numbers<[1], [1], [0], [0], [0, 0, 1, 0], [], []>} : vector<20x16xf32>, vector<20x16xf32>, vector<20x20xf32> -> vector<20x20xf32>
    "tpu.trace_stop"() : () -> ()
    %cst_41 = arith.constant 2.500000e-01 : f32
    %237 = vector.broadcast %cst_41 : f32 to vector<20x20xf32>
    %238 = arith.mulf %236, %237 : vector<20x20xf32>
    %cst_42 = arith.constant -1.000000e+30 : f32
    %239 = vector.broadcast %cst_42 : f32 to vector<20x20xf32>
    %240 = arith.select %232, %238, %239 : vector<20x20xi1>, vector<20x20xf32>
    %cst_43 = arith.constant dense<0xFF800000> : vector<20xf32>
    %241 = vector.multi_reduction <maximumf>, %240, %cst_43 [1] : vector<20x20xf32> to vector<20xf32>
    %242 = vector.shape_cast %241 : vector<20xf32> to vector<20x1xf32>
    %243 = vector.broadcast %242 : vector<20x1xf32> to vector<20x20xf32>
    %244 = arith.subf %240, %243 : vector<20x20xf32>
    %245 = math.exp %244 : vector<20x20xf32>
    %cst_44 = arith.constant dense<0.000000e+00> : vector<20xf32>
    %246 = vector.multi_reduction <add>, %245, %cst_44 [1] : vector<20x20xf32> to vector<20xf32>
    %247 = vector.shape_cast %246 : vector<20xf32> to vector<20x1xf32>
    %248 = tpu.reciprocal %247 {approx = true} : vector<20x1xf32> -> vector<20x1xf32>
    %249 = arith.mulf %247, %248 : vector<20x1xf32>
    %cst_45 = arith.constant 2.000000e+00 : f32
    %250 = vector.broadcast %cst_45 : f32 to vector<20x1xf32>
    %251 = arith.subf %250, %249 : vector<20x1xf32>
    %252 = arith.mulf %248, %251 : vector<20x1xf32>
    %253 = vector.broadcast %252 : vector<20x1xf32> to vector<20x20xf32>
    %254 = arith.mulf %245, %253 : vector<20x20xf32>
    %255 = vector.extract_strided_slice %225 {offsets = [0, 0], sizes = [20, 16], strides = [1, 1]} : vector<20x64xf32> to vector<20x16xf32>
    %cst_46 = arith.constant dense<0.000000e+00> : vector<20x16xf32>
    %256 = tpu.matmul %254, %255, %cst_46 {dimension_numbers = #tpu.dot_dimension_numbers<[1], [0], [0], [1], [0, 0, 1, 1], [], []>} : vector<20x20xf32>, vector<20x16xf32>, vector<20x16xf32> -> vector<20x16xf32>
    %257 = vector.extract_strided_slice %233 {offsets = [0, 0], sizes = [16, 64], strides = [1, 1]} : vector<64x64xf32> to vector<16x64xf32>
    %cst_47 = arith.constant dense<0.000000e+00> : vector<20x64xf32>
    %258 = tpu.matmul %256, %257, %cst_47 {dimension_numbers = #tpu.dot_dimension_numbers<[1], [0], [0], [1], [0, 0, 1, 1], [], []>} : vector<20x16xf32>, vector<16x64xf32>, vector<20x64xf32> -> vector<20x64xf32>
    %259 = vector.extract_strided_slice %223 {offsets = [0, 16], sizes = [20, 16], strides = [1, 1]} : vector<20x64xf32> to vector<20x16xf32>
    %260 = vector.extract_strided_slice %224 {offsets = [0, 16], sizes = [20, 16], strides = [1, 1]} : vector<20x64xf32> to vector<20x16xf32>
    "tpu.trace_start"() <{level = 10 : i32, message = "qd,kd->qk"}> : () -> ()
    %cst_48 = arith.constant dense<0.000000e+00> : vector<20x20xf32>
    %261 = tpu.matmul %259, %260, %cst_48 {dimension_numbers = #tpu.dot_dimension_numbers<[1], [1], [0], [0], [0, 0, 1, 0], [], []>} : vector<20x16xf32>, vector<20x16xf32>, vector<20x20xf32> -> vector<20x20xf32>
    "tpu.trace_stop"() : () -> ()
    %cst_49 = arith.constant 2.500000e-01 : f32
    %262 = vector.broadcast %cst_49 : f32 to vector<20x20xf32>
    %263 = arith.mulf %261, %262 : vector<20x20xf32>
    %cst_50 = arith.constant -1.000000e+30 : f32
    %264 = vector.broadcast %cst_50 : f32 to vector<20x20xf32>
    %265 = arith.select %232, %263, %264 : vector<20x20xi1>, vector<20x20xf32>
    %cst_51 = arith.constant dense<0xFF800000> : vector<20xf32>
    %266 = vector.multi_reduction <maximumf>, %265, %cst_51 [1] : vector<20x20xf32> to vector<20xf32>
    %267 = vector.shape_cast %266 : vector<20xf32> to vector<20x1xf32>
    %268 = vector.broadcast %267 : vector<20x1xf32> to vector<20x20xf32>
    %269 = arith.subf %265, %268 : vector<20x20xf32>
    %270 = math.exp %269 : vector<20x20xf32>
    %cst_52 = arith.constant dense<0.000000e+00> : vector<20xf32>
    %271 = vector.multi_reduction <add>, %270, %cst_52 [1] : vector<20x20xf32> to vector<20xf32>
    %272 = vector.shape_cast %271 : vector<20xf32> to vector<20x1xf32>
    %273 = tpu.reciprocal %272 {approx = true} : vector<20x1xf32> -> vector<20x1xf32>
    %274 = arith.mulf %272, %273 : vector<20x1xf32>
    %cst_53 = arith.constant 2.000000e+00 : f32
    %275 = vector.broadcast %cst_53 : f32 to vector<20x1xf32>
    %276 = arith.subf %275, %274 : vector<20x1xf32>
    %277 = arith.mulf %273, %276 : vector<20x1xf32>
    %278 = vector.broadcast %277 : vector<20x1xf32> to vector<20x20xf32>
    %279 = arith.mulf %270, %278 : vector<20x20xf32>
    %280 = vector.extract_strided_slice %225 {offsets = [0, 16], sizes = [20, 16], strides = [1, 1]} : vector<20x64xf32> to vector<20x16xf32>
    %cst_54 = arith.constant dense<0.000000e+00> : vector<20x16xf32>
    %281 = tpu.matmul %279, %280, %cst_54 {dimension_numbers = #tpu.dot_dimension_numbers<[1], [0], [0], [1], [0, 0, 1, 1], [], []>} : vector<20x20xf32>, vector<20x16xf32>, vector<20x16xf32> -> vector<20x16xf32>
    %282 = vector.extract_strided_slice %233 {offsets = [16, 0], sizes = [16, 64], strides = [1, 1]} : vector<64x64xf32> to vector<16x64xf32>
    %cst_55 = arith.constant dense<0.000000e+00> : vector<20x64xf32>
    %283 = tpu.matmul %281, %282, %cst_55 {dimension_numbers = #tpu.dot_dimension_numbers<[1], [0], [0], [1], [0, 0, 1, 1], [], []>} : vector<20x16xf32>, vector<16x64xf32>, vector<20x64xf32> -> vector<20x64xf32>
    %284 = arith.addf %258, %283 : vector<20x64xf32>
    %285 = vector.extract_strided_slice %223 {offsets = [0, 32], sizes = [20, 16], strides = [1, 1]} : vector<20x64xf32> to vector<20x16xf32>
    %286 = vector.extract_strided_slice %224 {offsets = [0, 32], sizes = [20, 16], strides = [1, 1]} : vector<20x64xf32> to vector<20x16xf32>
    "tpu.trace_start"() <{level = 10 : i32, message = "qd,kd->qk"}> : () -> ()
    %cst_56 = arith.constant dense<0.000000e+00> : vector<20x20xf32>
    %287 = tpu.matmul %285, %286, %cst_56 {dimension_numbers = #tpu.dot_dimension_numbers<[1], [1], [0], [0], [0, 0, 1, 0], [], []>} : vector<20x16xf32>, vector<20x16xf32>, vector<20x20xf32> -> vector<20x20xf32>
    "tpu.trace_stop"() : () -> ()
    %cst_57 = arith.constant 2.500000e-01 : f32
    %288 = vector.broadcast %cst_57 : f32 to vector<20x20xf32>
    %289 = arith.mulf %287, %288 : vector<20x20xf32>
    %cst_58 = arith.constant -1.000000e+30 : f32
    %290 = vector.broadcast %cst_58 : f32 to vector<20x20xf32>
    %291 = arith.select %232, %289, %290 : vector<20x20xi1>, vector<20x20xf32>
    %cst_59 = arith.constant dense<0xFF800000> : vector<20xf32>
    %292 = vector.multi_reduction <maximumf>, %291, %cst_59 [1] : vector<20x20xf32> to vector<20xf32>
    %293 = vector.shape_cast %292 : vector<20xf32> to vector<20x1xf32>
    %294 = vector.broadcast %293 : vector<20x1xf32> to vector<20x20xf32>
    %295 = arith.subf %291, %294 : vector<20x20xf32>
    %296 = math.exp %295 : vector<20x20xf32>
    %cst_60 = arith.constant dense<0.000000e+00> : vector<20xf32>
    %297 = vector.multi_reduction <add>, %296, %cst_60 [1] : vector<20x20xf32> to vector<20xf32>
    %298 = vector.shape_cast %297 : vector<20xf32> to vector<20x1xf32>
    %299 = tpu.reciprocal %298 {approx = true} : vector<20x1xf32> -> vector<20x1xf32>
    %300 = arith.mulf %298, %299 : vector<20x1xf32>
    %cst_61 = arith.constant 2.000000e+00 : f32
    %301 = vector.broadcast %cst_61 : f32 to vector<20x1xf32>
    %302 = arith.subf %301, %300 : vector<20x1xf32>
    %303 = arith.mulf %299, %302 : vector<20x1xf32>
    %304 = vector.broadcast %303 : vector<20x1xf32> to vector<20x20xf32>
    %305 = arith.mulf %296, %304 : vector<20x20xf32>
    %306 = vector.extract_strided_slice %225 {offsets = [0, 32], sizes = [20, 16], strides = [1, 1]} : vector<20x64xf32> to vector<20x16xf32>
    %cst_62 = arith.constant dense<0.000000e+00> : vector<20x16xf32>
    %307 = tpu.matmul %305, %306, %cst_62 {dimension_numbers = #tpu.dot_dimension_numbers<[1], [0], [0], [1], [0, 0, 1, 1], [], []>} : vector<20x20xf32>, vector<20x16xf32>, vector<20x16xf32> -> vector<20x16xf32>
    %308 = vector.extract_strided_slice %233 {offsets = [32, 0], sizes = [16, 64], strides = [1, 1]} : vector<64x64xf32> to vector<16x64xf32>
    %cst_63 = arith.constant dense<0.000000e+00> : vector<20x64xf32>
    %309 = tpu.matmul %307, %308, %cst_63 {dimension_numbers = #tpu.dot_dimension_numbers<[1], [0], [0], [1], [0, 0, 1, 1], [], []>} : vector<20x16xf32>, vector<16x64xf32>, vector<20x64xf32> -> vector<20x64xf32>
    %310 = arith.addf %284, %309 : vector<20x64xf32>
    %311 = vector.extract_strided_slice %223 {offsets = [0, 48], sizes = [20, 16], strides = [1, 1]} : vector<20x64xf32> to vector<20x16xf32>
    %312 = vector.extract_strided_slice %224 {offsets = [0, 48], sizes = [20, 16], strides = [1, 1]} : vector<20x64xf32> to vector<20x16xf32>
    "tpu.trace_start"() <{level = 10 : i32, message = "qd,kd->qk"}> : () -> ()
    %cst_64 = arith.constant dense<0.000000e+00> : vector<20x20xf32>
    %313 = tpu.matmul %311, %312, %cst_64 {dimension_numbers = #tpu.dot_dimension_numbers<[1], [1], [0], [0], [0, 0, 1, 0], [], []>} : vector<20x16xf32>, vector<20x16xf32>, vector<20x20xf32> -> vector<20x20xf32>
    "tpu.trace_stop"() : () -> ()
    %cst_65 = arith.constant 2.500000e-01 : f32
    %314 = vector.broadcast %cst_65 : f32 to vector<20x20xf32>
    %315 = arith.mulf %313, %314 : vector<20x20xf32>
    %cst_66 = arith.constant -1.000000e+30 : f32
    %316 = vector.broadcast %cst_66 : f32 to vector<20x20xf32>
    %317 = arith.select %232, %315, %316 : vector<20x20xi1>, vector<20x20xf32>
    %cst_67 = arith.constant dense<0xFF800000> : vector<20xf32>
    %318 = vector.multi_reduction <maximumf>, %317, %cst_67 [1] : vector<20x20xf32> to vector<20xf32>
    %319 = vector.shape_cast %318 : vector<20xf32> to vector<20x1xf32>
    %320 = vector.broadcast %319 : vector<20x1xf32> to vector<20x20xf32>
    %321 = arith.subf %317, %320 : vector<20x20xf32>
    %322 = math.exp %321 : vector<20x20xf32>
    %cst_68 = arith.constant dense<0.000000e+00> : vector<20xf32>
    %323 = vector.multi_reduction <add>, %322, %cst_68 [1] : vector<20x20xf32> to vector<20xf32>
    %324 = vector.shape_cast %323 : vector<20xf32> to vector<20x1xf32>
    %325 = tpu.reciprocal %324 {approx = true} : vector<20x1xf32> -> vector<20x1xf32>
    %326 = arith.mulf %324, %325 : vector<20x1xf32>
    %cst_69 = arith.constant 2.000000e+00 : f32
    %327 = vector.broadcast %cst_69 : f32 to vector<20x1xf32>
    %328 = arith.subf %327, %326 : vector<20x1xf32>
    %329 = arith.mulf %325, %328 : vector<20x1xf32>
    %330 = vector.broadcast %329 : vector<20x1xf32> to vector<20x20xf32>
    %331 = arith.mulf %322, %330 : vector<20x20xf32>
    %332 = vector.extract_strided_slice %225 {offsets = [0, 48], sizes = [20, 16], strides = [1, 1]} : vector<20x64xf32> to vector<20x16xf32>
    %cst_70 = arith.constant dense<0.000000e+00> : vector<20x16xf32>
    %333 = tpu.matmul %331, %332, %cst_70 {dimension_numbers = #tpu.dot_dimension_numbers<[1], [0], [0], [1], [0, 0, 1, 1], [], []>} : vector<20x20xf32>, vector<20x16xf32>, vector<20x16xf32> -> vector<20x16xf32>
    %334 = vector.extract_strided_slice %233 {offsets = [48, 0], sizes = [16, 64], strides = [1, 1]} : vector<64x64xf32> to vector<16x64xf32>
    %cst_71 = arith.constant dense<0.000000e+00> : vector<20x64xf32>
    %335 = tpu.matmul %333, %334, %cst_71 {dimension_numbers = #tpu.dot_dimension_numbers<[1], [0], [0], [1], [0, 0, 1, 1], [], []>} : vector<20x16xf32>, vector<16x64xf32>, vector<20x64xf32> -> vector<20x64xf32>
    %336 = arith.addf %310, %335 : vector<20x64xf32>
    %337 = vector.broadcast %206 : vector<1x64xf32> to vector<20x64xf32>
    %338 = arith.addf %336, %337 : vector<20x64xf32>
    %339 = arith.addf %217, %338 : vector<20x64xf32>
    %cst_72 = arith.constant dense<0.000000e+00> : vector<20xf32>
    %340 = vector.multi_reduction <add>, %339, %cst_72 [1] : vector<20x64xf32> to vector<20xf32>
    %341 = vector.shape_cast %340 : vector<20xf32> to vector<20x1xf32>
    %cst_73 = arith.constant 6.400000e+01 : f32
    %342 = vector.broadcast %cst_73 : f32 to vector<20x1xf32>
    %343 = arith.divf %341, %342 : vector<20x1xf32>
    %344 = vector.broadcast %343 : vector<20x1xf32> to vector<20x64xf32>
    %345 = arith.subf %339, %344 : vector<20x64xf32>
    %346 = arith.mulf %345, %345 : vector<20x64xf32>
    %cst_74 = arith.constant dense<0.000000e+00> : vector<20xf32>
    %347 = vector.multi_reduction <add>, %346, %cst_74 [1] : vector<20x64xf32> to vector<20xf32>
    %348 = vector.shape_cast %347 : vector<20xf32> to vector<20x1xf32>
    %cst_75 = arith.constant 6.400000e+01 : f32
    %349 = vector.broadcast %cst_75 : f32 to vector<20x1xf32>
    %350 = arith.divf %348, %349 : vector<20x1xf32>
    %351 = vector.broadcast %343 : vector<20x1xf32> to vector<20x64xf32>
    %352 = arith.subf %339, %351 : vector<20x64xf32>
    %cst_76 = arith.constant 9.99999974E-6 : f32
    %353 = vector.broadcast %cst_76 : f32 to vector<20x1xf32>
    %354 = arith.addf %350, %353 : vector<20x1xf32>
    %355 = math.rsqrt %354 : vector<20x1xf32>
    %356 = vector.broadcast %355 : vector<20x1xf32> to vector<20x64xf32>
    %357 = arith.mulf %352, %356 : vector<20x64xf32>
    %358 = vector.broadcast %207 : vector<1x64xf32> to vector<20x64xf32>
    %359 = arith.mulf %357, %358 : vector<20x64xf32>
    %360 = vector.broadcast %208 : vector<1x64xf32> to vector<20x64xf32>
    %361 = arith.addf %359, %360 : vector<20x64xf32>
    %c0_77 = arith.constant 0 : index
    %c0_78 = arith.constant 0 : index
    %362 = vector.load %arg8[%c0_77, %c0_78] : memref<64x256xf32, #tpu.memory_space<vmem>>, vector<64x256xf32>
    %cst_79 = arith.constant dense<0.000000e+00> : vector<20x256xf32>
    %363 = tpu.matmul %361, %362, %cst_79 {dimension_numbers = #tpu.dot_dimension_numbers<[1], [0], [0], [1], [0, 0, 1, 1], [], []>} : vector<20x64xf32>, vector<64x256xf32>, vector<20x256xf32> -> vector<20x256xf32>
    %c0_80 = arith.constant 0 : index
    %c0_81 = arith.constant 0 : index
    %364 = vector.load %arg9[%c0_80, %c0_81] : memref<1x256xf32, #tpu.memory_space<vmem>>, vector<1x256xf32>
    %365 = vector.broadcast %364 : vector<1x256xf32> to vector<20x256xf32>
    %366 = arith.addf %363, %365 : vector<20x256xf32>
    %cst_82 = arith.constant 0.000000e+00 : f32
    %367 = vector.broadcast %cst_82 : f32 to vector<20x256xf32>
    %368 = arith.maximumf %366, %367 : vector<20x256xf32>
    %c0_83 = arith.constant 0 : index
    %c0_84 = arith.constant 0 : index
    %369 = vector.load %arg10[%c0_83, %c0_84] : memref<256x64xf32, #tpu.memory_space<vmem>>, vector<256x64xf32>
    %cst_85 = arith.constant dense<0.000000e+00> : vector<20x64xf32>
    %370 = tpu.matmul %368, %369, %cst_85 {dimension_numbers = #tpu.dot_dimension_numbers<[1], [0], [0], [1], [0, 0, 1, 1], [], []>} : vector<20x256xf32>, vector<256x64xf32>, vector<20x64xf32> -> vector<20x64xf32>
    %371 = vector.broadcast %209 : vector<1x64xf32> to vector<20x64xf32>
    %372 = arith.addf %370, %371 : vector<20x64xf32>
    %373 = arith.addf %361, %372 : vector<20x64xf32>
    %cst_86 = arith.constant dense<0.000000e+00> : vector<20xf32>
    %374 = vector.multi_reduction <add>, %373, %cst_86 [1] : vector<20x64xf32> to vector<20xf32>
    %375 = vector.shape_cast %374 : vector<20xf32> to vector<20x1xf32>
    %cst_87 = arith.constant 6.400000e+01 : f32
    %376 = vector.broadcast %cst_87 : f32 to vector<20x1xf32>
    %377 = arith.divf %375, %376 : vector<20x1xf32>
    %378 = vector.broadcast %377 : vector<20x1xf32> to vector<20x64xf32>
    %379 = arith.subf %373, %378 : vector<20x64xf32>
    %380 = arith.mulf %379, %379 : vector<20x64xf32>
    %cst_88 = arith.constant dense<0.000000e+00> : vector<20xf32>
    %381 = vector.multi_reduction <add>, %380, %cst_88 [1] : vector<20x64xf32> to vector<20xf32>
    %382 = vector.shape_cast %381 : vector<20xf32> to vector<20x1xf32>
    %cst_89 = arith.constant 6.400000e+01 : f32
    %383 = vector.broadcast %cst_89 : f32 to vector<20x1xf32>
    %384 = arith.divf %382, %383 : vector<20x1xf32>
    %385 = vector.broadcast %377 : vector<20x1xf32> to vector<20x64xf32>
    %386 = arith.subf %373, %385 : vector<20x64xf32>
    %cst_90 = arith.constant 9.99999974E-6 : f32
    %387 = vector.broadcast %cst_90 : f32 to vector<20x1xf32>
    %388 = arith.addf %384, %387 : vector<20x1xf32>
    %389 = math.rsqrt %388 : vector<20x1xf32>
    %390 = vector.broadcast %389 : vector<20x1xf32> to vector<20x64xf32>
    %391 = arith.mulf %386, %390 : vector<20x64xf32>
    %392 = vector.broadcast %210 : vector<1x64xf32> to vector<20x64xf32>
    %393 = arith.mulf %391, %392 : vector<20x64xf32>
    %394 = vector.broadcast %211 : vector<1x64xf32> to vector<20x64xf32>
    %395 = arith.addf %393, %394 : vector<20x64xf32>
    %396 = vector.extract_strided_slice %395 {offsets = [18, 0], sizes = [2, 64], strides = [1, 1]} : vector<20x64xf32> to vector<2x64xf32>
    %397 = vector.broadcast %212 : vector<1x64xf32> to vector<2x64xf32>
    %398 = arith.mulf %396, %397 : vector<2x64xf32>
    %cst_91 = arith.constant dense<0.000000e+00> : vector<2xf32>
    %399 = vector.multi_reduction <add>, %398, %cst_91 [1] : vector<2x64xf32> to vector<2xf32>
    %400 = vector.shape_cast %399 : vector<2xf32> to vector<2x1xf32>
    %401 = vector.broadcast %213 : vector<1x1xf32> to vector<2x1xf32>
    %402 = arith.addf %400, %401 : vector<2x1xf32>
    %c0_92 = arith.constant 0 : index
    %c0_93 = arith.constant 0 : index
    %c0_94 = arith.constant 0 : index
    %403 = vector.load %arg12[%c0_92, %c0_93, %c0_94] : memref<1x2x1xf32, #tpu.memory_space<vmem>>, vector<1x2x1xf32>
    %404 = vector.shape_cast %403 : vector<1x2x1xf32> to vector<2x1xf32>
    %405 = vector.shape_cast %402 : vector<2x1xf32> to vector<1x2x1xf32>
    tpu.vector_store %arg12[%c0_92, %c0_93, %c0_94], %405 {strides = array<i32>} : memref<1x2x1xf32, #tpu.memory_space<vmem>>, vector<1x2x1xf32>,
    return
  }
  func.func @transform_0(%arg0: i32) -> (i32, i32, i32) {
    %c0_i32 = arith.constant 0 : i32
    %c0_i32_0 = arith.constant 0 : i32
    %c0_i32_1 = arith.constant 0 : i32
    return %arg0, %c0_i32, %c0_i32_0 : i32, i32, i32
  }
  func.func @transform_1(%arg0: i32) -> (i32, i32) {
    %c0_i32 = arith.constant 0 : i32
    %c0_i32_0 = arith.constant 0 : i32
    %c0_i32_1 = arith.constant 0 : i32
    return %c0_i32, %c0_i32_0 : i32, i32
  }
  func.func @transform_2(%arg0: i32) -> (i32, i32) {
    %c0_i32 = arith.constant 0 : i32
    %c0_i32_0 = arith.constant 0 : i32
    %c0_i32_1 = arith.constant 0 : i32
    return %c0_i32, %c0_i32_0 : i32, i32
  }
  func.func @transform_3(%arg0: i32) -> (i32, i32) {
    %c0_i32 = arith.constant 0 : i32
    %c0_i32_0 = arith.constant 0 : i32
    %c0_i32_1 = arith.constant 0 : i32
    return %c0_i32, %c0_i32_0 : i32, i32
  }
  func.func @transform_4(%arg0: i32) -> (i32, i32) {
    %c0_i32 = arith.constant 0 : i32
    %c0_i32_0 = arith.constant 0 : i32
    %c0_i32_1 = arith.constant 0 : i32
    return %c0_i32, %c0_i32_0 : i32, i32
  }
  func.func @transform_5(%arg0: i32) -> (i32, i32) {
    %c0_i32 = arith.constant 0 : i32
    %c0_i32_0 = arith.constant 0 : i32
    %c0_i32_1 = arith.constant 0 : i32
    return %c0_i32, %c0_i32_0 : i32, i32
  }
  func.func @transform_6(%arg0: i32) -> (i32, i32) {
    %c0_i32 = arith.constant 0 : i32
    %c0_i32_0 = arith.constant 0 : i32
    %c0_i32_1 = arith.constant 0 : i32
    return %c0_i32, %c0_i32_0 : i32, i32
  }
  func.func @transform_7(%arg0: i32) -> (i32, i32) {
    %c0_i32 = arith.constant 0 : i32
    %c0_i32_0 = arith.constant 0 : i32
    %c0_i32_1 = arith.constant 0 : i32
    return %c0_i32, %c0_i32_0 : i32, i32
  }
  func.func @transform_8(%arg0: i32) -> (i32, i32) {
    %c0_i32 = arith.constant 0 : i32
    %c0_i32_0 = arith.constant 0 : i32
    %c0_i32_1 = arith.constant 0 : i32
    return %c0_i32, %c0_i32_0 : i32, i32
  }
  func.func @transform_9(%arg0: i32) -> (i32, i32) {
    %c0_i32 = arith.constant 0 : i32
    %c0_i32_0 = arith.constant 0 : i32
    %c0_i32_1 = arith.constant 0 : i32
    return %c0_i32, %c0_i32_0 : i32, i32
  }
  func.func @transform_10(%arg0: i32) -> (i32, i32) {
    %c0_i32 = arith.constant 0 : i32
    %c0_i32_0 = arith.constant 0 : i32
    %c0_i32_1 = arith.constant 0 : i32
    return %c0_i32, %c0_i32_0 : i32, i32
  }
  func.func @transform_11(%arg0: i32) -> (i32, i32, i32) {
    %c0_i32 = arith.constant 0 : i32
    %c0_i32_0 = arith.constant 0 : i32
    %c0_i32_1 = arith.constant 0 : i32
    return %arg0, %c0_i32, %c0_i32_0 : i32, i32, i32
  }
}

</mosaic_0001>

<bundles_post_ra>
// kernel: tpu_custom_call.1
= control target key start
LH: loop header
LB: loop body
LE: loop exit
PB: predicated region body
PF: predicated region fallthrough
CT: control target
= control target key end

     0   :  { %16 = vsyncpa [#allocation3], 0  ;;  %s5242_s0 = inlined_call_operand.vmem [shape: f32[1,20,1], index: 0, kind: input, shape index: {}]   ;;  %s5243_s1 = inlined_call_operand.vmem [shape: f32[2,256], index: 1, kind: input, shape index: {}]   ;;  %s5244_s2 = inlined_call_operand.vmem [shape: f32[64,256], index: 2, kind: input, shape index: {}]   ;;  %s5245_s3 = inlined_call_operand.hbm [shape: f32[64,64], index: 3, kind: input, shape index: {}]   ;;  %s5246_s4 = inlined_call_operand.vmem [shape: f32[64,192], index: 4, kind: input, shape index: {}]   ;;  %s5247_s5 = inlined_call_operand.vmem [shape: f32[1,192], index: 5, kind: input, shape index: {}]   ;;  %s5248_s6 = inlined_call_operand.hbm [shape: f32[64,64], index: 6, kind: input, shape index: {}]   ;;  %s5249_s7 = inlined_call_operand.vmem [shape: f32[64,256], index: 7, kind: input, shape index: {}]   ;;  %s5250_s8 = inlined_call_operand.vmem [shape: f32[1,256], index: 8, kind: input, shape index: {}]   ;;  %s5251_s9 = inlined_call_operand.vmem [shape: f32[256,64], index: 9, kind: input, shape index: {}]   ;;  %s5252_s10 = inlined_call_operand.vmem [shape: f32[9,64], index: 10, kind: input, shape index: {}]   ;;  %s5253_s11 = inlined_call_operand.vmem [shape: f32[1,2,1], index: 11, kind: output, shape index: {}]  }
   0x1   :  { %17 = vsyncpa [#allocation5], 0  ;;  %s4217_s17 = smov [#allocation2]   ;;  %s4169_s21 = scalar_lea.hbm %s5245_s3, 1024 }
   0x2   :  { %s29_s18 = sshll.u32 %s4217_s17, 4  ;;  %p4170_p0 = scmp.ne.s32.totalorder %s5245_s3, %s4169_s21  ;;  %s30_s18 = int_to_ptr.vmem [resolvable:$true] %s29_s18 }
   0x3   :  { %p4173_p1 = scmp.lt.u32.totalorder %s4169_s21, %s5245_s3 }
   0x5   :  { %p4175_p2 = pnand %p4173_p1, %p4170_p0 }
   0x7   :  { %4178 = shalt.err (!%p4175_p2)
}
   0x8   :  { %s4179_s26 = scalar_lea.vmem %s30_s18, 1024  ;;  %p4184_p4 = scmp.lt.s32.totalorder %s30_s18, %s30_s18 }
   0x9   :  { %p4180_p3 = scmp.ne.s32.totalorder %s30_s18, %s4179_s26  ;;  %p4185_p5 = scmp.lt.s32.totalorder %s4179_s26, %s4179_s26 }
   0xb   :  { %p4186_p6 = por %p4185_p5, %p4184_p4 }
   0xd   :  { %p4187_p7 = pnand %p4186_p6, %p4180_p3 }
   0xf   :  { %4190 = shalt.err (!%p4187_p7)
}
  0x10   :  { %s4218_s27 = smov 128   ;;  %s4219_s28 = smov 8  }
  0x11   :  { %35 = dma.hbm_to_vmem [thread:$0]  %s5245_s3, 1024, %s30_s18, [#allocation3], %s4218_s27, %s4218_s27, %s4219_s28  }
  0x12   :  { %s4220_s12 = smov [#allocation4]   ;;  %s4191_s16 = scalar_lea.hbm %s5248_s6, 1024 }
  0x13   :  { %s45_s13 = sshll.u32 %s4220_s12, 4  ;;  %p4192_p8 = scmp.ne.s32.totalorder %s5248_s6, %s4191_s16  ;;  %s46_s13 = int_to_ptr.vmem [resolvable:$true] %s45_s13 }
  0x14   :  { %p4195_p9 = scmp.lt.u32.totalorder %s4191_s16, %s5248_s6 }
  0x16   :  { %p4197_p10 = pnand %p4195_p9, %p4192_p8 }
  0x18   :  { %4200 = shalt.err (!%p4197_p10)
}
  0x19   :  { %s4201_s22 = scalar_lea.vmem %s46_s13, 1024  ;;  %p4206_p12 = scmp.lt.s32.totalorder %s46_s13, %s46_s13 }
  0x1a   :  { %p4202_p11 = scmp.ne.s32.totalorder %s46_s13, %s4201_s22  ;;  %p4207_p13 = scmp.lt.s32.totalorder %s4201_s22, %s4201_s22 }
  0x1c   :  { %p4208_p0 = por %p4207_p13, %p4206_p12 }
  0x1e   :  { %p4209_p1 = pnand %p4208_p0, %p4202_p11 }
  0x20   :  { %4212 = shalt.err (!%p4209_p1)
}
  0x21   :  { %51 = dma.hbm_to_vmem [thread:$0]  %s5248_s6, 1024, %s46_s13, [#allocation5], %s4218_s27, %s4218_s27, %s4219_s28  }
  0x22   :  { %4213 = dma.done.wait [#allocation3], 1024  }
  0x23   :  { %4214 = vsyncadd [#allocation3], 4294966272 }
  0x24   :  { %4215 = dma.done.wait [#allocation5], 1024  }
  0x25   :  { %4216 = vsyncadd [#allocation5], 4294966272  ;;  %v4221_v0 = vmov 0.0   ;;  %v4222_v1 = vmov 0   ;;  %v135_v2 = vld [vmem:[%s5244_s2 + $0x8] sm:$0xff]  ;;  %v137_v3 = vld [vmem:[%s5244_s2 + $0x18] sm:$0xff]  ;;  %v86_v27 = vlaneseq }
  0x26   :  { %218 = vmatprep.mubr.f32.mxu0 %v4221_v0  ;;  %3955 = vset.pattern.permute.xlu0 %v4222_v1  ;;  %v134_v4 = vld [vmem:[%s5244_s2] sm:$0xff]  ;;  %v4327_v5 = vpack.c.bf16 %v137_v3, %v135_v2  ;;  %v136_v6 = vld [vmem:[%s5244_s2 + $0x10] sm:$0xff]  ;;  %v139_v7 = vld [vmem:[%s5244_s2 + $0x28] sm:$0xff]  ;;  %vm150_vm0 = vcmask 523264   ;;  %vm1286_vm1 = vcmask 1041408   ;;  %vm1288_vm2 = vcmask 1043456  }
  0x27   :  { %324 = vmatprep.mubr.f32.mxu1 %v4221_v0  ;;  %3956 = vset.pattern.permute.xlu1 %v4222_v1  ;;  %v141_v8 = vld [vmem:[%s5244_s2 + $0x38] sm:$0xff]  ;;  %v4338_v9 = vpack.c.bf16 %v136_v6, %v134_v4  ;;  %v138_v11 = vld [vmem:[%s5244_s2 + $0x20] sm:$0xff]  ;;  %v140_v12 = vld [vmem:[%s5244_s2 + $0x30] sm:$0xff]  ;;  %v4414_v28 = vshrl.u32 %v86_v27, 7  ;;  %vm1290_vm3 = vcmask 1045504   ;;  %vm4225_vm4 = vmmov 0  }
  0x28   :  { %v4340_v10 = vpack.c.bf16 %v141_v8, %v139_v7  ;;  %v143_v13 = vld [vmem:[%s5244_s2 + $0x48] sm:$0xff]  ;;  %3661 = vmatprep.subr.bf16.mxu0 %v4327_v5  ;;  %v145_v14 = vld [vmem:[%s5244_s2 + $0x58] sm:$0xff]  ;;  %3677 = vmatprep.subr.bf16.mxu1 %v4327_v5  ;;  %v4357_v15 = vpack.c.bf16 %v140_v12, %v138_v11  ;;  %v142_v17 = vld [vmem:[%s5244_s2 + $0x40] sm:$0xff]  ;;  %s4227_s30 = smov 112   ;;  %vm1549_vm5 = vcmask 130048   ;;  %vm1648_vm8 = vcmask 162816  }
  0x29   :  { %3663 = vmatpush1.bf16.msra.mxu0 %v4338_v9  ;;  %3679 = vmatpush1.bf16.msra.mxu1 %v4338_v9  ;;  %v4361_v16 = vpack.c.bf16 %v145_v14, %v143_v13  ;;  %v144_v18 = vld [vmem:[%s5244_s2 + $0x50] sm:$0xff]  ;;  %v67_v19 = vld [vmem:[%s5242_s0] sm:$0xff]  ;;  %v147_v20 = vld [vmem:[%s5244_s2 + $0x68] sm:$0xff]  ;;  %v92_v29 = vsub.s32 2, %v4414_v28  ;;  %v116_v31 = vsub.s32 3, %v4414_v28  ;;  %v4424_v33 = vsub.s32 0, %v4414_v28 }
  0x2a   :  { %3665 = vmatprep.subr.bf16.mxu0 %v4340_v10  ;;  %3681 = vmatprep.subr.bf16.mxu1 %v4340_v10  ;;  %v149_v21 = vld [vmem:[%s5244_s2 + $0x78] sm:$0xff]  ;;  %v4380_v22 = vpack.c.bf16 %v144_v18, %v142_v17  ;;  %v146_v24 = vld [vmem:[%s5244_s2 + $0x60] sm:$0xff]  ;;  %v148_v25 = vld [vmem:[%s5244_s2 + $0x70] sm:$0xff]  ;;  %v4432_v37 = vsub.s32 1, %v4414_v28  ;;  %vm1655_vm11 = vcmask 158720   ;;  %s4229_s12 = smov 96  }
  0x2b   :  { %72 = vperm.xlu0 %3955, %v67_v19   ;;  %v4384_v23 = vpack.c.bf16 %v149_v21, %v147_v20  ;;  %v4394_v26 = vpack.c.bf16 %v148_v25, %v146_v24  ;;  %v66_v30 = vld [vmem:[%s5243_s1] sm:$0xf]  ;;  %s4223_s1 = smov 64   ;;  %vm4737_vm6 = vmpackc.low %vm1549_vm5, %vm1549_vm5  ;;  %s4230_s13 = smov 16   ;;  %vm2917_vm12 = vcmask 519168   ;;  %vm3235_vm13 = vcmask 519170  }
  0x2c   :  { %v93_v32 = vrot.slane %v66_v30, %v92_v29  ;;  %v117_v35 = vrot.slane %v66_v30, %v116_v31  ;;  %v89_v45 = vrot.slane %v66_v30, %v4424_v33  ;;  %v113_v47 = vrot.slane %v66_v30, %v4432_v37  ;;  %s4231_s14 = smov 80  }
  0x2d   :  { %3667 = vmatpush1.bf16.msra.mxu0 %v4357_v15  ;;  %3683 = vmatpush1.bf16.msra.mxu1 %v4357_v15  ;;  %vm3244_vm14 = vcmask 3074  }
  0x2e   :  { %3669 = vmatprep.subr.bf16.mxu0 %v4361_v16  ;;  %3685 = vmatprep.subr.bf16.mxu1 %v4361_v16  ;;  %v4427_v34 = vrot.slane %v93_v32, %v4424_v33  ;;  %v4436_v39 = vrot.slane %v117_v35, %v4432_v37  ;;  %v4445_v46 = vrot.slane %v89_v45, %v4424_v33 }
  0x2f   :  { %v4450_v49 = vrot.slane %v113_v47, %v4432_v37 }
  0x31   :  { %3671 = vmatpush1.bf16.msra.mxu0 %v4380_v22  ;;  %3687 = vmatpush1.bf16.msra.mxu1 %v4380_v22 }
  0x32   :  { %3673 = vmatprep.subr.bf16.mxu0 %v4384_v23  ;;  %3689 = vmatprep.subr.bf16.mxu1 %v4384_v23 }
  0x35   :  { %3675 = vmatpush1.bf16.msra.mxu0 %v4394_v26  ;;  %3691 = vmatpush1.bf16.msra.mxu1 %v4394_v26 }
  0x36   :  { %3693 = vmatprep.subr.bf16.mxu0 %v4327_v5  ;;  %3709 = vmatprep.subr.bf16.mxu1 %v4327_v5 }
  0x38   :  { %219 = vmatmul.mubr.f32.vlgmr.msra.gmra.mrb[0].mxu0 %v4221_v0 }
  0x39   :  { %3695 = vmatpush1.bf16.msra.mxu0 %v4338_v9  ;;  %440 = vmatprep.mubr.f32.mxu0 %v4221_v0 }
  0x3a   :  { %3697 = vmatprep.subr.bf16.mxu0 %v4340_v10 }
  0x3d   :  { %3699 = vmatpush1.bf16.msra.mxu0 %v4357_v15 }
  0x3e   :  { %3701 = vmatprep.subr.bf16.mxu0 %v4361_v16 }
  0x41   :  { %3703 = vmatpush1.bf16.msra.mxu0 %v4380_v22 }
  0x42   :  { %3705 = vmatprep.subr.bf16.mxu0 %v4384_v23 }
  0x45   :  { %3707 = vmatpush1.bf16.msra.mxu0 %v4394_v26 }
  0x46   :  { %3725 = vmatprep.subr.bf16.mxu0 %v4327_v5 }
  0xaa   :  { %v73_v36 = vpop.permute.xlu0 %72 }
  0xab   :  { %v105_v38 = vmul.f32 %v4427_v34, %v73_v36  ;;  %v104_v48 = vmul.f32 %v4445_v46, %v73_v36 }
  0xad   :  { %v4439_v40 = vadd.f32 %v4436_v39, %v105_v38  ;;  %v4453_v50 = vadd.f32 %v4450_v49, %v104_v48 }
 0x10b   :  { %v220_v41 = vpop.f32.mrb[0].mxu0 }
 0x10c   :  { %v222_v42 = vpop.f32.mrb[1].mxu0  ;;  %v225_v51 = vadd.f32 %v220_v41, %v4453_v50 }
 0x10d   :  { %v226_v43 = vadd.f32 %v222_v42, %v4439_v40 }
 0x10e   :  { %v3252_v52 = vmul.f32 -1.442695, %v225_v51 }
 0x10f   :  { %3992 = vtanh.f32 %v226_v43  ;;  %v3253_v62 = vmul.f32 -1.442695, %v226_v43 }
 0x110   :  { %3994 = vpow2.f32 %v3252_v52 }
 0x119   :  { %v3993_v44 = vpop.eup %3992 }
 0x11a   :  { %242 = vrot.lane.b32.xlu0 %v3993_v44, %s4223_s1  ;;  %v3995_v53 = vpop.eup %3994 }
 0x11b   :  { %v233_v54 = vadd.f32 1.0, %v3995_v53 }
 0x11d   :  { %3996 = vrcp.f32 %v233_v54 }
 0x127   :  { %v3997_v55 = vpop.eup %3996 }
 0x128   :  { %v240_v58 = vmul.f32 0.0, %v3997_v55 }
 0x18c   :  { %v243_v56 = vpop.permute.xlu0 %242 }
 0x18d   :  { %v245_v57 = vmul.f32 %v3997_v55, %v243_v56 }
 0x18f   :  { %247 = vrot.lane.b32.xlu1 %v245_v57, %s4223_s1 }
 0x201   :  { %v248_v59 = vpop.permute.xlu1 %247 }
 0x202   :  { %v250_v60 = vadd.f32 %v248_v59, %v240_v58 }
 0x204   :  { %3998 = vtanh.f32 %v250_v60  ;;  %v353_v25 = vrot.slane %v250_v60, 6 }
 0x205   :  { %4000 = vpow2.f32 %v3253_v62 }
 0x20e   :  { %v3999_v61 = vpop.eup %3998 }
 0x20f   :  { %253 = vrot.lane.b32.xlu1 %v3999_v61, %s4223_s1  ;;  %v4001_v63 = vpop.eup %4000 }
 0x210   :  { %v234_v1 = vadd.f32 1.0, %v4001_v63 }
 0x212   :  { %4002 = vrcp.f32 %v234_v1 }
 0x21c   :  { %v4003_v2 = vpop.eup %4002 }
 0x281   :  { %v254_v3 = vpop.permute.xlu1 %253 }
 0x282   :  { %v4458_v4 = vmul.f32 %v4003_v2, %v254_v3 }
 0x284   :  { %3254 = vmatmul.mubr.msk.f32.vlgmr.msra.gmra.mrb[0].mxu1 %vm150_vm0, %v4458_v4 }
 0x285   :  { %3711 = vmatpush1.bf16.msra.mxu1 %v4338_v9  ;;  %556 = vmatprep.mubr.f32.mxu1 %v4221_v0 }
 0x286   :  { %3713 = vmatprep.subr.bf16.mxu1 %v4340_v10 }
 0x289   :  { %3715 = vmatpush1.bf16.msra.mxu1 %v4357_v15 }
 0x28a   :  { %3717 = vmatprep.subr.bf16.mxu1 %v4361_v16 }
 0x28d   :  { %3719 = vmatpush1.bf16.msra.mxu1 %v4380_v22 }
 0x28e   :  { %3721 = vmatprep.subr.bf16.mxu1 %v4384_v23 }
 0x291   :  { %3723 = vmatpush1.bf16.msra.mxu1 %v4394_v26 }
 0x292   :  { %3741 = vmatprep.subr.bf16.mxu1 %v4327_v5 }
 0x357   :  { %v326_v6 = vpop.f32.mrb[0].mxu1 }
 0x358   :  { %v328_v7 = vpop.f32.mrb[1].mxu1  ;;  %v333_v13 = vrot.slane %v326_v6, 6 }
 0x359   :  { %v334_v8 = vrot.slane %v328_v7, 6 }
 0x35a   :  { %v337_v14 = vadd.f32 %v333_v13, %v4453_v50 }
 0x35b   :  { %v338_v11 = vadd.f32 %v334_v8, %v4439_v40 }
 0x35c   :  { %v3255_v17 = vmul.f32 -1.442695, %v337_v14 }
 0x35d   :  { %4004 = vtanh.f32 %v338_v11  ;;  %v3256_v38 = vmul.f32 -1.442695, %v338_v11 }
 0x35e   :  { %4006 = vpow2.f32 %v3255_v17 }
 0x367   :  { %v4005_v12 = vpop.eup %4004 }
 0x368   :  { %357 = vrot.lane.b32.xlu0 %v4005_v12, %s4223_s1  ;;  %v4007_v18 = vpop.eup %4006 }
 0x369   :  { %v345_v19 = vadd.f32 1.0, %v4007_v18 }
 0x36b   :  { %4008 = vrcp.f32 %v345_v19 }
 0x375   :  { %v4009_v20 = vpop.eup %4008 }
 0x376   :  { %v355_v30 = vmul.f32 %v4009_v20, %v353_v25 }
 0x3da   :  { %v358_v21 = vpop.permute.xlu0 %357 }
 0x3db   :  { %v360_v24 = vmul.f32 %v4009_v20, %v358_v21 }
 0x3dd   :  { %362 = vrot.lane.b32.xlu1 %v360_v24, %s4223_s1 }
 0x44f   :  { %v363_v32 = vpop.permute.xlu1 %362 }
 0x450   :  { %v365_v35 = vadd.f32 %v363_v32, %v355_v30 }
 0x452   :  { %4010 = vtanh.f32 %v365_v35  ;;  %v469_v63 = vrot.slane %v365_v35, 6 }
 0x453   :  { %4012 = vpow2.f32 %v3256_v38 }
 0x45c   :  { %v4011_v36 = vpop.eup %4010 }
 0x45d   :  { %368 = vrot.lane.b32.xlu0 %v4011_v36, %s4223_s1  ;;  %v4013_v41 = vpop.eup %4012 }
 0x45e   :  { %v346_v42 = vadd.f32 1.0, %v4013_v41 }
 0x460   :  { %4014 = vrcp.f32 %v346_v42 }
 0x46a   :  { %v4015_v43 = vpop.eup %4014 }
 0x4cf   :  { %v369_v44 = vpop.permute.xlu0 %368 }
 0x4d0   :  { %v371_v45 = vmul.f32 %v4015_v43, %v369_v44 }
 0x4d2   :  { %v373_v47 = vrot.slane %v371_v45, 2  ;;  %v1287_v17 = vsel %vm1286_vm1, %v4458_v4, %v371_v45 }
 0x4d4   :  { %3257 = vmatmul.mubr.msk.f32.vlgmr.msra.gmra.mrb[2].mxu0 %vm150_vm0, %v373_v47 }
 0x4d5   :  { %3727 = vmatpush1.bf16.msra.mxu0 %v4338_v9  ;;  %672 = vmatprep.mubr.f32.mxu0 %v4221_v0 }
 0x4d6   :  { %3729 = vmatprep.subr.bf16.mxu0 %v4340_v10 }
 0x4d9   :  { %3731 = vmatpush1.bf16.msra.mxu0 %v4357_v15 }
 0x4da   :  { %3733 = vmatprep.subr.bf16.mxu0 %v4361_v16 }
 0x4dd   :  { %3735 = vmatpush1.bf16.msra.mxu0 %v4380_v22 }
 0x4de   :  { %3737 = vmatprep.subr.bf16.mxu0 %v4384_v23 }
 0x4e1   :  { %3739 = vmatpush1.bf16.msra.mxu0 %v4394_v26 }
 0x4e2   :  { %3757 = vmatprep.subr.bf16.mxu0 %v4327_v5 }
 0x5a7   :  { %v442_v48 = vpop.f32.mrb[2].mxu0 }
 0x5a8   :  { %v444_v51 = vpop.f32.mrb[3].mxu0  ;;  %v449_v55 = vrot.slane %v442_v48, 4  ;;  %v68_v48 = vld [vmem:[%s5242_s0 + $0x8] sm:$0xff] }
 0x5a9   :  { %v450_v52 = vrot.slane %v444_v51, 4 }
 0x5aa   :  { %v453_v56 = vadd.f32 %v449_v55, %v4453_v50 }
 0x5ab   :  { %v454_v53 = vadd.f32 %v450_v52, %v4439_v40 }
 0x5ac   :  { %v3258_v57 = vmul.f32 -1.442695, %v453_v56 }
 0x5ad   :  { %4016 = vtanh.f32 %v454_v53  ;;  %v3259_v7 = vmul.f32 -1.442695, %v454_v53 }
 0x5ae   :  { %4018 = vpow2.f32 %v3258_v57 }
 0x5b7   :  { %v4017_v54 = vpop.eup %4016 }
 0x5b8   :  { %473 = vrot.lane.b32.xlu1 %v4017_v54, %s4223_s1  ;;  %v4019_v58 = vpop.eup %4018 }
 0x5b9   :  { %v461_v59 = vadd.f32 1.0, %v4019_v58 }
 0x5bb   :  { %4020 = vrcp.f32 %v461_v59 }
 0x5c5   :  { %v4021_v60 = vpop.eup %4020 }
 0x5c6   :  { %v471_v1 = vmul.f32 %v4021_v60, %v469_v63 }
 0x62a   :  { %v474_v61 = vpop.permute.xlu1 %473 }
 0x62b   :  { %v476_v62 = vmul.f32 %v4021_v60, %v474_v61 }
 0x62d   :  { %478 = vrot.lane.b32.xlu0 %v476_v62, %s4223_s1 }
 0x69f   :  { %v479_v2 = vpop.permute.xlu0 %478 }
 0x6a0   :  { %v481_v3 = vadd.f32 %v479_v2, %v471_v1 }
 0x6a2   :  { %4022 = vtanh.f32 %v481_v3  ;;  %v585_v44 = vrot.slane %v481_v3, 6 }
 0x6a3   :  { %4024 = vpow2.f32 %v3259_v7 }
 0x6ac   :  { %v4023_v6 = vpop.eup %4022 }
 0x6ad   :  { %484 = vrot.lane.b32.xlu1 %v4023_v6, %s4223_s1  ;;  %v4025_v8 = vpop.eup %4024 }
 0x6ae   :  { %v462_v11 = vadd.f32 1.0, %v4025_v8 }
 0x6b0   :  { %4026 = vrcp.f32 %v462_v11 }
 0x6ba   :  { %v4027_v12 = vpop.eup %4026 }
 0x71f   :  { %v485_v13 = vpop.permute.xlu1 %484 }
 0x720   :  { %v487_v14 = vmul.f32 %v4027_v12, %v485_v13 }
 0x722   :  { %v489_v18 = vrot.slane %v487_v14, 4  ;;  %v1289_v19 = vsel %vm1288_vm2, %v1287_v17, %v487_v14 }
 0x724   :  { %3260 = vmatmul.mubr.msk.f32.vlgmr.msra.gmra.mrb[2].mxu1 %vm150_vm0, %v489_v18 }
 0x725   :  { %3743 = vmatpush1.bf16.msra.mxu1 %v4338_v9  ;;  %781 = vmatprep.mubr.f32.mxu1 %v4221_v0 }
 0x726   :  { %3745 = vmatprep.subr.bf16.mxu1 %v4340_v10 }
 0x729   :  { %3747 = vmatpush1.bf16.msra.mxu1 %v4357_v15 }
 0x72a   :  { %3749 = vmatprep.subr.bf16.mxu1 %v4361_v16 }
 0x72d   :  { %3751 = vmatpush1.bf16.msra.mxu1 %v4380_v22 }
 0x72e   :  { %3753 = vmatprep.subr.bf16.mxu1 %v4384_v23 }
 0x731   :  { %3755 = vmatpush1.bf16.msra.mxu1 %v4394_v26 }
 0x732   :  { %3773 = vmatprep.subr.bf16.mxu1 %v4327_v5 }
 0x7f7   :  { %v558_v4 = vpop.f32.mrb[2].mxu1 }
 0x7f8   :  { %v560_v20 = vpop.f32.mrb[3].mxu1  ;;  %v565_v30 = vrot.slane %v558_v4, 2 }
 0x7f9   :  { %v566_v21 = vrot.slane %v560_v20, 2 }
 0x7fa   :  { %v569_v32 = vadd.f32 %v565_v30, %v4453_v50 }
 0x7fb   :  { %v570_v24 = vadd.f32 %v566_v21, %v4439_v40 }
 0x7fc   :  { %v3261_v35 = vmul.f32 -1.442695, %v569_v32 }
 0x7fd   :  { %4028 = vtanh.f32 %v570_v24  ;;  %v3262_v51 = vmul.f32 -1.442695, %v570_v24 }
 0x7fe   :  { %4030 = vpow2.f32 %v3261_v35 }
 0x807   :  { %v4029_v25 = vpop.eup %4028 }
 0x808   :  { %589 = vrot.lane.b32.xlu0 %v4029_v25, %s4223_s1  ;;  %v4031_v36 = vpop.eup %4030 }
 0x809   :  { %v577_v38 = vadd.f32 1.0, %v4031_v36 }
 0x80b   :  { %4032 = vrcp.f32 %v577_v38 }
 0x815   :  { %v4033_v41 = vpop.eup %4032 }
 0x816   :  { %v587_v45 = vmul.f32 %v4033_v41, %v585_v44 }
 0x87a   :  { %v590_v42 = vpop.permute.xlu0 %589 }
 0x87b   :  { %v592_v43 = vmul.f32 %v4033_v41, %v590_v42 }
 0x87d   :  { %594 = vrot.lane.b32.xlu1 %v592_v43, %s4223_s1 }
 0x881   :  { %77 = vperm.xlu1 %3956, %v68_v48  }
 0x8ef   :  { %v595_v40 = vpop.permute.xlu1 %594 }
 0x8f0   :  { %v597_v47 = vadd.f32 %v595_v40, %v587_v45 }
 0x8f2   :  { %4034 = vtanh.f32 %v597_v47  ;;  %v695_v18 = vrot.slane %v597_v47, 6 }
 0x8f3   :  { %4036 = vpow2.f32 %v3262_v51 }
 0x8fc   :  { %v4035_v50 = vpop.eup %4034 }
 0x8fd   :  { %600 = vrot.lane.b32.xlu0 %v4035_v50, %s4223_s1  ;;  %v4037_v52 = vpop.eup %4036 }
 0x8fe   :  { %v578_v53 = vadd.f32 1.0, %v4037_v52 }
 0x900   :  { %4038 = vrcp.f32 %v578_v53  ;;  %v78_v59 = vpop.permute.xlu1 %77 }
 0x901   :  { %v107_v60 = vmul.f32 %v4427_v34, %v78_v59  ;;  %v106_v3 = vmul.f32 %v4445_v46, %v78_v59 }
 0x903   :  { %v4527_v61 = vadd.f32 %v4436_v39, %v107_v60  ;;  %v4533_v6 = vadd.f32 %v4450_v49, %v106_v3 }
 0x90a   :  { %v4039_v54 = vpop.eup %4038 }
 0x96f   :  { %v601_v55 = vpop.permute.xlu0 %600 }
 0x970   :  { %v603_v56 = vmul.f32 %v4039_v54, %v601_v55 }
 0x972   :  { %v605_v57 = vrot.slane %v603_v56, 6  ;;  %v4513_v58 = vsel %vm1290_vm3, %v1289_v19, %v603_v56 }
 0x974   :  { %3263 = vmatmul.mubr.msk.f32.vlgmr.msra.gmra.mrb[4].mxu0 %vm150_vm0, %v605_v57 }
 0x975   :  { %3759 = vmatpush1.bf16.msra.mxu0 %v4338_v9  ;;  %897 = vmatprep.mubr.f32.mxu0 %v4221_v0 }
 0x976   :  { %3761 = vmatprep.subr.bf16.mxu0 %v4340_v10 }
 0x979   :  { %3763 = vmatpush1.bf16.msra.mxu0 %v4357_v15 }
 0x97a   :  { %3765 = vmatprep.subr.bf16.mxu0 %v4361_v16 }
 0x97d   :  { %3767 = vmatpush1.bf16.msra.mxu0 %v4380_v22 }
 0x97e   :  { %3769 = vmatprep.subr.bf16.mxu0 %v4384_v23 }
 0x981   :  { %3771 = vmatpush1.bf16.msra.mxu0 %v4394_v26 }
 0x982   :  { %3789 = vmatprep.subr.bf16.mxu0 %v4327_v5 }
 0xa47   :  { %v674_v62 = vpop.f32.mrb[4].mxu0 }
 0xa48   :  { %v676_v63 = vpop.f32.mrb[5].mxu0  ;;  %v679_v7 = vadd.f32 %v674_v62, %v4533_v6 }
 0xa49   :  { %v680_v1 = vadd.f32 %v676_v63, %v4527_v61 }
 0xa4a   :  { %v3264_v8 = vmul.f32 -1.442695, %v679_v7 }
 0xa4b   :  { %4040 = vtanh.f32 %v680_v1  ;;  %v3265_v24 = vmul.f32 -1.442695, %v680_v1 }
 0xa4c   :  { %4042 = vpow2.f32 %v3264_v8 }
 0xa55   :  { %v4041_v2 = vpop.eup %4040 }
 0xa56   :  { %699 = vrot.lane.b32.xlu0 %v4041_v2, %s4223_s1  ;;  %v4043_v11 = vpop.eup %4042 }
 0xa57   :  { %v687_v12 = vadd.f32 1.0, %v4043_v11 }
 0xa59   :  { %4044 = vrcp.f32 %v687_v12 }
 0xa63   :  { %v4045_v13 = vpop.eup %4044 }
 0xa64   :  { %v697_v19 = vmul.f32 %v4045_v13, %v695_v18 }
 0xac8   :  { %v700_v14 = vpop.permute.xlu0 %699 }
 0xac9   :  { %v702_v17 = vmul.f32 %v4045_v13, %v700_v14 }
 0xacb   :  { %704 = vrot.lane.b32.xlu1 %v702_v17, %s4223_s1 }
 0xb3d   :  { %v705_v4 = vpop.permute.xlu1 %704 }
 0xb3e   :  { %v707_v20 = vadd.f32 %v705_v4, %v697_v19 }
 0xb40   :  { %4046 = vtanh.f32 %v707_v20  ;;  %v810_v53 = vrot.slane %v707_v20, 6 }
 0xb41   :  { %4048 = vpow2.f32 %v3265_v24 }
 0xb4a   :  { %v4047_v21 = vpop.eup %4046 }
 0xb4b   :  { %710 = vrot.lane.b32.xlu0 %v4047_v21, %s4223_s1  ;;  %v4049_v25 = vpop.eup %4048 }
 0xb4c   :  { %v688_v30 = vadd.f32 1.0, %v4049_v25 }
 0xb4e   :  { %4050 = vrcp.f32 %v688_v30 }
 0xb58   :  { %v4051_v32 = vpop.eup %4050 }
 0xbbd   :  { %v711_v35 = vpop.permute.xlu0 %710 }
 0xbbe   :  { %v4538_v36 = vmul.f32 %v4051_v32, %v711_v35 }
 0xbc0   :  { %3266 = vmatmul.mubr.msk.f32.vlgmr.msra.gmra.mrb[4].mxu1 %vm150_vm0, %v4538_v36 }
 0xbc1   :  { %3775 = vmatpush1.bf16.msra.mxu1 %v4338_v9  ;;  %1013 = vmatprep.mubr.f32.mxu1 %v4221_v0 }
 0xbc2   :  { %3777 = vmatprep.subr.bf16.mxu1 %v4340_v10 }
 0xbc5   :  { %3779 = vmatpush1.bf16.msra.mxu1 %v4357_v15 }
 0xbc6   :  { %3781 = vmatprep.subr.bf16.mxu1 %v4361_v16 }
 0xbc9   :  { %3783 = vmatpush1.bf16.msra.mxu1 %v4380_v22 }
 0xbca   :  { %3785 = vmatprep.subr.bf16.mxu1 %v4384_v23 }
 0xbcd   :  { %3787 = vmatpush1.bf16.msra.mxu1 %v4394_v26 }
 0xbce   :  { %3805 = vmatprep.subr.bf16.mxu1 %v4327_v5 }
 0xc93   :  { %v783_v38 = vpop.f32.mrb[4].mxu1 }
 0xc94   :  { %v785_v41 = vpop.f32.mrb[5].mxu1  ;;  %v790_v45 = vrot.slane %v783_v38, 6 }
 0xc95   :  { %v791_v42 = vrot.slane %v785_v41, 6 }
 0xc96   :  { %v794_v40 = vadd.f32 %v790_v45, %v4533_v6 }
 0xc97   :  { %v795_v43 = vadd.f32 %v791_v42, %v4527_v61 }
 0xc98   :  { %v3267_v47 = vmul.f32 -1.442695, %v794_v40 }
 0xc99   :  { %4052 = vtanh.f32 %v795_v43  ;;  %v3268_v59 = vmul.f32 -1.442695, %v795_v43 }
 0xc9a   :  { %4054 = vpow2.f32 %v3267_v47 }
 0xca3   :  { %v4053_v44 = vpop.eup %4052 }
 0xca4   :  { %814 = vrot.lane.b32.xlu1 %v4053_v44, %s4223_s1  ;;  %v4055_v48 = vpop.eup %4054 }
 0xca5   :  { %v802_v50 = vadd.f32 1.0, %v4055_v48 }
 0xca7   :  { %4056 = vrcp.f32 %v802_v50 }
 0xcb1   :  { %v4057_v51 = vpop.eup %4056 }
 0xcb2   :  { %v812_v54 = vmul.f32 %v4057_v51, %v810_v53 }
 0xd16   :  { %v815_v52 = vpop.permute.xlu1 %814 }
 0xd17   :  { %v817_v5 = vmul.f32 %v4057_v51, %v815_v52 }
 0xd19   :  { %819 = vrot.lane.b32.xlu0 %v817_v5, %s4223_s1 }
 0xd8b   :  { %v820_v55 = vpop.permute.xlu0 %819 }
 0xd8c   :  { %v822_v56 = vadd.f32 %v820_v55, %v812_v54 }
 0xd8e   :  { %4058 = vtanh.f32 %v822_v56  ;;  %v926_v25 = vrot.slane %v822_v56, 6 }
 0xd8f   :  { %4060 = vpow2.f32 %v3268_v59 }
 0xd98   :  { %v4059_v57 = vpop.eup %4058 }
 0xd99   :  { %825 = vrot.lane.b32.xlu1 %v4059_v57, %s4223_s1  ;;  %v4061_v60 = vpop.eup %4060 }
 0xd9a   :  { %v803_v62 = vadd.f32 1.0, %v4061_v60 }
 0xd9c   :  { %4062 = vrcp.f32 %v803_v62 }
 0xda6   :  { %v4063_v63 = vpop.eup %4062 }
 0xe0b   :  { %v826_v1 = vpop.permute.xlu1 %825 }
 0xe0c   :  { %v828_v2 = vmul.f32 %v4063_v63, %v826_v1 }
 0xe0e   :  { %v830_v3 = vrot.slane %v828_v2, 2  ;;  %v1292_v47 = vsel %vm1286_vm1, %v4538_v36, %v828_v2  ;;  %v1298_v2 = vld [vmem:[#allocation2] sm:$0xff] }
 0xe10   :  { %3269 = vmatmul.mubr.msk.f32.vlgmr.msra.gmra.mrb[6].mxu0 %vm150_vm0, %v830_v3  ;;  %v1299_v3 = vld [vmem:[#allocation2 + $0x8] sm:$0xff] }
 0xe11   :  { %3791 = vmatpush1.bf16.msra.mxu0 %v4338_v9  ;;  %1129 = vmatprep.mubr.f32.mxu0 %v4221_v0 }
 0xe12   :  { %3793 = vmatprep.subr.bf16.mxu0 %v4340_v10 }
 0xe15   :  { %3795 = vmatpush1.bf16.msra.mxu0 %v4357_v15 }
 0xe16   :  { %3797 = vmatprep.subr.bf16.mxu0 %v4361_v16 }
 0xe19   :  { %3799 = vmatpush1.bf16.msra.mxu0 %v4380_v22 }
 0xe1a   :  { %3801 = vmatprep.subr.bf16.mxu0 %v4384_v23 }
 0xe1d   :  { %3803 = vmatpush1.bf16.msra.mxu0 %v4394_v26 }
 0xee3   :  { %v899_v7 = vpop.f32.mrb[6].mxu0 }
 0xee4   :  { %v901_v8 = vpop.f32.mrb[7].mxu0  ;;  %v906_v14 = vrot.slane %v899_v7, 4 }
 0xee5   :  { %v907_v11 = vrot.slane %v901_v8, 4 }
 0xee6   :  { %v910_v17 = vadd.f32 %v906_v14, %v4533_v6  ;;  %v1300_v14 = vld [vmem:[#allocation2 + $0x10] sm:$0xff] }
 0xee7   :  { %v911_v12 = vadd.f32 %v907_v11, %v4527_v61 }
 0xee8   :  { %v3270_v18 = vmul.f32 -1.442695, %v910_v17  ;;  %v1301_v17 = vld [vmem:[#allocation2 + $0x18] sm:$0xff] }
 0xee9   :  { %4064 = vtanh.f32 %v911_v12  ;;  %v3271_v41 = vmul.f32 -1.442695, %v911_v12  ;;  %v3821_v12 = vpack.c.bf16 %v1299_v3, %v1298_v2  ;;  %v1403_v3 = vld [vmem:[%s5246_s4 + $0x20] sm:$0xff] }
 0xeea   :  { %4066 = vpow2.f32 %v3270_v18 }
 0xef3   :  { %v4065_v13 = vpop.eup %4064 }
 0xef4   :  { %930 = vrot.lane.b32.xlu0 %v4065_v13, %s4223_s1  ;;  %v4067_v19 = vpop.eup %4066 }
 0xef5   :  { %v918_v4 = vadd.f32 1.0, %v4067_v19  ;;  %v3824_v19 = vpack.c.bf16 %v1301_v17, %v1300_v14  ;;  %v1407_v14 = vld [vmem:[%s5246_s4 + $0x40] sm:$0xff]  ;;  %v1409_v17 = vld [vmem:[%s5246_s4 + $0x50] sm:$0xff] }
 0xef7   :  { %4068 = vrcp.f32 %v918_v4  ;;  %v1302_v4 = vld [vmem:[#allocation2 + $0x20] sm:$0xff] }
 0xf01   :  { %v4069_v20 = vpop.eup %4068 }
 0xf02   :  { %v928_v30 = vmul.f32 %v4069_v20, %v926_v25  ;;  %v1305_v25 = vld [vmem:[#allocation2 + $0x38] sm:$0xff] }
 0xf66   :  { %v931_v21 = vpop.permute.xlu0 %930 }
 0xf67   :  { %v933_v24 = vmul.f32 %v4069_v20, %v931_v21  ;;  %v1303_v20 = vld [vmem:[#allocation2 + $0x28] sm:$0xff] }
 0xf68   :  { %v3827_v21 = vpack.c.bf16 %v1303_v20, %v1302_v4  ;;  %v3842_v4 = vpack.c.bf16 %v1409_v17, %v1407_v14 }
 0xf69   :  { %935 = vrot.lane.b32.xlu1 %v933_v24, %s4223_s1  ;;  %v1304_v24 = vld [vmem:[#allocation2 + $0x30] sm:$0xff] }
 0xfdb   :  { %v936_v32 = vpop.permute.xlu1 %935 }
 0xfdc   :  { %v938_v35 = vadd.f32 %v936_v32, %v928_v30  ;;  %v3830_v30 = vpack.c.bf16 %v1305_v25, %v1304_v24  ;;  %v1413_v24 = vld [vmem:[%s5246_s4 + $0x70] sm:$0xff]  ;;  %v1296_v25 = vld [vmem:[%s5252_s10] sm:$0xff] }
 0xfde   :  { %4070 = vtanh.f32 %v938_v35  ;;  %v1042_v55 = vrot.slane %v938_v35, 6 }
 0xfdf   :  { %4072 = vpow2.f32 %v3271_v41 }
 0xfe8   :  { %v4071_v38 = vpop.eup %4070 }
 0xfe9   :  { %941 = vrot.lane.b32.xlu0 %v4071_v38, %s4223_s1  ;;  %v4073_v42 = vpop.eup %4072 }
 0xfea   :  { %v919_v43 = vadd.f32 1.0, %v4073_v42 }
 0xfec   :  { %4074 = vrcp.f32 %v919_v43 }
 0xff6   :  { %v4075_v44 = vpop.eup %4074 }
0x105b   :  { %v942_v45 = vpop.permute.xlu0 %941 }
0x105c   :  { %v944_v40 = vmul.f32 %v4075_v44, %v942_v45 }
0x105e   :  { %v946_v48 = vrot.slane %v944_v40, 4  ;;  %v1293_v50 = vsel %vm1288_vm2, %v1292_v47, %v944_v40 }
0x1060   :  { %3272 = vmatmul.mubr.msk.f32.vlgmr.msra.gmra.mrb[6].mxu1 %vm150_vm0, %v946_v48 }
0x1061   :  { %3807 = vmatpush1.bf16.msra.mxu1 %v4338_v9  ;;  %1238 = vmatprep.mubr.f32.mxu1 %v4221_v0 }
0x1062   :  { %3809 = vmatprep.subr.bf16.mxu1 %v4340_v10 }
0x1065   :  { %3811 = vmatpush1.bf16.msra.mxu1 %v4357_v15 }
0x1066   :  { %3813 = vmatprep.subr.bf16.mxu1 %v4361_v16 }
0x1069   :  { %3815 = vmatpush1.bf16.msra.mxu1 %v4380_v22 }
0x106a   :  { %3817 = vmatprep.subr.bf16.mxu1 %v4384_v23 }
0x106d   :  { %3819 = vmatpush1.bf16.msra.mxu1 %v4394_v26 }
0x1133   :  { %v1015_v36 = vpop.f32.mrb[6].mxu1 }
0x1134   :  { %v1017_v51 = vpop.f32.mrb[7].mxu1  ;;  %v1022_v10 = vrot.slane %v1015_v36, 2 }
0x1135   :  { %v1023_v52 = vrot.slane %v1017_v51, 2 }
0x1136   :  { %v1026_v15 = vadd.f32 %v1022_v10, %v4533_v6  ;;  %v4224_v6 = vmov 0.0|0.0  }
0x1137   :  { %v1027_v5 = vadd.f32 %v1023_v52, %v4527_v61  ;;  %v69_v61 = vld [vmem:[%s5242_s0 + $0x10] sm:$0xf]  ;;  %3820 = vmatprep.subr.bf16.mxu0 %v4224_v6 }
0x1138   :  { %v3273_v53 = vmul.f32 -1.442695, %v1026_v15 }
0x1139   :  { %4076 = vtanh.f32 %v1027_v5  ;;  %v3274_v62 = vmul.f32 -1.442695, %v1027_v5 }
0x113a   :  { %4078 = vpow2.f32 %v3273_v53 }
0x1143   :  { %v4077_v9 = vpop.eup %4076 }
0x1144   :  { %1046 = vrot.lane.b32.xlu1 %v4077_v9, %s4223_s1  ;;  %v4079_v16 = vpop.eup %4078 }
0x1145   :  { %v1034_v22 = vadd.f32 1.0, %v4079_v16 }
0x1147   :  { %4080 = vrcp.f32 %v1034_v22 }
0x1151   :  { %v4081_v23 = vpop.eup %4080 }
0x1152   :  { %v1044_v56 = vmul.f32 %v4081_v23, %v1042_v55  ;;  %v1399_v55 = vld [vmem:[%s5246_s4] sm:$0xff] }
0x11b6   :  { %v1047_v54 = vpop.permute.xlu1 %1046 }
0x11b7   :  { %v1049_v26 = vmul.f32 %v4081_v23, %v1047_v54 }
0x11b9   :  { %1051 = vrot.lane.b32.xlu0 %v1049_v26, %s4223_s1 }
0x11bd   :  { %82 = vperm.xlu0 %3955, %v69_v61  }
0x122b   :  { %v1052_v57 = vpop.permute.xlu0 %1051 }
0x122c   :  { %v4589_v59 = vadd.f32 %v1052_v57, %v1044_v56  ;;  %v1401_v56 = vld [vmem:[%s5246_s4 + $0x10] sm:$0xff]  ;;  %v1404_v57 = vld [vmem:[%s5246_s4 + $0x28] sm:$0xff] }
0x122e   :  { %4082 = vtanh.f32 %v4589_v59  ;;  %v1152_v10 = vrot.slane %v4589_v59, 6  ;;  %v1406_v59 = vld [vmem:[%s5246_s4 + $0x38] sm:$0xff] }
0x122f   :  { %4084 = vpow2.f32 %v3274_v62  ;;  %v3836_v2 = vpack.c.bf16 %v1406_v59, %v1404_v57 }
0x1238   :  { %v4083_v60 = vpop.eup %4082 }
0x1239   :  { %1057 = vrot.lane.b32.xlu1 %v4083_v60, %s4223_s1  ;;  %v4085_v63 = vpop.eup %4084 }
0x123a   :  { %v1035_v1 = vadd.f32 1.0, %v4085_v63  ;;  %v3834_v63 = vpack.c.bf16 %v1401_v56, %v1399_v55 }
0x123c   :  { %4086 = vrcp.f32 %v1035_v1  ;;  %v83_v32 = vpop.permute.xlu0 %82 }
0x123d   :  { %v109_v35 = vmul.f32 %v4427_v34, %v83_v32  ;;  %v108_v48 = vmul.f32 %v4445_v46, %v83_v32  ;;  %v1400_v46 = vld [vmem:[%s5246_s4 + $0x8] sm:$0xff]  ;;  %v4687_v32 = vrot.slane %v1296_v25, %v4424_v33 }
0x123f   :  { %v4611_v41 = vadd.f32 %v4436_v39, %v109_v35  ;;  %v4621_v34 = vadd.f32 %v4450_v49, %v108_v48  ;;  %v1402_v49 = vld [vmem:[%s5246_s4 + $0x18] sm:$0xff] }
0x1240   :  { %v3832_v22 = vpack.c.bf16 %v1402_v49, %v1400_v46 }
0x1242   :  { %3833 = vmatprep.subr.bf16.mxu1 %v3832_v22 }
0x1246   :  { %v4087_v7 = vpop.eup %4086 }
0x12ab   :  { %v1058_v8 = vpop.permute.xlu1 %1057 }
0x12ac   :  { %v1060_v11 = vmul.f32 %v4087_v7, %v1058_v8  ;;  %v1405_v7 = vld [vmem:[%s5246_s4 + $0x30] sm:$0xff]  ;;  %v1408_v8 = vld [vmem:[%s5246_s4 + $0x48] sm:$0xff] }
0x12ae   :  { %v1062_v13 = vrot.slane %v1060_v11, 6  ;;  %v1294_v18 = vsel %vm1290_vm3, %v1293_v50, %v1060_v11  ;;  %v1410_v11 = vld [vmem:[%s5246_s4 + $0x58] sm:$0xff] }
0x12b0   :  { %3275 = vmatmul.mubr.msk.f32.vlgmr.msra.gmra.mrb[8].mxu0 %vm150_vm0, %v1062_v13  ;;  %v3840_v13 = vpack.c.bf16 %v1410_v11, %v1408_v8 }
0x12b1   :  { %3822 = vmatpush3.bf16.msra.mxu0 %v3821_v12  ;;  %3479 = vmatprep.mubr.msk.f32.mxu0 %vm4225_vm4, %v4221_v0  ;;  %v3838_v12 = vpack.c.bf16 %v1405_v7, %v1403_v3 }
0x12b2   :  { %3823 = vmatprep.subr.bf16.mxu0 %v4224_v6 }
0x12b5   :  { %3825 = vmatpush3.bf16.msra.mxu0 %v3824_v19  ;;  %v1414_v19 = vld [vmem:[%s5246_s4 + $0x78] sm:$0xff] }
0x12b6   :  { %3826 = vmatprep.subr.bf16.mxu0 %v4224_v6 }
0x12b9   :  { %3828 = vmatpush3.bf16.msra.mxu0 %v3827_v21  ;;  %v1411_v21 = vld [vmem:[%s5246_s4 + $0x60] sm:$0xff] }
0x12ba   :  { %3829 = vmatprep.subr.bf16.mxu0 %v4224_v6 }
0x12bd   :  { %3831 = vmatpush3.bf16.msra.mxu0 %v3830_v30  ;;  %v3846_v30 = vpack.c.bf16 %v1413_v24, %v1411_v21 }
0x12be   :  { %3848 = vmatprep.subr.bf16.mxu0 %v4224_v6 }
0x12c0   :  { %3480 = vmatmul.mubr.msk.f32.vlgmr.msra.gmra.mrb[10].mxu0 %vm150_vm0, %v4513_v58 }
0x12c1   :  { %3482 = vmatprep.mubr.msk.f32.mxu0 %vm4225_vm4, %v4221_v0 }
0x12c4   :  { %3483 = vmatmul.mubr.msk.f32.gmra.mrb[12].mxu0 %vm150_vm0, %v1294_v18  ;;  %v1412_v18 = vld [vmem:[%s5246_s4 + $0x68] sm:$0xff] }
0x12c5   :  { %3485 = vmatprep.mubr.msk.f32.mxu0 %vm4225_vm4, %v4221_v0  ;;  %v3844_v20 = vpack.c.bf16 %v1414_v19, %v1412_v18 }
0x1383   :  { %v1131_v38 = vpop.f32.mrb[8].mxu0 }
0x1384   :  { %v1133_v42 = vpop.f32.mrb[9].mxu0  ;;  %v1136_v39 = vadd.f32 %v1131_v38, %v4621_v34 }
0x1385   :  { %v1137_v43 = vadd.f32 %v1133_v42, %v4611_v41 }
0x1386   :  { %v3276_v50 = vmul.f32 -1.442695, %v1136_v39 }
0x1387   :  { %4088 = vtanh.f32 %v1137_v43  ;;  %v3277_v54 = vmul.f32 -1.442695, %v1137_v43 }
0x1388   :  { %4090 = vpow2.f32 %v3276_v50 }
0x1391   :  { %v4089_v58 = vpop.eup %4088 }
0x1392   :  { %1156 = vrot.lane.b32.xlu1 %v4089_v58, %s4223_s1  ;;  %v4091_v36 = vpop.eup %4090 }
0x1393   :  { %v4615_v44 = vpop.f32.mrb[10].mxu0  ;;  %v1144_v51 = vadd.f32 1.0, %v4091_v36 }
0x1394   :  { %v3481_v45 = vpop.f32.mrb[11].mxu0  ;;  %v4691_v35 = vadd.f32 %v4615_v44, %v4687_v32 }
0x1395   :  { %4092 = vrcp.f32 %v1144_v51  ;;  %v1415_v45 = vld [vmem:[%s5247_s5] sm:$0x3]  ;;  %s4226_s5 = smov 48  }
0x1396   :  { %v1420_v49 = vrot.slane %v1415_v45, %v4424_v33 }
0x1397   :  { %v4617_v40 = vpop.f32.mrb[12].mxu0 }
0x1398   :  { %v3484_v47 = vpop.f32.mrb[13].mxu0  ;;  %v4699_v38 = vadd.f32 %v4617_v40, %v4687_v32  ;;  %v4710_v40 = vrot.slane %v1415_v45, %v4432_v37 }
0x139f   :  { %v4093_v52 = vpop.eup %4092 }
0x13a0   :  { %v1154_v15 = vmul.f32 %v4093_v52, %v1152_v10 }
0x1404   :  { %v1157_v5 = vpop.permute.xlu1 %1156 }
0x1405   :  { %v1159_v9 = vmul.f32 %v4093_v52, %v1157_v5 }
0x1407   :  { %1161 = vrot.lane.b32.xlu0 %v1159_v9, %s4223_s1 }
0x1479   :  { %v1162_v53 = vpop.permute.xlu0 %1161 }
0x147a   :  { %v4632_v16 = vadd.f32 %v1162_v53, %v1154_v15 }
0x147c   :  { %4094 = vtanh.f32 %v4632_v16 }
0x147d   :  { %4096 = vpow2.f32 %v3277_v54 }
0x1486   :  { %v4095_v23 = vpop.eup %4094 }
0x1487   :  { %1167 = vrot.lane.b32.xlu1 %v4095_v23, %s4223_s1  ;;  %v4097_v26 = vpop.eup %4096 }
0x1488   :  { %v1145_v61 = vadd.f32 1.0, %v4097_v26 }
0x148a   :  { %4098 = vrcp.f32 %v1145_v61 }
0x1494   :  { %v4099_v60 = vpop.eup %4098 }
0x14f9   :  { %v1168_v62 = vpop.permute.xlu1 %1167 }
0x14fa   :  { %v4648_v1 = vmul.f32 %v4099_v60, %v1168_v62 }
0x14fc   :  { %3278 = vmatmul.mubr.msk.f32.vlgmr.msra.gmra.mrb[8].mxu1 %vm150_vm0, %v4648_v1 }
0x14fd   :  { %3835 = vmatpush1.bf16.msra.mxu1 %v3834_v63  ;;  %1500 = vmatprep.mubr.f32.mxu1 %v4221_v0 }
0x14fe   :  { %3837 = vmatprep.subr.bf16.mxu1 %v3836_v2 }
0x1501   :  { %3839 = vmatpush1.bf16.msra.mxu1 %v3838_v12 }
0x1502   :  { %3841 = vmatprep.subr.bf16.mxu1 %v3840_v13 }
0x1505   :  { %3843 = vmatpush1.bf16.msra.mxu1 %v3842_v4 }
0x1506   :  { %3845 = vmatprep.subr.bf16.mxu1 %v3844_v20 }
0x1509   :  { %3847 = vmatpush1.bf16.msra.mxu1 %v3846_v30 }
0x150a   :  { %3852 = vmatprep.subr.bf16.mxu1 %v4224_v6 }
0x150c   :  { %3284 = vmatmul.mubr.msk.f32.vlgmr.msra.gmra.mrb[10].mxu1 %vm150_vm0, %v4691_v35 }
0x150d   :  { %1506 = vmatprep.mubr.f32.mxu1 %v4221_v0 }
0x1510   :  { %3285 = vmatmul.mubr.msk.f32.gmra.mrb[12].mxu1 %vm150_vm0, %v4699_v38 }
0x1511   :  { %1512 = vmatprep.mubr.f32.mxu1 %v4221_v0 }
0x15cf   :  { %v1240_v42 = vpop.f32.mrb[8].mxu1 }
0x15d0   :  { %v1242_v43 = vpop.f32.mrb[9].mxu1  ;;  %v1247_v9 = vrot.slane %v1240_v42, 6 }
0x15d1   :  { %v1248_v58 = vrot.slane %v1242_v43, 6 }
0x15d2   :  { %v1251_v10 = vadd.f32 %v1247_v9, %v4621_v34  ;;  %v1267_v34 = vrot.slane %v4632_v16, 6 }
0x15d3   :  { %v1252_v44 = vadd.f32 %v1248_v58, %v4611_v41 }
0x15d4   :  { %v3279_v15 = vmul.f32 -1.442695, %v1251_v10 }
0x15d5   :  { %4100 = vtanh.f32 %v1252_v44  ;;  %v3280_v7 = vmul.f32 -1.442695, %v1252_v44 }
0x15d6   :  { %4102 = vpow2.f32 %v3279_v15 }
0x15df   :  { %v4101_v47 = vpop.eup %4100  ;;  %v1502_v48 = vpop.f32.mrb[10].mxu1 }
0x15e0   :  { %v1504_v39 = vpop.f32.mrb[11].mxu1  ;;  %1271 = vrot.lane.b32.xlu0 %v4101_v47, %s4223_s1  ;;  %v4103_v53 = vpop.eup %4102  ;;  %v4721_v61 = vadd.f32 %v1502_v48, %v1420_v49  ;;  %v1524_v48 = vand.u32 127, %v86_v27 }
0x15e1   :  { %v1505_v51 = vadd.f32 %v1504_v39, %v4710_v40  ;;  %v1259_v46 = vadd.f32 1.0, %v4103_v53  ;;  %v1525_v39 = vand.u32 1, %v4414_v28 }
0x15e3   :  { %v1508_v50 = vpop.f32.mrb[12].mxu1  ;;  %4104 = vrcp.f32 %v1259_v46 }
0x15e4   :  { %v1510_v36 = vpop.f32.mrb[13].mxu1  ;;  %v4719_v54 = vadd.f32 %v1508_v50, %v1420_v49  ;;  %v1521_v50 = vadd.s32 8, %v4414_v28 }
0x15e5   :  { %v1511_v52 = vadd.f32 %v1510_v36, %v4710_v40 }
0x15e6   :  { %v4726_v55 = vpack.i.bf16 %v4719_v54, %v4721_v61 }
0x15e7   :  { %v3853_v41 = vpack.c.bf16 %v1511_v52, %v1505_v51  ;;  %v4714_v5 = vpack.i.bf16 %v1511_v52, %v1505_v51  ;;  %v1526_v52 = vand.u32 1, %v1521_v50 }
0x15e9   :  { %3854 = vmatpush3.bf16.msra.mxu1 %v3853_v41 }
0x15ea   :  { %3507 = vmatprep.subr.mxu1 %v4221_v0 }
0x15ed   :  { %v4105_v22 = vpop.eup %4104 }
0x15ee   :  { %v1269_v56 = vmul.f32 %v4105_v22, %v1267_v34 }
0x1652   :  { %v1272_v23 = vpop.permute.xlu0 %1271 }
0x1653   :  { %v1274_v26 = vmul.f32 %v4105_v22, %v1272_v23  ;;  %v1522_v22 = vadd.s32 16, %v4414_v28 }
0x1655   :  { %1276 = vrot.lane.b32.xlu1 %v1274_v26, %s4223_s1 }
0x1659   :  { %3958 = vrot.lane.b32.xlu1 %v4726_v55, %s4223_s1 }
0x165d   :  { %3963 = vrot.lane.b32.xlu1 %v4726_v55, %s4226_s5 }
0x1661   :  { %1784 = vrot.lane.b32.xlu1 %v4721_v61, %s4227_s30 }
0x16c7   :  { %v1277_v57 = vpop.permute.xlu1 %1276 }
0x16c8   :  { %v1279_v59 = vadd.f32 %v1277_v57, %v1269_v56  ;;  %v1527_v57 = vand.u32 1, %v1522_v22 }
0x16ca   :  { %4106 = vtanh.f32 %v1279_v59 }
0x16cb   :  { %v3959_v60 = vpop.permute.xlu1 %3958  ;;  %4108 = vpow2.f32 %v3280_v7 }
0x16cc   :  { %v3961_v62 = vunpack.i.h.bf16 %v3959_v60  ;;  %v3960_v63 = vunpack.i.l.bf16 %v3959_v60 }
0x16ce   :  { %v3849_v3 = vpack.c.bf16 %v3961_v62, %v3960_v63 }
0x16cf   :  { %v3964_v25 = vpop.permute.xlu1 %3963 }
0x16d0   :  { %3851 = vmatpush3.bf16.xpose.msk.msra.mxu0 %vm4737_vm6, %v3849_v3  ;;  %v3966_v30 = vunpack.i.h.bf16 %v3964_v25 }
0x16d1   :  { %3492 = vmatprep.subr.mxu0 %v4221_v0 }
0x16d3   :  { %v1785_v44 = vpop.permute.xlu1 %1784 }
0x16d4   :  { %v4107_v16 = vpop.eup %4106 }
0x16d5   :  { %1282 = vrot.lane.b32.xlu0 %v4107_v16, %s4223_s1  ;;  %v4109_v8 = vpop.eup %4108 }
0x16d6   :  { %v1260_v11 = vadd.f32 1.0, %v4109_v8 }
0x16d8   :  { %4110 = vrcp.f32 %v1260_v11 }
0x16e2   :  { %v4111_v12 = vpop.eup %4110 }
0x1747   :  { %v1283_v13 = vpop.permute.xlu0 %1282 }
0x1748   :  { %v1285_v14 = vmul.f32 %v4111_v12, %v1283_v13 }
0x174a   :  { %v1295_v17 = vsel %vm1286_vm1, %v4648_v1, %v1285_v14 }
0x174b   :  { %3486 = vmatmul.mubr.msk.f32.gmra.mrb[14].mxu0 %vm150_vm0, %v1295_v17 }
0x174c   :  { %3494 = vmatprep.mubr.msk.f32.mxu0 %vm4225_vm4, %v4221_v0 }
0x181e   :  { %v1395_v18 = vpop.f32.mrb[14].mxu0 }
0x181f   :  { %v4751_v19 = vadd.f32 %v1395_v18, %v4687_v32  ;;  %v3487_v4 = vpop.f32.mrb[15].mxu0  ;;  %v3965_v32 = vunpack.i.l.bf16 %v3964_v25 }
0x1821   :  { %3286 = vmatmul.mubr.msk.f32.gmra.mrb[14].mxu1 %vm150_vm0, %v4751_v19  ;;  %v3856_v43 = vpack.c.bf16 %v3966_v30, %v3965_v32 }
0x1822   :  { %3509 = vmatprep.mubr.msk.f32.mxu1 %vm4225_vm4, %v4221_v0 }
0x18f4   :  { %v1514_v20 = vpop.f32.mrb[14].mxu1 }
0x18f5   :  { %v4757_v21 = vadd.f32 %v1514_v20, %v1420_v49  ;;  %v1516_v1 = vpop.f32.mrb[15].mxu1 }
0x18f6   :  { %v4760_v24 = vadd.f32 %v1516_v1, %v4710_v40  ;;  %v1528_v40 = vand.u32 1, %v1524_v48 }
0x18f7   :  { %1788 = vrot.lane.b32.xlu1 %v4757_v21, %s4227_s30  ;;  %1547 = vrot.lane.b32.xlu0 %v4757_v21, %s4223_s1  ;;  %s4228_s1 = smov 32  }
0x18f8   :  { %3508 = vmatpush3.msk.msra.mxu1 %vm1288_vm2, %v4760_v24  ;;  %vm4804_vm7 = vcmp.eq.s32.totalorder %v1525_v39, %v1528_v40  ;;  %vm4811_vm9 = vcmp.eq.s32.totalorder %v1526_v52, %v1528_v40  ;;  %vm4819_vm10 = vcmp.eq.s32.totalorder %v1527_v57, %v1528_v40 }
0x18f9   :  { %3936 = vmatprep.subr.bf16.mxu1 %v4224_v6 }
0x18fb   :  { %1794 = vrot.lane.b32.xlu0 %v4757_v21, %s4226_s5 }
0x18ff   :  { %1786 = vrot.lane.b32.xlu0 %v4719_v54, %s4227_s30 }
0x1969   :  { %v1548_v42 = vpop.permute.xlu0 %1547  ;;  %v1789_v47 = vpop.permute.xlu1 %1788 }
0x196a   :  { %3493 = vmatpush3.xpose.msk.msra.mxu0 %vm1549_vm5, %v1548_v42 }
0x196b   :  { %3855 = vmatprep.subr.bf16.mxu0 %v4224_v6 }
0x196d   :  { %3495 = vmatmul.mubr.msk.f32.vlgmr.msra.gmra.mrb[16].mxu0 %vm1549_vm5, %v4721_v61  ;;  %v1795_v58 = vpop.permute.xlu0 %1794 }
0x196e   :  { %3858 = vmatpush3.bf16.xpose.msk.msra.mxu0 %vm4737_vm6, %v3856_v43  ;;  %3497 = vmatprep.mubr.msk.f32.mxu0 %vm4225_vm4, %v4221_v0 }
0x196f   :  { %3522 = vmatprep.subr.mxu0 %v4221_v0 }
0x1971   :  { %3498 = vmatmul.mubr.msk.f32.gmra.mrb[18].mxu0 %vm1549_vm5, %v4719_v54  ;;  %v1787_v45 = vpop.permute.xlu0 %1786 }
0x1972   :  { %3500 = vmatprep.mubr.msk.f32.mxu0 %vm4225_vm4, %v4221_v0 }
0x1975   :  { %3501 = vmatmul.mubr.msk.f32.gmra.mrb[20].mxu0 %vm1549_vm5, %v4757_v21 }
0x1976   :  { %3523 = vmatpush3.xpose.msk.msra.mxu0 %vm1549_vm5, %v1795_v58  ;;  %3524 = vmatprep.mubr.msk.f32.mxu0 %vm4225_vm4, %v4221_v0 }
0x1977   :  { %3859 = vmatprep.subr.bf16.mxu0 %v4224_v6 }
0x1979   :  { %3525 = vmatmul.mubr.msk.f32.vlgmr.msra.gmra.mrb[22].mxu0 %vm1549_vm5, %v1785_v44 }
0x197a   :  { %3527 = vmatprep.mubr.msk.f32.mxu0 %vm4225_vm4, %v4221_v0 }
0x197d   :  { %3528 = vmatmul.mubr.msk.f32.gmra.mrb[24].mxu0 %vm1549_vm5, %v1787_v45 }
0x197e   :  { %3530 = vmatprep.mubr.msk.f32.mxu0 %vm4225_vm4, %v4221_v0 }
0x1981   :  { %3531 = vmatmul.mubr.msk.f32.gmra.mrb[26].mxu0 %vm1549_vm5, %v1789_v47 }
0x1982   :  { %3539 = vmatprep.mubr.msk.f32.mxu0 %vm4225_vm4, %v4221_v0 }
0x1a40   :  { %v1628_v36 = vpop.f32.mrb[16].mxu0 }
0x1a41   :  { %v1642_v41 = vmul.f32 0.25, %v1628_v36  ;;  %v3496_v9 = vpop.f32.mrb[17].mxu0 }
0x1a43   :  { %v1645_v10 = vsel %vm4804_vm7, %v1642_v41, -1e+30 }
0x1a44   :  { %v1633_v15 = vpop.f32.mrb[18].mxu0  ;;  %v1649_v27 = vsel %vm1648_vm8, %v1645_v10, -inf }
0x1a45   :  { %v1643_v46 = vmul.f32 0.25, %v1633_v15  ;;  %1650 = vmax.xlane.f32.xlu0 %v1649_v27  ;;  %v3499_v49 = vpop.f32.mrb[19].mxu0 }
0x1a47   :  { %v1646_v23 = vsel %vm4811_vm9, %v1643_v46, -1e+30 }
0x1a48   :  { %v1638_v26 = vpop.f32.mrb[20].mxu0  ;;  %v1652_v34 = vsel %vm1648_vm8, %v1646_v23, -inf }
0x1a49   :  { %1653 = vmax.xlane.f32.xlu1 %v1652_v34  ;;  %v3502_v56 = vpop.f32.mrb[21].mxu0  ;;  %v1644_v60 = vmul.f32 0.25, %v1638_v26 }
0x1a4b   :  { %v1647_v13 = vsel %vm4819_vm10, %v1644_v60, -1e+30 }
0x1a4c   :  { %v1874_v59 = vpop.f32.mrb[22].mxu0  ;;  %v1656_v18 = vsel %vm1655_vm11, %v1647_v13, -inf }
0x1a4d   :  { %v1888_v62 = vmul.f32 0.25, %v1874_v59  ;;  %v3526_v63 = vpop.f32.mrb[23].mxu0 }
0x1a4f   :  { %v1891_v16 = vsel %vm4804_vm7, %v1888_v62, -1e+30 }
0x1a50   :  { %v1879_v7 = vpop.f32.mrb[24].mxu0  ;;  %v1894_v8 = vsel %vm1648_vm8, %v1891_v16, -inf }
0x1a51   :  { %v1889_v11 = vmul.f32 0.25, %v1879_v7  ;;  %1895 = vmax.xlane.f32.xlu0 %v1894_v8  ;;  %v3529_v12 = vpop.f32.mrb[25].mxu0 }
0x1a53   :  { %v1892_v14 = vsel %vm4811_vm9, %v1889_v11, -1e+30 }
0x1a54   :  { %v1884_v17 = vpop.f32.mrb[26].mxu0  ;;  %v1897_v4 = vsel %vm1648_vm8, %v1892_v14, -inf }
0x1a55   :  { %v1890_v20 = vmul.f32 0.25, %v1884_v17  ;;  %1657 = vmax.xlane.f32.xlu0 %v1656_v18  ;;  %1898 = vmax.xlane.f32.xlu1 %v1897_v4  ;;  %v3532_v1 = vpop.f32.mrb[27].mxu0 }
0x1a57   :  { %v1893_v25 = vsel %vm4819_vm10, %v1890_v20, -1e+30 }
0x1a58   :  { %v1900_v30 = vsel %vm1655_vm11, %v1893_v25, -inf }
0x1a59   :  { %1901 = vmax.xlane.f32.xlu0 %v1900_v30 }
0x1ad2   :  { %v1651_v32 = vpop.xlane.xlu0 %1650 }
0x1ad3   :  { %v1659_v42 = vsub.f32 %v1645_v10, %v1651_v32 }
0x1ad5   :  { %v1662_v43 = vmul.f32 1.442695, %v1659_v42 }
0x1ad6   :  { %v1654_v58 = vpop.xlane.xlu1 %1653 }
0x1ad7   :  { %4112 = vpow2.f32 %v1662_v43  ;;  %v1660_v44 = vsub.f32 %v1646_v23, %v1654_v58 }
0x1ad9   :  { %v1664_v45 = vmul.f32 1.442695, %v1660_v44 }
0x1adb   :  { %4114 = vpow2.f32 %v1664_v45 }
0x1ade   :  { %v1896_v47 = vpop.xlane.xlu0 %1895 }
0x1adf   :  { %v1903_v48 = vsub.f32 %v1891_v16, %v1896_v47 }
0x1ae1   :  { %v4113_v39 = vpop.eup %4112  ;;  %v1906_v40 = vmul.f32 1.442695, %v1903_v48 }
0x1ae2   :  { %v1658_v50 = vpop.xlane.xlu0 %1657  ;;  %v1899_v36 = vpop.xlane.xlu1 %1898  ;;  %v1668_v52 = vsel %vm1648_vm8, %v4113_v39, 0.0 }
0x1ae3   :  { %4116 = vpow2.f32 %v1906_v40  ;;  %v1661_v41 = vsub.f32 %v1647_v13, %v1658_v50  ;;  %v1904_v9 = vsub.f32 %v1892_v14, %v1899_v36  ;;  %1669 = vadd.xlane.f32.xlu1 %v1668_v52 }
0x1ae5   :  { %v4115_v15 = vpop.eup %4114  ;;  %v1666_v10 = vmul.f32 1.442695, %v1661_v41  ;;  %v1908_v27 = vmul.f32 1.442695, %v1904_v9 }
0x1ae6   :  { %v1902_v46 = vpop.xlane.xlu0 %1901  ;;  %v1671_v49 = vsel %vm1648_vm8, %v4115_v15, 0.0 }
0x1ae7   :  { %4118 = vpow2.f32 %v1666_v10  ;;  %v1905_v22 = vsub.f32 %v1893_v25, %v1902_v46  ;;  %1672 = vadd.xlane.f32.xlu0 %v1671_v49 }
0x1ae8   :  { %4120 = vpow2.f32 %v1908_v27 }
0x1ae9   :  { %v1910_v23 = vmul.f32 1.442695, %v1905_v22 }
0x1aeb   :  { %4122 = vpow2.f32 %v1910_v23 }
0x1aed   :  { %v4837_v26 = vpop.eup %4116 }
0x1aee   :  { %v1912_v34 = vsel %vm1648_vm8, %v4837_v26, 0.0 }
0x1aef   :  { %1913 = vadd.xlane.f32.xlu1 %v1912_v34 }
0x1af1   :  { %v4841_v56 = vpop.eup %4118 }
0x1af2   :  { %v4843_v57 = vpop.eup %4120  ;;  %v1674_v59 = vsel %vm1655_vm11, %v4841_v56, 0.0 }
0x1af3   :  { %v1915_v60 = vsel %vm1648_vm8, %v4843_v57, 0.0  ;;  %1675 = vadd.xlane.f32.xlu0 %v1674_v59  ;;  %v1532_v59 = vld [vmem:[#allocation4] sm:$0xff] }
0x1af4   :  { %1916 = vadd.xlane.f32.xlu1 %v1915_v60  ;;  %v1533_v60 = vld [vmem:[#allocation4 + $0x8] sm:$0xff] }
0x1af5   :  { %v4849_v62 = vpop.eup %4122 }
0x1af6   :  { %v1918_v63 = vsel %vm1655_vm11, %v4849_v62, 0.0 }
0x1af7   :  { %1919 = vadd.xlane.f32.xlu0 %v1918_v63 }
0x1b05   :  { %3968 = vrot.lane.b32.xlu1 %v4714_v5, %s4227_s30 }
0x1b09   :  { %3973 = vrot.lane.b32.xlu1 %v4726_v55, %s4228_s1 }
0x1b0d   :  { %2225 = vrot.lane.b32.xlu1 %v4757_v21, %s4228_s1  ;;  %1942 = vrot.lane.b32.xlu0 %v4760_v24, %s4227_s30 }
0x1b11   :  { %2217 = vrot.lane.b32.xlu1 %v4719_v54, %s4229_s12  ;;  %2215 = vrot.lane.b32.xlu0 %v4721_v61, %s4229_s12 }
0x1b15   :  { %2219 = vrot.lane.b32.xlu0 %v4757_v21, %s4229_s12 }
0x1b70   :  { %v1670_v16 = vpop.xlane.xlu1 %1669 }
0x1b71   :  { %4124 = vrcp.f32 %v1670_v16 }
0x1b74   :  { %v1673_v7 = vpop.xlane.xlu0 %1672 }
0x1b75   :  { %4126 = vrcp.f32 %v1673_v7 }
0x1b7b   :  { %v4125_v8 = vpop.eup %4124 }
0x1b7c   :  { %v1680_v11 = vmul.f32 %v4125_v8, %v1670_v16  ;;  %v1914_v12 = vpop.xlane.xlu1 %1913 }
0x1b7d   :  { %4128 = vrcp.f32 %v1914_v12 }
0x1b7e   :  { %v1683_v13 = vsub.f32 2.0, %v1680_v11 }
0x1b7f   :  { %v4127_v14 = vpop.eup %4126 }
0x1b80   :  { %v1686_v17 = vmul.f32 %v4125_v8, %v1683_v13  ;;  %v1681_v18 = vmul.f32 %v4127_v14, %v1673_v7  ;;  %v1676_v4 = vpop.xlane.xlu0 %1675  ;;  %v3866_v7 = vpack.c.bf16 %v1533_v60, %v1532_v59 }
0x1b81   :  { %v1917_v20 = vpop.xlane.xlu1 %1916  ;;  %4130 = vrcp.f32 %v1676_v4 }
0x1b82   :  { %v1689_v1 = vmul.f32 %v4113_v39, %v1686_v17  ;;  %v1684_v25 = vsub.f32 2.0, %v1681_v18  ;;  %4132 = vrcp.f32 %v1917_v20 }
0x1b84   :  { %v1687_v30 = vmul.f32 %v4127_v14, %v1684_v25  ;;  %3510 = vmatmul.mubr.msk.f32.vlgmr.msra.gmra.mrb[16].mxu1 %vm1648_vm8, %v1689_v1  ;;  %v1920_v32 = vpop.xlane.xlu0 %1919 }
0x1b85   :  { %v3969_v42 = vpop.permute.xlu1 %3968  ;;  %4134 = vrcp.f32 %v1920_v32  ;;  %3512 = vmatprep.mubr.msk.f32.mxu1 %vm4225_vm4, %v4221_v0 }
0x1b86   :  { %v1690_v43 = vmul.f32 %v4115_v15, %v1687_v30  ;;  %v3971_v58 = vunpack.i.h.bf16 %v3969_v42  ;;  %v3970_v44 = vunpack.i.l.bf16 %v3969_v42 }
0x1b87   :  { %v4129_v45 = vpop.eup %4128 }
0x1b88   :  { %v1924_v47 = vmul.f32 %v4129_v45, %v1914_v12  ;;  %v3860_v48 = vpack.c.bf16 %v3971_v58, %v3970_v44  ;;  %3513 = vmatmul.mubr.msk.f32.gmra.mrb[18].mxu1 %vm1648_vm8, %v1690_v43  ;;  %v1943_v9 = vpop.permute.xlu0 %1942 }
0x1b89   :  { %3515 = vmatprep.mubr.msk.f32.mxu1 %vm4225_vm4, %v4221_v0  ;;  %v3974_v14 = vpop.permute.xlu1 %3973 }
0x1b8a   :  { %v1927_v39 = vsub.f32 2.0, %v1924_v47  ;;  %3861 = vmatpush3.bf16.msra.mxu0 %v3860_v48  ;;  %3938 = vmatpush3.bf16.msra.mxu1 %v3860_v48  ;;  %v3976_v18 = vunpack.i.h.bf16 %v3974_v14 }
0x1b8b   :  { %v4131_v40 = vpop.eup %4130  ;;  %3537 = vmatprep.subr.mxu0 %v4221_v0  ;;  %3937 = vmatprep.subr.mxu1 %v4221_v0 }
0x1b8c   :  { %v4133_v50 = vpop.eup %4132  ;;  %v1930_v36 = vmul.f32 %v4129_v45, %v1927_v39  ;;  %v1682_v52 = vmul.f32 %v4131_v40, %v1676_v4  ;;  %v3975_v4 = vunpack.i.l.bf16 %v3974_v14  ;;  %v2216_v47 = vpop.permute.xlu0 %2215 }
0x1b8d   :  { %v1925_v41 = vmul.f32 %v4133_v50, %v1917_v20  ;;  %v2226_v45 = vpop.permute.xlu1 %2225 }
0x1b8e   :  { %v1933_v15 = vmul.f32 %v4837_v26, %v1930_v36  ;;  %v1685_v10 = vsub.f32 2.0, %v1682_v52  ;;  %3538 = vmatpush3.msk.msra.mxu0 %vm1288_vm2, %v1943_v9  ;;  %3939 = vmatpush3.msk.msra.mxu1 %vm1288_vm2, %v1943_v9  ;;  %v3869_v20 = vpack.c.bf16 %v3976_v18, %v3975_v4 }
0x1b8f   :  { %v4135_v27 = vpop.eup %4134  ;;  %v1928_v46 = vsub.f32 2.0, %v1925_v41  ;;  %3865 = vmatprep.subr.bf16.mxu1 %v4224_v6  ;;  %3862 = vmatprep.subr.bf16.mxu0 %v4224_v6 }
0x1b90   :  { %v1688_v49 = vmul.f32 %v4131_v40, %v1685_v10  ;;  %v1926_v22 = vmul.f32 %v4135_v27, %v1920_v32  ;;  %3540 = vmatmul.mubr.msk.f32.vlgmr.msra.gmra.mrb[28].mxu0 %vm1648_vm8, %v1933_v15  ;;  %v2220_v39 = vpop.permute.xlu0 %2219 }
0x1b91   :  { %v1931_v23 = vmul.f32 %v4133_v50, %v1928_v46  ;;  %3542 = vmatprep.mubr.msk.f32.mxu0 %vm4225_vm4, %v4221_v0  ;;  %v2218_v48 = vpop.permute.xlu1 %2217 }
0x1b92   :  { %v1691_v26 = vmul.f32 %v4841_v56, %v1688_v49  ;;  %v1929_v34 = vsub.f32 2.0, %v1926_v22  ;;  %v1534_v56 = vld [vmem:[#allocation4 + $0x10] sm:$0xff] }
0x1b93   :  { %v1934_v63 = vmul.f32 %v4843_v57, %v1931_v23  ;;  %v1535_v57 = vld [vmem:[#allocation4 + $0x18] sm:$0xff] }
0x1b94   :  { %v1932_v16 = vmul.f32 %v4135_v27, %v1929_v34  ;;  %3516 = vmatmul.mubr.msk.f32.gmra.mrb[20].mxu1 %vm1648_vm8, %v1691_v26  ;;  %v3863_v11 = vpack.c.bf16 %v1535_v57, %v1534_v56 }
0x1b95   :  { %3543 = vmatmul.mubr.msk.f32.gmra.mrb[30].mxu0 %vm1648_vm8, %v1934_v63  ;;  %3545 = vmatprep.mubr.msk.f32.mxu1 %vm4225_vm4, %v4221_v0 }
0x1b96   :  { %v1935_v8 = vmul.f32 %v4849_v62, %v1932_v16  ;;  %3552 = vmatprep.mubr.msk.f32.mxu0 %vm4225_vm4, %v4221_v0  ;;  %3864 = vmatpush3.bf16.msra.mxu0 %v3863_v11 }
0x1b97   :  { %3868 = vmatprep.subr.bf16.mxu0 %v4224_v6 }
0x1b98   :  { %3546 = vmatmul.mubr.msk.f32.vlgmr.msra.gmra.mrb[22].mxu1 %vm1648_vm8, %v1935_v8 }
0x1b99   :  { %3867 = vmatpush3.bf16.msra.mxu1 %v3866_v7  ;;  %3565 = vmatprep.mubr.msk.f32.mxu1 %vm4225_vm4, %v4221_v0 }
0x1b9a   :  { %3872 = vmatprep.subr.bf16.mxu1 %v4224_v6 }
0x1c57   :  { %v1770_v12 = vpop.f32.mrb[16].mxu1 }
0x1c58   :  { %v3511_v13 = vpop.f32.mrb[17].mxu1  ;;  %3566 = vmatmul.mubr.msk.f32.vlgmr.msra.gmra.mrb[24].mxu1 %vm1549_vm5, %v1770_v12 }
0x1c59   :  { %3568 = vmatprep.mubr.msk.f32.mxu1 %vm4225_vm4, %v4221_v0 }
0x1c5b   :  { %v1775_v62 = vpop.f32.mrb[18].mxu1 }
0x1c5c   :  { %v3514_v17 = vpop.f32.mrb[19].mxu1  ;;  %3569 = vmatmul.mubr.msk.f32.gmra.mrb[26].mxu1 %vm1549_vm5, %v1775_v62 }
0x1c5d   :  { %3571 = vmatprep.mubr.msk.f32.mxu1 %vm4225_vm4, %v4221_v0 }
0x1c63   :  { %v2023_v1 = vpop.f32.mrb[28].mxu0 }
0x1c64   :  { %v3541_v25 = vpop.f32.mrb[29].mxu0  ;;  %3553 = vmatmul.mubr.msk.f32.vlgmr.msra.gmra.mrb[32].mxu0 %vm1549_vm5, %v2023_v1 }
0x1c65   :  { %3871 = vmatpush3.bf16.xpose.msk.msra.mxu0 %vm4737_vm6, %v3869_v20  ;;  %3555 = vmatprep.mubr.msk.f32.mxu0 %vm4225_vm4, %v4221_v0 }
0x1c66   :  { %3578 = vmatprep.subr.mxu0 %v4221_v0 }
0x1c67   :  { %v1780_v30 = vpop.f32.mrb[20].mxu1 }
0x1c68   :  { %v2028_v32 = vpop.f32.mrb[30].mxu0  ;;  %v3517_v42 = vpop.f32.mrb[21].mxu1  ;;  %3572 = vmatmul.mubr.msk.f32.gmra.mrb[28].mxu1 %vm1549_vm5, %v1780_v30 }
0x1c69   :  { %v3544_v43 = vpop.f32.mrb[31].mxu0  ;;  %3556 = vmatmul.mubr.msk.f32.gmra.mrb[34].mxu0 %vm1549_vm5, %v2028_v32  ;;  %3595 = vmatprep.mubr.msk.f32.mxu1 %vm4225_vm4, %v4221_v0 }
0x1c6a   :  { %3558 = vmatprep.mubr.msk.f32.mxu0 %vm4225_vm4, %v4221_v0 }
0x1c6b   :  { %v2033_v58 = vpop.f32.mrb[22].mxu1 }
0x1c6c   :  { %v3547_v44 = vpop.f32.mrb[23].mxu1 }
0x1c6d   :  { %3559 = vmatmul.mubr.msk.f32.gmra.mrb[36].mxu0 %vm1549_vm5, %v2033_v58 }
0x1c6e   :  { %3579 = vmatpush3.xpose.msk.msra.mxu0 %vm1549_vm5, %v2226_v45  ;;  %3580 = vmatprep.mubr.msk.f32.mxu0 %vm4225_vm4, %v4221_v0 }
0x1c6f   :  { %3875 = vmatprep.subr.bf16.mxu0 %v4224_v6 }
0x1c71   :  { %3581 = vmatmul.mubr.msk.f32.vlgmr.msra.gmra.mrb[38].mxu0 %vm1549_vm5, %v2216_v47 }
0x1c72   :  { %3583 = vmatprep.mubr.msk.f32.mxu0 %vm4225_vm4, %v4221_v0 }
0x1c75   :  { %3584 = vmatmul.mubr.msk.f32.gmra.mrb[40].mxu0 %vm1549_vm5, %v2218_v48 }
0x1c76   :  { %3586 = vmatprep.mubr.msk.f32.mxu0 %vm4225_vm4, %v4221_v0 }
0x1c79   :  { %3587 = vmatmul.mubr.msk.f32.gmra.mrb[42].mxu0 %vm1549_vm5, %v2220_v39 }
0x1c7a   :  { %3608 = vmatprep.mubr.msk.f32.mxu0 %vm4225_vm4, %v4221_v0 }
0x1d2b   :  { %v2201_v40 = vpop.f32.mrb[24].mxu1 }
0x1d2c   :  { %v3567_v50 = vpop.f32.mrb[25].mxu1 }
0x1d2d   :  { %v1536_v50 = vld [vmem:[#allocation4 + $0x20] sm:$0xff] }
0x1d2f   :  { %v2206_v36 = vpop.f32.mrb[26].mxu1 }
0x1d30   :  { %v3570_v52 = vpop.f32.mrb[27].mxu1 }
0x1d37   :  { %v2112_v41 = vpop.f32.mrb[32].mxu0 }
0x1d38   :  { %v4927_v9 = vadd.f32 %v2201_v40, %v2112_v41  ;;  %v3554_v15 = vpop.f32.mrb[33].mxu0 }
0x1d3b   :  { %v2211_v10 = vpop.f32.mrb[28].mxu1 }
0x1d3c   :  { %v2117_v27 = vpop.f32.mrb[34].mxu0  ;;  %v3573_v46 = vpop.f32.mrb[29].mxu1 }
0x1d3d   :  { %v4929_v49 = vadd.f32 %v2206_v36, %v2117_v27  ;;  %v3557_v22 = vpop.f32.mrb[35].mxu0  ;;  %v1537_v36 = vld [vmem:[#allocation4 + $0x28] sm:$0xff] }
0x1d3e   :  { %v3876_v52 = vpack.c.bf16 %v1537_v36, %v1536_v50 }
0x1d40   :  { %v2122_v23 = vpop.f32.mrb[36].mxu0  ;;  %3877 = vmatpush3.bf16.msra.mxu0 %v3876_v52 }
0x1d41   :  { %v4931_v26 = vadd.f32 %v2211_v10, %v2122_v23  ;;  %v3560_v34 = vpop.f32.mrb[37].mxu0  ;;  %3882 = vmatprep.subr.bf16.mxu0 %v4224_v6 }
0x1d44   :  { %v2305_v59 = vpop.f32.mrb[38].mxu0 }
0x1d45   :  { %v2319_v60 = vmul.f32 0.25, %v2305_v59  ;;  %v3582_v63 = vpop.f32.mrb[39].mxu0 }
0x1d47   :  { %v2322_v16 = vsel %vm4804_vm7, %v2319_v60, -1e+30 }
0x1d48   :  { %v2310_v7 = vpop.f32.mrb[40].mxu0  ;;  %v2325_v8 = vsel %vm1648_vm8, %v2322_v16, -inf }
0x1d49   :  { %v2320_v56 = vmul.f32 0.25, %v2310_v7  ;;  %2326 = vmax.xlane.f32.xlu1 %v2325_v8  ;;  %v3585_v57 = vpop.f32.mrb[41].mxu0 }
0x1d4b   :  { %v2323_v11 = vsel %vm4811_vm9, %v2320_v56, -1e+30 }
0x1d4c   :  { %v2315_v12 = vpop.f32.mrb[42].mxu0  ;;  %v2328_v13 = vsel %vm1648_vm8, %v2323_v11, -inf }
0x1d4d   :  { %v2321_v62 = vmul.f32 0.25, %v2315_v12  ;;  %2329 = vmax.xlane.f32.xlu0 %v2328_v13  ;;  %v3588_v14 = vpop.f32.mrb[43].mxu0 }
0x1d4f   :  { %v2324_v17 = vsel %vm4819_vm10, %v2321_v62, -1e+30 }
0x1d50   :  { %v2331_v18 = vsel %vm1655_vm11, %v2324_v17, -inf }
0x1d51   :  { %2332 = vmax.xlane.f32.xlu0 %v2331_v18 }
0x1dd6   :  { %v2327_v4 = vpop.xlane.xlu1 %2326 }
0x1dd7   :  { %v2334_v20 = vsub.f32 %v2322_v16, %v2327_v4 }
0x1dd9   :  { %v2337_v1 = vmul.f32 1.442695, %v2334_v20 }
0x1dda   :  { %v2330_v25 = vpop.xlane.xlu0 %2329 }
0x1ddb   :  { %4136 = vpow2.f32 %v2337_v1  ;;  %v2335_v30 = vsub.f32 %v2323_v11, %v2330_v25 }
0x1ddd   :  { %v2339_v32 = vmul.f32 1.442695, %v2335_v30 }
0x1dde   :  { %v2333_v45 = vpop.xlane.xlu0 %2332 }
0x1ddf   :  { %4138 = vpow2.f32 %v2339_v32  ;;  %v2336_v47 = vsub.f32 %v2324_v17, %v2333_v45 }
0x1de1   :  { %v2341_v48 = vmul.f32 1.442695, %v2336_v47 }
0x1de3   :  { %4140 = vpow2.f32 %v2341_v48 }
0x1de5   :  { %v4137_v42 = vpop.eup %4136 }
0x1de6   :  { %v2343_v43 = vsel %vm1648_vm8, %v4137_v42, 0.0 }
0x1de7   :  { %2344 = vadd.xlane.f32.xlu1 %v2343_v43 }
0x1de9   :  { %v4139_v58 = vpop.eup %4138 }
0x1dea   :  { %v2346_v44 = vsel %vm1648_vm8, %v4139_v58, 0.0 }
0x1deb   :  { %2347 = vadd.xlane.f32.xlu0 %v2346_v44 }
0x1ded   :  { %v4141_v39 = vpop.eup %4140 }
0x1dee   :  { %v2349_v40 = vsel %vm1655_vm11, %v4141_v39, 0.0 }
0x1df8   :  { %2371 = vrot.lane.b32.xlu1 %v4760_v24, %s4229_s12 }
0x1e01   :  { %3978 = vrot.lane.b32.xlu0 %v4714_v5, %s4229_s12 }
0x1e05   :  { %2568 = vrot.lane.b32.xlu0 %v4757_v21, %s4230_s13 }
0x1e09   :  { %2560 = vrot.lane.b32.xlu0 %v4719_v54, %s4231_s14 }
0x1e1c   :  { %2350 = vadd.xlane.f32.xlu1 %v2349_v40 }
0x1e2d   :  { %3983 = vrot.lane.b32.xlu1 %v4726_v55, %s4230_s13 }
0x1e31   :  { %2558 = vrot.lane.b32.xlu1 %v4721_v61, %s4231_s14 }
0x1e35   :  { %2562 = vrot.lane.b32.xlu1 %v4757_v21, %s4231_s14 }
0x1e74   :  { %v2345_v54 = vpop.xlane.xlu1 %2344 }
0x1e75   :  { %4142 = vrcp.f32 %v2345_v54 }
0x1e78   :  { %v2348_v41 = vpop.xlane.xlu0 %2347  ;;  %v2372_v34 = vpop.permute.xlu1 %2371 }
0x1e79   :  { %4144 = vrcp.f32 %v2348_v41 }
0x1e7c   :  { %v3979_v15 = vpop.permute.xlu0 %3978 }
0x1e7d   :  { %v3981_v10 = vunpack.i.h.bf16 %v3979_v15  ;;  %v3980_v27 = vunpack.i.l.bf16 %v3979_v15 }
0x1e7f   :  { %v4143_v55 = vpop.eup %4142  ;;  %v3873_v46 = vpack.c.bf16 %v3981_v10, %v3980_v27 }
0x1e80   :  { %v2355_v22 = vmul.f32 %v4143_v55, %v2345_v54  ;;  %v2569_v17 = vpop.permute.xlu0 %2568 }
0x1e81   :  { %3874 = vmatpush3.bf16.msra.mxu1 %v3873_v46 }
0x1e82   :  { %v2358_v61 = vsub.f32 2.0, %v2355_v22  ;;  %3593 = vmatprep.subr.mxu1 %v4221_v0 }
0x1e83   :  { %v4145_v21 = vpop.eup %4144 }
0x1e84   :  { %v2361_v23 = vmul.f32 %v4143_v55, %v2358_v61  ;;  %v2356_v59 = vmul.f32 %v4145_v21, %v2348_v41  ;;  %v2561_v2 = vpop.permute.xlu0 %2560 }
0x1e85   :  { %3594 = vmatpush3.msk.msra.mxu1 %vm1288_vm2, %v2372_v34 }
0x1e86   :  { %v2364_v60 = vmul.f32 %v4137_v42, %v2361_v23  ;;  %v2359_v63 = vsub.f32 2.0, %v2356_v59  ;;  %3878 = vmatprep.subr.bf16.mxu1 %v4224_v6 }
0x1e88   :  { %v2362_v16 = vmul.f32 %v4145_v21, %v2359_v63  ;;  %3596 = vmatmul.mubr.msk.f32.vlgmr.msra.gmra.mrb[30].mxu1 %vm1648_vm8, %v2364_v60 }
0x1e89   :  { %3598 = vmatprep.mubr.msk.f32.mxu1 %vm4225_vm4, %v4221_v0 }
0x1e8a   :  { %v2365_v7 = vmul.f32 %v4139_v58, %v2362_v16 }
0x1e8c   :  { %3599 = vmatmul.mubr.msk.f32.gmra.mrb[32].mxu1 %vm1648_vm8, %v2365_v7 }
0x1e8d   :  { %3601 = vmatprep.mubr.msk.f32.mxu1 %vm4225_vm4, %v4221_v0 }
0x1ea9   :  { %v2351_v8 = vpop.xlane.xlu1 %2350 }
0x1eaa   :  { %4146 = vrcp.f32 %v2351_v8 }
0x1ead   :  { %v3984_v56 = vpop.permute.xlu1 %3983 }
0x1eae   :  { %v3986_v57 = vunpack.i.h.bf16 %v3984_v56  ;;  %v3985_v11 = vunpack.i.l.bf16 %v3984_v56 }
0x1eb0   :  { %v3879_v12 = vpack.c.bf16 %v3986_v57, %v3985_v11 }
0x1eb1   :  { %v2559_v20 = vpop.permute.xlu1 %2558 }
0x1eb2   :  { %3881 = vmatpush3.bf16.xpose.msk.msra.mxu1 %vm4737_vm6, %v3879_v12 }
0x1eb3   :  { %3621 = vmatprep.subr.mxu1 %v4221_v0 }
0x1eb4   :  { %v4147_v13 = vpop.eup %4146 }
0x1eb5   :  { %v2357_v62 = vmul.f32 %v4147_v13, %v2351_v8  ;;  %v2563_v1 = vpop.permute.xlu1 %2562 }
0x1eb7   :  { %v2360_v14 = vsub.f32 2.0, %v2357_v62 }
0x1eb9   :  { %v2363_v18 = vmul.f32 %v4147_v13, %v2360_v14  ;;  %v1539_v13 = vld [vmem:[#allocation4 + $0x38] sm:$0xff] }
0x1eba   :  { %3622 = vmatpush3.xpose.msk.msra.mxu1 %vm1549_vm5, %v2569_v17 }
0x1ebb   :  { %v2366_v4 = vmul.f32 %v4141_v39, %v2363_v18  ;;  %3885 = vmatprep.subr.bf16.mxu1 %v4224_v6 }
0x1ebd   :  { %3602 = vmatmul.mubr.msk.f32.gmra.mrb[34].mxu1 %vm1648_vm8, %v2366_v4 }
0x1ebe   :  { %3623 = vmatprep.mubr.msk.f32.mxu1 %vm4225_vm4, %v4221_v0 }
0x1ec1   :  { %3624 = vmatmul.mubr.msk.f32.vlgmr.msra.gmra.mrb[36].mxu1 %vm1549_vm5, %v2559_v20 }
0x1ec2   :  { %3626 = vmatprep.mubr.msk.f32.mxu1 %vm4225_vm4, %v4221_v0 }
0x1ec5   :  { %3627 = vmatmul.mubr.msk.f32.gmra.mrb[38].mxu1 %vm1549_vm5, %v2561_v2 }
0x1ec6   :  { %3629 = vmatprep.mubr.msk.f32.mxu1 %vm4225_vm4, %v4221_v0 }
0x1ec9   :  { %3630 = vmatmul.mubr.msk.f32.gmra.mrb[40].mxu1 %vm1549_vm5, %v2563_v1 }
0x1eca   :  { %3651 = vmatprep.mubr.msk.f32.mxu1 %vm4225_vm4, %v4221_v0 }
0x1f5b   :  { %v2452_v6 = vpop.f32.mrb[30].mxu1 }
0x1f5c   :  { %v3597_v25 = vpop.f32.mrb[31].mxu1  ;;  %3609 = vmatmul.mubr.msk.f32.vlgmr.msra.gmra.mrb[44].mxu0 %vm1549_vm5, %v2452_v6 }
0x1f5d   :  { %3611 = vmatprep.mubr.msk.f32.mxu0 %vm4225_vm4, %v4221_v0 }
0x1f5f   :  { %v2457_v30 = vpop.f32.mrb[32].mxu1 }
0x1f60   :  { %v3600_v32 = vpop.f32.mrb[33].mxu1  ;;  %3612 = vmatmul.mubr.msk.f32.gmra.mrb[46].mxu0 %vm1549_vm5, %v2457_v30 }
0x1f61   :  { %3614 = vmatprep.mubr.msk.f32.mxu0 %vm4225_vm4, %v4221_v0 }
0x1f90   :  { %v2462_v42 = vpop.f32.mrb[34].mxu1 }
0x1f91   :  { %v3603_v43 = vpop.f32.mrb[35].mxu1  ;;  %3615 = vmatmul.mubr.msk.f32.gmra.mrb[48].mxu0 %vm1549_vm5, %v2462_v42 }
0x1f92   :  { %3638 = vmatprep.mubr.msk.f32.mxu0 %vm4225_vm4, %v4221_v0 }
0x1f94   :  { %v2648_v58 = vpop.f32.mrb[36].mxu1 }
0x1f95   :  { %v2662_v44 = vmul.f32 0.25, %v2648_v58  ;;  %v3625_v45 = vpop.f32.mrb[37].mxu1 }
0x1f97   :  { %v2665_v47 = vsel %vm4804_vm7, %v2662_v44, -1e+30 }
0x1f98   :  { %v2653_v48 = vpop.f32.mrb[38].mxu1  ;;  %v2668_v39 = vsel %vm1648_vm8, %v2665_v47, -inf }
0x1f99   :  { %v2663_v40 = vmul.f32 0.25, %v2653_v48  ;;  %2669 = vmax.xlane.f32.xlu0 %v2668_v39  ;;  %v3628_v50 = vpop.f32.mrb[39].mxu1 }
0x1f9b   :  { %v2666_v36 = vsel %vm4811_vm9, %v2663_v40, -1e+30 }
0x1f9c   :  { %v2658_v52 = vpop.f32.mrb[40].mxu1  ;;  %v2671_v54 = vsel %vm1648_vm8, %v2666_v36, -inf }
0x1f9d   :  { %v2664_v41 = vmul.f32 0.25, %v2658_v52  ;;  %2672 = vmax.xlane.f32.xlu1 %v2671_v54  ;;  %v3631_v15 = vpop.f32.mrb[41].mxu1 }
0x1f9f   :  { %v2667_v10 = vsel %vm4819_vm10, %v2664_v41, -1e+30 }
0x1fa0   :  { %v2674_v51 = vsel %vm1655_vm11, %v2667_v10, -inf }
0x1fa1   :  { %2675 = vmax.xlane.f32.xlu0 %v2674_v51 }
0x2026   :  { %v2670_v27 = vpop.xlane.xlu0 %2669 }
0x2027   :  { %v2677_v55 = vsub.f32 %v2665_v47, %v2670_v27 }
0x2029   :  { %v2680_v46 = vmul.f32 1.442695, %v2677_v55  ;;  %v5036_v55 = vld [vmem:[%s5252_s10] sm:$0xff] }
0x202a   :  { %v2673_v22 = vpop.xlane.xlu1 %2672 }
0x202b   :  { %4148 = vpow2.f32 %v2680_v46  ;;  %v2678_v61 = vsub.f32 %v2666_v36, %v2673_v22  ;;  %v2904_v46 = vrot.slane %v5036_v55, %v4432_v37 }
0x202d   :  { %v2682_v53 = vmul.f32 1.442695, %v2678_v61 }
0x202e   :  { %v2676_v21 = vpop.xlane.xlu0 %2675 }
0x202f   :  { %4150 = vpow2.f32 %v2682_v53  ;;  %v2679_v23 = vsub.f32 %v2667_v10, %v2676_v21  ;;  %v2541_v34 = vpop.f32.mrb[44].mxu0 }
0x2030   :  { %v5003_v59 = vadd.f32 %v2541_v34, %v4927_v9  ;;  %v3610_v60 = vpop.f32.mrb[45].mxu0 }
0x2031   :  { %v2684_v3 = vmul.f32 1.442695, %v2679_v23 }
0x2033   :  { %4152 = vpow2.f32 %v2684_v3  ;;  %v2546_v63 = vpop.f32.mrb[46].mxu0 }
0x2034   :  { %v5006_v16 = vadd.f32 %v2546_v63, %v4929_v49  ;;  %v3613_v7 = vpop.f32.mrb[47].mxu0  ;;  %v1538_v49 = vld [vmem:[#allocation4 + $0x30] sm:$0xff] }
0x2035   :  { %v4149_v8 = vpop.eup %4148  ;;  %v3886_v62 = vpack.c.bf16 %v1539_v13, %v1538_v49 }
0x2036   :  { %v2686_v56 = vsel %vm1648_vm8, %v4149_v8, 0.0 }
0x2037   :  { %2687 = vadd.xlane.f32.xlu0 %v2686_v56  ;;  %3887 = vmatpush3.bf16.msra.mxu1 %v3886_v62 }
0x2039   :  { %v4151_v57 = vpop.eup %4150 }
0x203a   :  { %v2689_v11 = vsel %vm1648_vm8, %v4151_v57, 0.0 }
0x203b   :  { %2690 = vadd.xlane.f32.xlu1 %v2689_v11 }
0x203d   :  { %v4153_v12 = vpop.eup %4152 }
0x203e   :  { %v2692_v9 = vsel %vm1655_vm11, %v4153_v12, 0.0 }
0x203f   :  { %2693 = vadd.xlane.f32.xlu0 %v2692_v9 }
0x204c   :  { %3988 = vrot.lane.b32.xlu1 %v4714_v5, %s4231_s14 }
0x2055   :  { %2714 = vrot.lane.b32.xlu0 %v4760_v24, %s4231_s14 }
0x2064   :  { %v2551_v14 = vpop.f32.mrb[48].mxu0 }
0x2065   :  { %v2557_v17 = vadd.f32 %v2551_v14, %v4931_v26  ;;  %v3616_v18 = vpop.f32.mrb[49].mxu0 }
0x20c4   :  { %v2688_v4 = vpop.xlane.xlu0 %2687 }
0x20c5   :  { %4154 = vrcp.f32 %v2688_v4 }
0x20c8   :  { %v2691_v20 = vpop.xlane.xlu1 %2690 }
0x20c9   :  { %4156 = vrcp.f32 %v2691_v20 }
0x20cc   :  { %v3989_v2 = vpop.permute.xlu1 %3988  ;;  %v2694_v1 = vpop.xlane.xlu0 %2693 }
0x20cd   :  { %v3991_v6 = vunpack.i.h.bf16 %v3989_v2  ;;  %v3990_v25 = vunpack.i.l.bf16 %v3989_v2  ;;  %4158 = vrcp.f32 %v2694_v1 }
0x20cf   :  { %v4155_v5 = vpop.eup %4154  ;;  %v3883_v30 = vpack.c.bf16 %v3991_v6, %v3990_v25 }
0x20d0   :  { %v2698_v24 = vmul.f32 %v4155_v5, %v2688_v4  ;;  %v2715_v58 = vpop.permute.xlu0 %2714 }
0x20d1   :  { %3884 = vmatpush3.bf16.msra.mxu0 %v3883_v30  ;;  %v2969_v30 = vld [vmem:[%s5249_s7 + $0x18] sm:$0xff] }
0x20d2   :  { %v2701_v32 = vsub.f32 2.0, %v2698_v24  ;;  %3636 = vmatprep.subr.mxu0 %v4221_v0 }
0x20d3   :  { %v4157_v42 = vpop.eup %4156 }
0x20d4   :  { %v2704_v43 = vmul.f32 %v4155_v5, %v2701_v32  ;;  %v2699_v26 = vmul.f32 %v4157_v42, %v2691_v20  ;;  %v2967_v5 = vld [vmem:[%s5249_s7 + $0x8] sm:$0xff]  ;;  %v2966_v32 = vld [vmem:[%s5249_s7] sm:$0xff] }
0x20d5   :  { %3637 = vmatpush3.msk.msra.mxu0 %vm1288_vm2, %v2715_v58  ;;  %v3888_v24 = vpack.c.bf16 %v2969_v30, %v2967_v5  ;;  %v2973_v58 = vld [vmem:[%s5249_s7 + $0x38] sm:$0xff] }
0x20d6   :  { %v2707_v44 = vmul.f32 %v4149_v8, %v2704_v43  ;;  %v2702_v45 = vsub.f32 2.0, %v2699_v26  ;;  %v2971_v26 = vld [vmem:[%s5249_s7 + $0x28] sm:$0xff]  ;;  %v3119_v5 = vld [vmem:[%s5251_s9 + $0xd8] sm:$0xff] }
0x20d7   :  { %v4159_v47 = vpop.eup %4158  ;;  %3889 = vmatprep.subr.bf16.mxu0 %v3888_v24 }
0x20d8   :  { %v2705_v48 = vmul.f32 %v4157_v42, %v2702_v45  ;;  %v2700_v39 = vmul.f32 %v4159_v47, %v2694_v1  ;;  %3639 = vmatmul.mubr.msk.f32.vlgmr.msra.gmra.mrb[50].mxu0 %vm1648_vm8, %v2707_v44  ;;  %v2968_v42 = vld [vmem:[%s5249_s7 + $0x10] sm:$0xff]  ;;  %v3892_v44 = vpack.c.bf16 %v2973_v58, %v2971_v26  ;;  %v2970_v45 = vld [vmem:[%s5249_s7 + $0x20] sm:$0xff]  ;;  %v3121_v26 = vld [vmem:[%s5251_s9 + $0xe8] sm:$0xff] }
0x20d9   :  { %3641 = vmatprep.mubr.msk.f32.mxu0 %vm4225_vm4, %v4221_v0  ;;  %v3890_v43 = vpack.c.bf16 %v2968_v42, %v2966_v32  ;;  %v3102_v32 = vld [vmem:[%s5251_s9 + $0x50] sm:$0xff]  ;;  %v3103_v42 = vld [vmem:[%s5251_s9 + $0x58] sm:$0xff] }
0x20da   :  { %v2708_v40 = vmul.f32 %v4151_v57, %v2705_v48  ;;  %v2703_v50 = vsub.f32 2.0, %v2700_v39  ;;  %v2975_v39 = vld [vmem:[%s5249_s7 + $0x48] sm:$0xff]  ;;  %v3926_v58 = vpack.c.bf16 %v3103_v42, %v3102_v32  ;;  %v3126_v32 = vsub.s32 4, %v4414_v28 }
0x20db   :  { %3891 = vmatpush1.bf16.msra.mxu0 %v3890_v43  ;;  %v3120_v43 = vld [vmem:[%s5251_s9 + $0xe0] sm:$0xff] }
0x20dc   :  { %v2706_v36 = vmul.f32 %v4159_v47, %v2703_v50  ;;  %3642 = vmatmul.mubr.msk.f32.gmra.mrb[52].mxu0 %vm1648_vm8, %v2708_v40  ;;  %v2972_v47 = vld [vmem:[%s5249_s7 + $0x30] sm:$0xff]  ;;  %3893 = vmatprep.subr.bf16.mxu0 %v3892_v44  ;;  %v2977_v40 = vld [vmem:[%s5249_s7 + $0x58] sm:$0xff]  ;;  %v3928_v44 = vpack.c.bf16 %v3121_v26, %v3120_v43  ;;  %v3127_v26 = vrot.slane %v5036_v55, %v3126_v32 }
0x20dd   :  { %3644 = vmatprep.mubr.msk.f32.mxu0 %vm4225_vm4, %v4221_v0  ;;  %v3894_v48 = vpack.c.bf16 %v2972_v47, %v2970_v45  ;;  %v3896_v50 = vpack.c.bf16 %v2977_v40, %v2975_v39 }
0x20de   :  { %v2709_v52 = vmul.f32 %v4153_v12, %v2706_v36  ;;  %v2974_v36 = vld [vmem:[%s5249_s7 + $0x40] sm:$0xff] }
0x20df   :  { %3895 = vmatpush1.bf16.msra.mxu0 %v3894_v48 }
0x20e0   :  { %3645 = vmatmul.mubr.msk.f32.gmra.mrb[54].mxu0 %vm1648_vm8, %v2709_v52  ;;  %v2976_v52 = vld [vmem:[%s5249_s7 + $0x50] sm:$0xff]  ;;  %3897 = vmatprep.subr.bf16.mxu0 %v3896_v50 }
0x20e1   :  { %3067 = vmatprep.mubr.f32.mxu0 %v4221_v0 }
0x21ab   :  { %v2795_v54 = vpop.f32.mrb[50].mxu0 }
0x21ac   :  { %v3640_v41 = vpop.f32.mrb[51].mxu0  ;;  %3652 = vmatmul.mubr.msk.f32.vlgmr.msra.gmra.mrb[42].mxu1 %vm1549_vm5, %v2795_v54  ;;  %v3898_v54 = vpack.c.bf16 %v2976_v52, %v2974_v36 }
0x21ad   :  { %3654 = vmatprep.mubr.msk.f32.mxu1 %vm4225_vm4, %v4221_v0  ;;  %v2979_v41 = vld [vmem:[%s5249_s7 + $0x68] sm:$0xff] }
0x21ae   :  { %3899 = vmatpush1.bf16.msra.mxu0 %v3898_v54 }
0x21af   :  { %v2800_v15 = vpop.f32.mrb[52].mxu0 }
0x21b0   :  { %v3643_v10 = vpop.f32.mrb[53].mxu0  ;;  %3655 = vmatmul.mubr.msk.f32.gmra.mrb[44].mxu1 %vm1549_vm5, %v2800_v15  ;;  %v2981_v15 = vld [vmem:[%s5249_s7 + $0x78] sm:$0xff] }
0x21b1   :  { %3657 = vmatprep.mubr.msk.f32.mxu1 %vm4225_vm4, %v4221_v0  ;;  %v3900_v10 = vpack.c.bf16 %v2981_v15, %v2979_v41  ;;  %v2955_v41 = vrot.slane %v5036_v55, %v92_v29 }
0x21b3   :  { %v2805_v51 = vpop.f32.mrb[54].mxu0  ;;  %3901 = vmatprep.subr.bf16.mxu0 %v3900_v10  ;;  %v2962_v10 = vrot.slane %v5036_v55, %v116_v31 }
0x21b4   :  { %v3646_v27 = vpop.f32.mrb[55].mxu0  ;;  %3658 = vmatmul.mubr.msk.f32.gmra.mrb[46].mxu1 %vm1549_vm5, %v2805_v51  ;;  %v2978_v51 = vld [vmem:[%s5249_s7 + $0x60] sm:$0xff] }
0x21b5   :  { %v2980_v27 = vld [vmem:[%s5249_s7 + $0x70] sm:$0xff] }
0x227f   :  { %v2884_v22 = vpop.f32.mrb[42].mxu1 }
0x2280   :  { %v2898_v61 = vadd.f32 %v2884_v22, %v5003_v59  ;;  %v3653_v53 = vpop.f32.mrb[43].mxu1  ;;  %v3108_v22 = vld [vmem:[%s5251_s9 + $0x80] sm:$0xff] }
0x2281   :  { %v3092_v53 = vld [vmem:[%s5251_s9] sm:$0xff] }
0x2282   :  { %v2905_v21 = vadd.f32 %v2904_v46, %v2898_v61  ;;  %v3109_v61 = vld [vmem:[%s5251_s9 + $0x88] sm:$0xff] }
0x2283   :  { %v2889_v23 = vpop.f32.mrb[44].mxu1 }
0x2284   :  { %v2899_v34 = vadd.f32 %v2889_v23, %v5006_v16  ;;  %v3656_v60 = vpop.f32.mrb[45].mxu1  ;;  %v2908_v3 = vadd.f32 %v2905_v21, %v4691_v35  ;;  %v3904_v21 = vpack.c.bf16 %v3109_v61, %v3108_v22  ;;  %v3093_v23 = vld [vmem:[%s5251_s9 + $0x8] sm:$0xff] }
0x2285   :  { %v3111_v60 = vld [vmem:[%s5251_s9 + $0x98] sm:$0xff] }
0x2286   :  { %v2906_v63 = vadd.f32 %v2904_v46, %v2899_v34  ;;  %v2911_v7 = vsel %vm150_vm0, %v2908_v3, 0.0  ;;  %v3110_v34 = vld [vmem:[%s5251_s9 + $0x90] sm:$0xff]  ;;  %3905 = vmatprep.subr.bf16.mxu1 %v3904_v21 }
0x2287   :  { %2912 = vadd.xlane.f32.xlu1 %v2911_v7  ;;  %v2894_v8 = vpop.f32.mrb[46].mxu1  ;;  %v3094_v7 = vld [vmem:[%s5251_s9 + $0x10] sm:$0xff] }
0x2288   :  { %v2900_v56 = vadd.f32 %v2894_v8, %v2557_v17  ;;  %v3659_v57 = vpop.f32.mrb[47].mxu1  ;;  %v2909_v11 = vadd.f32 %v2906_v63, %v4699_v38  ;;  %v3908_v63 = vpack.c.bf16 %v3111_v60, %v3110_v34  ;;  %v3095_v8 = vld [vmem:[%s5251_s9 + $0x18] sm:$0xff] }
0x2289   :  { %v3113_v57 = vld [vmem:[%s5251_s9 + $0xa8] sm:$0xff] }
0x228a   :  { %v2907_v12 = vadd.f32 %v2904_v46, %v2900_v56  ;;  %v2914_v59 = vsel %vm150_vm0, %v2909_v11, 0.0  ;;  %v3902_v46 = vpack.c.bf16 %v2980_v27, %v2978_v51  ;;  %v3112_v56 = vld [vmem:[%s5251_s9 + $0xa0] sm:$0xff] }
0x228b   :  { %2915 = vadd.xlane.f32.xlu0 %v2914_v59  ;;  %v3096_v59 = vld [vmem:[%s5251_s9 + $0x20] sm:$0xff] }
0x228c   :  { %v2910_v9 = vadd.f32 %v2907_v12, %v4751_v19  ;;  %3903 = vmatpush1.bf16.msra.mxu0 %v3902_v46  ;;  %v3912_v12 = vpack.c.bf16 %v3113_v57, %v3112_v56  ;;  %v2982_v56 = vld [vmem:[%s5250_s8] sm:$0x3] }
0x228d   :  { %v2987_v57 = vrot.slane %v2982_v56, %v4424_v33 }
0x228e   :  { %v2918_v16 = vsel %vm2917_vm12, %v2910_v9, 0.0 }
0x228f   :  { %2919 = vadd.xlane.f32.xlu1 %v2918_v16  ;;  %v3114_v16 = vld [vmem:[%s5251_s9 + $0xb0] sm:$0xff] }
0x2314   :  { %v2913_v35 = vpop.xlane.xlu1 %2912 }
0x2315   :  { %v2922_v49 = vmul.f32 0.015625, %v2913_v35  ;;  %v3115_v35 = vld [vmem:[%s5251_s9 + $0xb8] sm:$0xff] }
0x2317   :  { %v5048_v13 = vsub.f32 %v2908_v3, %v2922_v49  ;;  %v3906_v3 = vpack.c.bf16 %v3093_v23, %v3092_v53 }
0x2318   :  { %v2916_v62 = vpop.xlane.xlu0 %2915 }
0x2319   :  { %v2923_v14 = vmul.f32 0.015625, %v2916_v62  ;;  %v2928_v17 = vmul.f32 %v5048_v13, %v5048_v13  ;;  %3907 = vmatpush3.bf16.msra.mxu1 %v3906_v3  ;;  %v3916_v62 = vpack.c.bf16 %v3115_v35, %v3114_v16 }
0x231a   :  { %3909 = vmatprep.subr.bf16.mxu1 %v3908_v63  ;;  %v3106_v63 = vld [vmem:[%s5251_s9 + $0x70] sm:$0xff] }
0x231b   :  { %v5052_v38 = vsub.f32 %v2909_v11, %v2923_v14  ;;  %v2931_v18 = vsel %vm150_vm0, %v2928_v17, 0.0  ;;  %v3910_v11 = vpack.c.bf16 %v3095_v8, %v3094_v7  ;;  %v3098_v14 = vld [vmem:[%s5251_s9 + $0x30] sm:$0xff]  ;;  %v3099_v17 = vld [vmem:[%s5251_s9 + $0x38] sm:$0xff] }
0x231c   :  { %2932 = vadd.xlane.f32.xlu0 %v2931_v18  ;;  %v2920_v4 = vpop.xlane.xlu1 %2919  ;;  %v3116_v18 = vld [vmem:[%s5251_s9 + $0xc0] sm:$0xff]  ;;  %v3107_v7 = vld [vmem:[%s5251_s9 + $0x78] sm:$0xff] }
0x231d   :  { %v2924_v20 = vmul.f32 0.015625, %v2920_v4  ;;  %v2929_v19 = vmul.f32 %v5052_v38, %v5052_v38  ;;  %3911 = vmatpush3.bf16.msra.mxu1 %v3910_v11  ;;  %v3117_v4 = vld [vmem:[%s5251_s9 + $0xc8] sm:$0xff]  ;;  %v3934_v8 = vpack.c.bf16 %v3107_v7, %v3106_v63  ;;  %v2991_v11 = vrot.slane %v2982_v56, %v4432_v37 }
0x231e   :  { %3913 = vmatprep.subr.bf16.mxu1 %v3912_v12 }
0x231f   :  { %v5057_v2 = vsub.f32 %v2910_v9, %v2924_v20  ;;  %v2934_v1 = vsel %vm150_vm0, %v2929_v19, 0.0  ;;  %v3097_v9 = vld [vmem:[%s5251_s9 + $0x28] sm:$0xff]  ;;  %v3918_v20 = vpack.c.bf16 %v3099_v17, %v3098_v14  ;;  %v3920_v19 = vpack.c.bf16 %v3117_v4, %v3116_v18 }
0x2320   :  { %2935 = vadd.xlane.f32.xlu1 %v2934_v1  ;;  %v3914_v49 = vpack.c.bf16 %v3097_v9, %v3096_v59  ;;  %v3100_v1 = vld [vmem:[%s5251_s9 + $0x40] sm:$0xff] }
0x2321   :  { %v2930_v6 = vmul.f32 %v5057_v2, %v5057_v2 }
0x2322   :  { %3915 = vmatpush3.bf16.msra.mxu1 %v3914_v49 }
0x2323   :  { %v2937_v25 = vsel %vm2917_vm12, %v2930_v6, 0.0  ;;  %3917 = vmatprep.subr.bf16.mxu1 %v3916_v62  ;;  %v3101_v6 = vld [vmem:[%s5251_s9 + $0x48] sm:$0xff] }
0x2324   :  { %2938 = vadd.xlane.f32.xlu0 %v2937_v25  ;;  %v3118_v25 = vld [vmem:[%s5251_s9 + $0xd0] sm:$0xff]  ;;  %v3922_v30 = vpack.c.bf16 %v3101_v6, %v3100_v1 }
0x2325   :  { %v3924_v24 = vpack.c.bf16 %v3119_v5, %v3118_v25 }
0x2326   :  { %3919 = vmatpush3.bf16.msra.mxu1 %v3918_v20 }
0x2327   :  { %3921 = vmatprep.subr.bf16.mxu1 %v3920_v19 }
0x232a   :  { %3923 = vmatpush3.bf16.msra.mxu1 %v3922_v30 }
0x232b   :  { %3925 = vmatprep.subr.bf16.mxu1 %v3924_v24 }
0x232e   :  { %3927 = vmatpush3.bf16.msra.mxu1 %v3926_v58 }
0x232f   :  { %3929 = vmatprep.subr.bf16.mxu1 %v3928_v44 }
0x23a9   :  { %v2933_v45 = vpop.xlane.xlu0 %2932 }
0x23aa   :  { %v2940_v47 = vmul.f32 0.015625, %v2933_v45 }
0x23ac   :  { %v2943_v48 = vadd.f32 1e-05, %v2940_v47 }
0x23ad   :  { %v2936_v39 = vpop.xlane.xlu1 %2935 }
0x23ae   :  { %4160 = vrsqrt.f32 %v2943_v48  ;;  %v2941_v40 = vmul.f32 0.015625, %v2936_v39 }
0x23b0   :  { %v2944_v50 = vadd.f32 1e-05, %v2941_v40 }
0x23b1   :  { %v2939_v36 = vpop.xlane.xlu0 %2938 }
0x23b2   :  { %4162 = vrsqrt.f32 %v2944_v50  ;;  %v2942_v52 = vmul.f32 0.015625, %v2939_v36 }
0x23b4   :  { %v2945_v54 = vadd.f32 1e-05, %v2942_v52 }
0x23b6   :  { %4164 = vrsqrt.f32 %v2945_v54 }
0x23b8   :  { %v4161_v15 = vpop.eup %4160 }
0x23b9   :  { %v2949_v51 = vmul.f32 %v4161_v15, %v5048_v13  ;;  %v3104_v13 = vld [vmem:[%s5251_s9 + $0x60] sm:$0xff] }
0x23bb   :  { %v2956_v27 = vmul.f32 %v2955_v41, %v2949_v51  ;;  %v3227_v51 = vsub.s32 6, %v4414_v28 }
0x23bc   :  { %v4163_v46 = vpop.eup %4162 }
0x23bd   :  { %v2963_v22 = vadd.f32 %v2962_v10, %v2956_v27  ;;  %v2950_v61 = vmul.f32 %v4163_v46, %v5052_v38  ;;  %v3105_v38 = vld [vmem:[%s5251_s9 + $0x68] sm:$0xff]  ;;  %v3232_v46 = vsub.s32 7, %v4414_v28 }
0x23be   :  { %v3930_v60 = vpack.c.bf16 %v3105_v38, %v3104_v13  ;;  %v3342_v13 = vld [vmem:[%s5252_s10 + $0x8] ss:$0 sm:$0xff] }
0x23bf   :  { %3339 = vmatmul.mubr.msk.f32.vlgmr.msra.gmra.mrb[56].mxu0 %vm150_vm0, %v2963_v22  ;;  %v2957_v53 = vmul.f32 %v2955_v41, %v2950_v61 }
0x23c0   :  { %v4165_v21 = vpop.eup %4164  ;;  %3073 = vmatprep.mubr.f32.mxu0 %v4221_v0  ;;  %3931 = vmatpush3.bf16.msra.mxu1 %v3930_v60 }
0x23c1   :  { %v2964_v23 = vadd.f32 %v2962_v10, %v2957_v53  ;;  %v2951_v29 = vmul.f32 %v4165_v21, %v5057_v2  ;;  %v3122_v2 = vld [vmem:[%s5251_s9 + $0xf0] sm:$0xff]  ;;  %v3228_v53 = vrot.slane %v5036_v55, %v3227_v51 }
0x23c3   :  { %3340 = vmatmul.mubr.msk.f32.gmra.mrb[58].mxu0 %vm150_vm0, %v2964_v23  ;;  %v2958_v34 = vmul.f32 %v2955_v41, %v2951_v29  ;;  %v3233_v23 = vrot.slane %v5036_v55, %v3232_v46 }
0x23c4   :  { %3079 = vmatprep.mubr.f32.mxu0 %v4221_v0  ;;  %v3123_v0 = vld [vmem:[%s5251_s9 + $0xf8] sm:$0xff] }
0x23c5   :  { %v2965_v31 = vadd.f32 %v2962_v10, %v2958_v34  ;;  %v3932_v3 = vpack.c.bf16 %v3123_v0, %v3122_v2  ;;  %v3222_v10 = vsub.s32 5, %v4414_v28 }
0x23c7   :  { %3341 = vmatmul.mubr.msk.f32.gmra.mrb[60].mxu0 %vm150_vm0, %v2965_v31  ;;  %3933 = vmatprep.subr.bf16.mxu1 %v3932_v3  ;;  %v3223_v27 = vrot.slane %v5036_v55, %v3222_v10 }
0x23c8   :  { %3935 = vmatpush3.bf16.msra.mxu1 %v3934_v8 }
0x2492   :  { %v3069_v12 = vpop.f32.mrb[56].mxu0 }
0x2493   :  { %v3070_v59 = vadd.f32 %v3069_v12, %v2987_v57  ;;  %v3071_v9 = vpop.f32.mrb[57].mxu0 }
0x2494   :  { %v3072_v16 = vadd.f32 %v3071_v9, %v2991_v11 }
0x2495   :  { %v3086_v62 = vmax.f32 %v3070_v59, 0.0 }
0x2496   :  { %v3087_v35 = vmax.f32 %v3072_v16, 0.0  ;;  %v3075_v49 = vpop.f32.mrb[58].mxu0 }
0x2497   :  { %v3076_v14 = vadd.f32 %v3075_v49, %v2987_v57  ;;  %v3077_v17 = vpop.f32.mrb[59].mxu0 }
0x2498   :  { %v3078_v18 = vadd.f32 %v3077_v17, %v2991_v11  ;;  %3192 = vmatprep.mubr.f32.mxu1 %v3087_v35 }
0x2499   :  { %3193 = vmatmul.mubr.f32.vlgmr.msra.gmra.mrb[48].mxu1 %v3086_v62  ;;  %v3088_v19 = vmax.f32 %v3076_v14, 0.0 }
0x249a   :  { %v3089_v4 = vmax.f32 %v3078_v18, 0.0  ;;  %v3081_v20 = vpop.f32.mrb[60].mxu0 }
0x249b   :  { %v3082_v1 = vadd.f32 %v3081_v20, %v2987_v57  ;;  %v3083_v6 = vpop.f32.mrb[61].mxu0 }
0x249c   :  { %v3084_v33 = vadd.f32 %v3083_v6, %v2991_v11  ;;  %3196 = vmatprep.mubr.f32.mxu1 %v3089_v4 }
0x249d   :  { %3197 = vmatmul.mubr.f32.gmra.mrb[50].mxu1 %v3088_v19  ;;  %v3090_v25 = vmax.f32 %v3082_v1, 0.0 }
0x249e   :  { %v3091_v37 = vmax.f32 %v3084_v33, 0.0 }
0x24a0   :  { %3200 = vmatprep.mubr.f32.mxu1 %v3091_v37 }
0x24a1   :  { %3201 = vmatmul.mubr.f32.gmra.mrb[52].mxu1 %v3090_v25 }
0x256c   :  { %v3454_v5 = vpop.f32.mrb[48].mxu1 }
0x256d   :  { %v3455_v30 = vpop.f32.mrb[49].mxu1 }
0x2570   :  { %v3457_v24 = vpop.f32.mrb[50].mxu1 }
0x2571   :  { %v3458_v42 = vpop.f32.mrb[51].mxu1 }
0x2574   :  { %v3460_v43 = vpop.f32.mrb[52].mxu1 }
0x2575   :  { %v3461_v58 = vpop.f32.mrb[53].mxu1 }
0x2576   :  { %v3462_v44 = vadd.f32 %v3461_v58, %v3460_v43 }
0x2578   :  { %v3203_v45 = vadd.f32 %v3462_v44, %v3127_v26 }
0x257a   :  { %v3206_v47 = vadd.f32 %v3203_v45, %v2965_v31 }
0x257c   :  { %v3207_v48 = vsel %vm2917_vm12, %v3206_v47, 0.0 }
0x257d   :  { %3208 = vadd.xlane.f32.xlu1 %v3207_v48 }
0x260a   :  { %v3209_v39 = vpop.xlane.xlu1 %3208 }
0x260b   :  { %v3210_v40 = vmul.f32 0.015625, %v3209_v39 }
0x260d   :  { %v3211_v50 = vsub.f32 %v3206_v47, %v3210_v40 }
0x260f   :  { %v3212_v36 = vmul.f32 %v3211_v50, %v3211_v50 }
0x2611   :  { %v3213_v52 = vsel %vm2917_vm12, %v3212_v36, 0.0 }
0x2612   :  { %3214 = vadd.xlane.f32.xlu0 %v3213_v52 }
0x269f   :  { %v3215_v54 = vpop.xlane.xlu0 %3214 }
0x26a0   :  { %v3216_v41 = vmul.f32 0.015625, %v3215_v54 }
0x26a2   :  { %v3217_v15 = vadd.f32 1e-05, %v3216_v41 }
0x26a4   :  { %4166 = vrsqrt.f32 %v3217_v15 }
0x26ae   :  { %v4167_v22 = vpop.eup %4166 }
0x26af   :  { %v3219_v61 = vmul.f32 %v4167_v22, %v3211_v50 }
0x26b1   :  { %v3224_v21 = vmul.f32 %v3223_v27, %v3219_v61 }
0x26b3   :  { %v3229_v29 = vadd.f32 %v3228_v53, %v3224_v21 }
0x26b5   :  { %v3234_v34 = vmul.f32 %v3233_v23, %v3229_v29 }
0x26b7   :  { %v3236_v31 = vsel %vm3235_vm13, %v3234_v34, 0.0 }
0x26b8   :  { %3237 = vadd.xlane.f32.xlu1 %v3236_v31 }
0x2745   :  { %v3238_v38 = vpop.xlane.xlu1 %3237 }
0x2746   :  { %v3243_v60 = vadd.f32 %v3342_v13, %v3238_v38 }
0x2748   :  { %3245 = vst.msk [vmem:[%s5253_s11 - $0x2] sm:$0xc] %vm3244_vm14, %v3243_v60 }
0x2749   :  { %3250 = vsyncpa [#allocation3], 1 }
0x274a   :  { %3251 = vsyncpa [#allocation5], 1 }

</bundles_post_ra>
